<compile_context>
chip_gen: v6e
topology: v6e:2x2x1
jax: 0.10.0
libtpu: 0.0.40
codegen_flags: <defaults>
</compile_context>

<pallas_src>
import functools

import jax
import jax.numpy as jnp
from jax.experimental import pallas as pl
from jax.experimental.pallas import tpu as pltpu

LANE = 128
SUBLANE = 8
BF16_SUBLANE = 16  # bf16 packs 2 rows per sublane


def _round_up(x: int, m: int) -> int:
    return (x + m - 1) // m * m


def _tpu_tuning():
    """(tm_max, bf16_epilogue) chosen per TPU generation.

    v6e/v7x: 256-wide MXU + bf16 VALU -> tm up to 256, bf16 bias/ReLU epilogue.
    v5e and older: 128-wide MXU, no bf16 VALU -> tm <= 128, f32 epilogue.
    """
    try:
        kind = jax.devices()[0].device_kind.lower()
    except Exception:  # pragma: no cover - be conservative if query fails
        kind = ""
    modern = ("v6" in kind) or ("v7" in kind) or ("7x" in kind)
    tm_max = 256 if modern else 128
    return tm_max, modern


def _decoder_kernel(x_ref,
                    w1_ref, b1_ref,
                    w2_ref, b2_ref,
                    w3_ref, b3_ref,
                    w4_ref, b4_ref,
                    o_ref,
                    *, bf16_epilogue):
    """Fused 4-layer MLP.  All matmuls are bf16 x bf16 -> f32 on the MXU.

    x_ref : (tm, K0P) bf16
    wN_ref: (KP, NP)  bf16 (zero-padded)
    bN_ref: (1, NP)   bf16 (hidden, if bf16_epilogue) / f32 otherwise; b4 always f32
    o_ref : (tm, OUTP) f32
    """

    def hidden_epilogue(acc_f32, b_ref):
        if bf16_epilogue:
            # bf16 bias-add + ReLU: halves vreg count / VALU ops vs. f32 (v6e/v7x).
            h = acc_f32.astype(jnp.bfloat16) + b_ref[...]
            return jnp.maximum(h, jnp.array(0, dtype=h.dtype))
        # f32 epilogue (v5e-safe), then cast once for the next MXU pass.
        h = jnp.maximum(acc_f32 + b_ref[...], 0.0)
        return h.astype(jnp.bfloat16)

    a = jnp.dot(x_ref[...], w1_ref[...], preferred_element_type=jnp.float32)
    a = hidden_epilogue(a, b1_ref)
    a = jnp.dot(a, w2_ref[...], preferred_element_type=jnp.float32)
    a = hidden_epilogue(a, b2_ref)
    a = jnp.dot(a, w3_ref[...], preferred_element_type=jnp.float32)
    a = hidden_epilogue(a, b3_ref)
    a = jnp.dot(a, w4_ref[...], preferred_element_type=jnp.float32)
    o_ref[...] = (a + b4_ref[...]).astype(o_ref.dtype)


def _const_spec(shape):
    """Full-array, grid-invariant operand: try single-buffering (no re-DMA ever)."""
    try:
        return pl.BlockSpec(shape, lambda i: (0, 0), pipeline_mode=pl.Buffered(1))
    except TypeError:
        return pl.BlockSpec(shape, lambda i: (0, 0))


def _fused_decoder_call(xp, layers, tm, bf16_epilogue):
    """xp: (BP, K0P) bf16 padded input; layers: [(w_pad bf16, b_pad), ...]."""
    BP, K0P = xp.shape
    OUTP = layers[-1][0].shape[1]

    in_specs = [pl.BlockSpec((tm, K0P), lambda i: (i, 0))]  # activation tile
    flat_args = []
    for w, b in layers:
        in_specs.append(_const_spec(w.shape))
        in_specs.append(_const_spec(b.shape))
        flat_args.extend([w, b])

    kernel = functools.partial(_decoder_kernel, bf16_epilogue=bf16_epilogue)

    return pl.pallas_call(
        kernel,
        out_shape=jax.ShapeDtypeStruct((BP, OUTP), jnp.float32),
        grid_spec=pltpu.PrefetchScalarGridSpec(
            num_scalar_prefetch=0,
            grid=(BP // tm,),
            in_specs=in_specs,
            out_specs=pl.BlockSpec((tm, OUTP), lambda i: (i, 0)),
        ),
        compiler_params=pltpu.CompilerParams(
            dimension_semantics=("parallel",),       # shard batch tiles across TCs (v7x)
            vmem_limit_bytes=24 * 1024 * 1024,       # ~8-12 MiB actual footprint + headroom
        ),
    )(xp, *flat_args)


def init_decoder_params(key, input_dim: int, feature_dim: int):
    """Unpadded f32 params matching the PyTorch Decoder's Linear layers.

    Stored as (in_features, out_features) so y = x @ W + b  (W = torch weight.T).
    """
    dims = [feature_dim, 2000, 500, 500, input_dim]
    params = []
    for i in range(len(dims) - 1):
        fan_in, fan_out = dims[i], dims[i + 1]
        key, wk, bk = jax.random.split(key, 3)
        bound = 1.0 / jnp.sqrt(jnp.float32(fan_in))
        w = jax.random.uniform(wk, (fan_in, fan_out), jnp.float32, -bound, bound)
        b = jax.random.uniform(bk, (fan_out,), jnp.float32, -bound, bound)
        params.append((w, b))
    return params


def prepare_decoder_params(params, bf16_epilogue):
    """Pad dims and cast weights to bf16.

    Layer-1 contraction dim is padded only to a bf16-sublane multiple (16), not
    128 -> 4x less W1/x HBM traffic.  All output dims are padded to 128 (lane
    dense).  Zero padding is exact through every ReLU layer.
    Hidden biases are stored in the epilogue dtype; the final bias stays f32.
    """
    prepared = []
    n = len(params)
    for idx, (w, b) in enumerate(params):
        K, N = w.shape
        Kp = _round_up(K, BF16_SUBLANE) if idx == 0 else _round_up(K, LANE)
        Np = _round_up(N, LANE)
        wp = jnp.zeros((Kp, Np), jnp.bfloat16).at[:K, :N].set(w.astype(jnp.bfloat16))
        if idx < n - 1 and bf16_epilogue:
            bp = jnp.zeros((1, Np), jnp.bfloat16).at[0, :N].set(b.astype(jnp.bfloat16))
        else:
            bp = jnp.zeros((1, Np), jnp.float32).at[0, :N].set(b)
        prepared.append((wp, bp))
    return prepared


@functools.partial(jax.jit, static_argnums=(2, 3, 4))
def decoder_forward(layers, x, out_dim, tm_max, bf16_epilogue):
    """x: (batch, feature_dim) f32 -> (batch, out_dim) f32."""
    M, K = x.shape
    K0P = layers[0][0].shape[0]

    # Batch tiling: tm <= tm_max, multiple of 8; pad batch rows with zeros.
    BP = _round_up(max(M, SUBLANE), SUBLANE)
    tm = min(tm_max, BP)
    BP = _round_up(BP, tm)

    xp = jnp.zeros((BP, K0P), jnp.bfloat16).at[:M, :K].set(x.astype(jnp.bfloat16))
    out = _fused_decoder_call(xp, layers, tm, bf16_epilogue)
    return out[:M, :out_dim]


if __name__ == "__main__":
    input_dim = 64      # reconstructed data dimension
    feature_dim = 32    # latent feature dimension
    batch = 8

    tm_max, bf16_epilogue = _tpu_tuning()

    key = jax.random.PRNGKey(0)
    pkey, xkey = jax.random.split(key)
    params = init_decoder_params(pkey, input_dim, feature_dim)
    layers = prepare_decoder_params(params, bf16_epilogue)
    x = jax.random.normal(xkey, (batch, feature_dim), jnp.float32)

    out = decoder_forward(layers, x, input_dim, tm_max, bf16_epilogue)
    out = jax.block_until_ready(out)
    assert out.shape == (batch, input_dim)

    # Reference 1: plain JAX mirroring the kernel's exact precision choices.
    n = len(params)
    ref = x.astype(jnp.bfloat16)
    for i, (w, b) in enumerate(params):
        acc = jnp.dot(ref, w.astype(jnp.bfloat16), preferred_element_type=jnp.float32)
        if i < n - 1:
            if bf16_epilogue:
                h = acc.astype(jnp.bfloat16) + b.astype(jnp.bfloat16)
                ref = jnp.maximum(h, jnp.array(0, dtype=h.dtype))
            else:
                ref = jnp.maximum(acc + b, 0.0).astype(jnp.bfloat16)
        else:
            ref = acc + b
    assert jnp.allclose(out, ref, atol=1e-2, rtol=1e-2), "mismatch vs matching-precision ref"

    # Reference 2: full-f32 PyTorch-equivalent forward (loose tol for bf16 path).
    ref_f32 = x
    for i, (w, b) in enumerate(params):
        ref_f32 = ref_f32 @ w + b
        if i < len(params) - 1:
            ref_f32 = jnp.maximum(ref_f32, 0.0)
    assert jnp.allclose(out, ref_f32, atol=1e-1, rtol=1e-1), "mismatch vs f32 reference"

    print("KERNEL_OK")
</pallas_src>

<mosaic_0001>
module attributes {stable_mosaic.version = 11 : i64} {
  func.func @_decoder_kernel(%arg0: i32, %arg1: memref<8x32xbf16, #tpu.memory_space<vmem>>, %arg2: memref<32x2048xbf16, #tpu.memory_space<vmem>>, %arg3: memref<1x2048xf32, #tpu.memory_space<vmem>>, %arg4: memref<2048x512xbf16, #tpu.memory_space<vmem>>, %arg5: memref<1x512xf32, #tpu.memory_space<vmem>>, %arg6: memref<512x512xbf16, #tpu.memory_space<vmem>>, %arg7: memref<1x512xf32, #tpu.memory_space<vmem>>, %arg8: memref<512x128xbf16, #tpu.memory_space<vmem>>, %arg9: memref<1x128xf32, #tpu.memory_space<vmem>>, %arg10: memref<8x128xf32, #tpu.memory_space<vmem>>) attributes {dimension_semantics = [#tpu.dimension_semantics<parallel>], iteration_bounds = array<i64: 1>, scalar_prefetch = 0 : i64, scratch_operands = 0 : i64, tpu.core_type = #tpu.core_type<tc>, window_params = [{transform_indices = @transform_0, window_bounds = array<i64: 8, 32>}, {pipeline_mode = #tpu.pipeline_mode<synchronous>, transform_indices = @transform_1, window_bounds = array<i64: 32, 2048>}, {pipeline_mode = #tpu.pipeline_mode<synchronous>, transform_indices = @transform_2, window_bounds = array<i64: 1, 2048>}, {pipeline_mode = #tpu.pipeline_mode<synchronous>, transform_indices = @transform_3, window_bounds = array<i64: 2048, 512>}, {pipeline_mode = #tpu.pipeline_mode<synchronous>, transform_indices = @transform_4, window_bounds = array<i64: 1, 512>}, {pipeline_mode = #tpu.pipeline_mode<synchronous>, transform_indices = @transform_5, window_bounds = array<i64: 512, 512>}, {pipeline_mode = #tpu.pipeline_mode<synchronous>, transform_indices = @transform_6, window_bounds = array<i64: 1, 512>}, {pipeline_mode = #tpu.pipeline_mode<synchronous>, transform_indices = @transform_7, window_bounds = array<i64: 512, 128>}, {pipeline_mode = #tpu.pipeline_mode<synchronous>, transform_indices = @transform_8, window_bounds = array<i64: 1, 128>}, {transform_indices = @transform_9, window_bounds = array<i64: 8, 128>}]} {
    %c0 = arith.constant 0 : index
    %c0_0 = arith.constant 0 : index
    %0 = vector.load %arg1[%c0, %c0_0] : memref<8x32xbf16, #tpu.memory_space<vmem>>, vector<8x32xbf16>
    %c0_1 = arith.constant 0 : index
    %c0_2 = arith.constant 0 : index
    %1 = vector.load %arg2[%c0_1, %c0_2] : memref<32x2048xbf16, #tpu.memory_space<vmem>>, vector<32x2048xbf16>
    %cst = arith.constant dense<0.000000e+00> : vector<8x2048xf32>
    %2 = tpu.matmul %0, %1, %cst {dimension_numbers = #tpu.dot_dimension_numbers<[1], [0], [0], [1], [0, 0, 1, 1], [], []>} : vector<8x32xbf16>, vector<32x2048xbf16>, vector<8x2048xf32> -> vector<8x2048xf32>
    %c0_3 = arith.constant 0 : index
    %c0_4 = arith.constant 0 : index
    %3 = vector.load %arg3[%c0_3, %c0_4] : memref<1x2048xf32, #tpu.memory_space<vmem>>, vector<1x2048xf32>
    %4 = vector.broadcast %3 : vector<1x2048xf32> to vector<8x2048xf32>
    %5 = arith.addf %2, %4 : vector<8x2048xf32>
    %cst_5 = arith.constant 0.000000e+00 : f32
    %6 = vector.broadcast %cst_5 : f32 to vector<8x2048xf32>
    %7 = arith.maximumf %5, %6 : vector<8x2048xf32>
    %8 = arith.truncf %7 : vector<8x2048xf32> to vector<8x2048xbf16>
    %c0_6 = arith.constant 0 : index
    %c0_7 = arith.constant 0 : index
    %9 = vector.load %arg4[%c0_6, %c0_7] : memref<2048x512xbf16, #tpu.memory_space<vmem>>, vector<2048x512xbf16>
    %cst_8 = arith.constant dense<0.000000e+00> : vector<8x512xf32>
    %10 = tpu.matmul %8, %9, %cst_8 {dimension_numbers = #tpu.dot_dimension_numbers<[1], [0], [0], [1], [0, 0, 1, 1], [], []>} : vector<8x2048xbf16>, vector<2048x512xbf16>, vector<8x512xf32> -> vector<8x512xf32>
    %c0_9 = arith.constant 0 : index
    %c0_10 = arith.constant 0 : index
    %11 = vector.load %arg5[%c0_9, %c0_10] : memref<1x512xf32, #tpu.memory_space<vmem>>, vector<1x512xf32>
    %12 = vector.broadcast %11 : vector<1x512xf32> to vector<8x512xf32>
    %13 = arith.addf %10, %12 : vector<8x512xf32>
    %cst_11 = arith.constant 0.000000e+00 : f32
    %14 = vector.broadcast %cst_11 : f32 to vector<8x512xf32>
    %15 = arith.maximumf %13, %14 : vector<8x512xf32>
    %16 = arith.truncf %15 : vector<8x512xf32> to vector<8x512xbf16>
    %c0_12 = arith.constant 0 : index
    %c0_13 = arith.constant 0 : index
    %17 = vector.load %arg6[%c0_12, %c0_13] : memref<512x512xbf16, #tpu.memory_space<vmem>>, vector<512x512xbf16>
    %cst_14 = arith.constant dense<0.000000e+00> : vector<8x512xf32>
    %18 = tpu.matmul %16, %17, %cst_14 {dimension_numbers = #tpu.dot_dimension_numbers<[1], [0], [0], [1], [0, 0, 1, 1], [], []>} : vector<8x512xbf16>, vector<512x512xbf16>, vector<8x512xf32> -> vector<8x512xf32>
    %c0_15 = arith.constant 0 : index
    %c0_16 = arith.constant 0 : index
    %19 = vector.load %arg7[%c0_15, %c0_16] : memref<1x512xf32, #tpu.memory_space<vmem>>, vector<1x512xf32>
    %20 = vector.broadcast %19 : vector<1x512xf32> to vector<8x512xf32>
    %21 = arith.addf %18, %20 : vector<8x512xf32>
    %cst_17 = arith.constant 0.000000e+00 : f32
    %22 = vector.broadcast %cst_17 : f32 to vector<8x512xf32>
    %23 = arith.maximumf %21, %22 : vector<8x512xf32>
    %24 = arith.truncf %23 : vector<8x512xf32> to vector<8x512xbf16>
    %c0_18 = arith.constant 0 : index
    %c0_19 = arith.constant 0 : index
    %25 = vector.load %arg8[%c0_18, %c0_19] : memref<512x128xbf16, #tpu.memory_space<vmem>>, vector<512x128xbf16>
    %cst_20 = arith.constant dense<0.000000e+00> : vector<8x128xf32>
    %26 = tpu.matmul %24, %25, %cst_20 {dimension_numbers = #tpu.dot_dimension_numbers<[1], [0], [0], [1], [0, 0, 1, 1], [], []>} : vector<8x512xbf16>, vector<512x128xbf16>, vector<8x128xf32> -> vector<8x128xf32>
    %c0_21 = arith.constant 0 : index
    %c0_22 = arith.constant 0 : index
    %27 = vector.load %arg9[%c0_21, %c0_22] : memref<1x128xf32, #tpu.memory_space<vmem>>, vector<1x128xf32>
    %28 = vector.broadcast %27 : vector<1x128xf32> to vector<8x128xf32>
    %29 = arith.addf %26, %28 : vector<8x128xf32>
    %c0_23 = arith.constant 0 : index
    %c0_24 = arith.constant 0 : index
    %30 = vector.load %arg10[%c0_23, %c0_24] : memref<8x128xf32, #tpu.memory_space<vmem>>, vector<8x128xf32>
    tpu.vector_store %arg10[%c0_23, %c0_24], %29 {strides = array<i32>} : memref<8x128xf32, #tpu.memory_space<vmem>>, vector<8x128xf32>,
    return
  }
  func.func @transform_0(%arg0: i32) -> (i32, i32) {
    %c0_i32 = arith.constant 0 : i32
    %c0_i32_0 = arith.constant 0 : i32
    return %arg0, %c0_i32 : i32, i32
  }
  func.func @transform_1(%arg0: i32) -> (i32, i32) {
    %c0_i32 = arith.constant 0 : i32
    %c0_i32_0 = arith.constant 0 : i32
    %c0_i32_1 = arith.constant 0 : i32
    return %c0_i32, %c0_i32_0 : i32, i32
  }
  func.func @transform_2(%arg0: i32) -> (i32, i32) {
    %c0_i32 = arith.constant 0 : i32
    %c0_i32_0 = arith.constant 0 : i32
    %c0_i32_1 = arith.constant 0 : i32
    return %c0_i32, %c0_i32_0 : i32, i32
  }
  func.func @transform_3(%arg0: i32) -> (i32, i32) {
    %c0_i32 = arith.constant 0 : i32
    %c0_i32_0 = arith.constant 0 : i32
    %c0_i32_1 = arith.constant 0 : i32
    return %c0_i32, %c0_i32_0 : i32, i32
  }
  func.func @transform_4(%arg0: i32) -> (i32, i32) {
    %c0_i32 = arith.constant 0 : i32
    %c0_i32_0 = arith.constant 0 : i32
    %c0_i32_1 = arith.constant 0 : i32
    return %c0_i32, %c0_i32_0 : i32, i32
  }
  func.func @transform_5(%arg0: i32) -> (i32, i32) {
    %c0_i32 = arith.constant 0 : i32
    %c0_i32_0 = arith.constant 0 : i32
    %c0_i32_1 = arith.constant 0 : i32
    return %c0_i32, %c0_i32_0 : i32, i32
  }
  func.func @transform_6(%arg0: i32) -> (i32, i32) {
    %c0_i32 = arith.constant 0 : i32
    %c0_i32_0 = arith.constant 0 : i32
    %c0_i32_1 = arith.constant 0 : i32
    return %c0_i32, %c0_i32_0 : i32, i32
  }
  func.func @transform_7(%arg0: i32) -> (i32, i32) {
    %c0_i32 = arith.constant 0 : i32
    %c0_i32_0 = arith.constant 0 : i32
    %c0_i32_1 = arith.constant 0 : i32
    return %c0_i32, %c0_i32_0 : i32, i32
  }
  func.func @transform_8(%arg0: i32) -> (i32, i32) {
    %c0_i32 = arith.constant 0 : i32
    %c0_i32_0 = arith.constant 0 : i32
    %c0_i32_1 = arith.constant 0 : i32
    return %c0_i32, %c0_i32_0 : i32, i32
  }
  func.func @transform_9(%arg0: i32) -> (i32, i32) {
    %c0_i32 = arith.constant 0 : i32
    %c0_i32_0 = arith.constant 0 : i32
    return %arg0, %c0_i32 : i32, i32
  }
}

</mosaic_0001>

<bundles_post_ra>
// kernel: decoder_forward.1
= control target key start
LH: loop header
LB: loop body
LE: loop exit
PB: predicated region body
PF: predicated region fallthrough
CT: control target
= control target key end

     0   :  { %14 = vsyncpa [#allocation3], 0  ;;  %s8155_s0 = inlined_call_operand.vmem [shape: bf16[8,32], index: 0, kind: input, shape index: {}]   ;;  %s8156_s1 = inlined_call_operand.hbm [shape: bf16[32,2048], index: 1, kind: input, shape index: {}]   ;;  %s8157_s2 = inlined_call_operand.hbm [shape: f32[1,2048], index: 2, kind: input, shape index: {}]   ;;  %s8158_s3 = inlined_call_operand.hbm [shape: bf16[2048,512], index: 3, kind: input, shape index: {}]   ;;  %s8159_s4 = inlined_call_operand.hbm [shape: f32[1,512], index: 4, kind: input, shape index: {}]   ;;  %s8160_s5 = inlined_call_operand.hbm [shape: bf16[512,512], index: 5, kind: input, shape index: {}]   ;;  %s8161_s6 = inlined_call_operand.hbm [shape: f32[1,512], index: 6, kind: input, shape index: {}]   ;;  %s8162_s7 = inlined_call_operand.hbm [shape: bf16[512,128], index: 7, kind: input, shape index: {}]   ;;  %s8163_s8 = inlined_call_operand.hbm [shape: f32[1,128], index: 8, kind: input, shape index: {}]   ;;  %s8164_s9 = inlined_call_operand.hbm [shape: f32[8,128], index: 9, kind: output, shape index: {}]  }
   0x1   :  { %15 = vsyncpa [#allocation6], 0 }
   0x2   :  { %16 = vsyncpa [#allocation9], 0 }
   0x3   :  { %17 = vsyncpa [#allocation12], 0 }
   0x4   :  { %18 = vsyncpa [#allocation15], 0 }
   0x5   :  { %19 = vsyncpa [#allocation4], 0  ;;  %s7816_s30 = smov [#allocation5]   ;;  %s7817_s11 = smov [#allocation8]  }
   0x6   :  { %s40_s10 = sshll.u32 %s7816_s30, 4  ;;  %s62_s12 = sshll.u32 %s7817_s11, 4  ;;  %s41_s10 = int_to_ptr.vmem [resolvable:$true] %s40_s10  ;;  %s63_s12 = int_to_ptr.vmem [resolvable:$true] %s62_s12 }
   0x7   :  { %s7632_s13 = scalar_lea.vmem %s41_s10, 256  ;;  %p7637_p1 = scmp.lt.s32.totalorder %s41_s10, %s41_s10 }
   0x8   :  { %p7633_p0 = scmp.ne.s32.totalorder %s41_s10, %s7632_s13  ;;  %p7638_p2 = scmp.lt.s32.totalorder %s7632_s13, %s7632_s13 }
   0xa   :  { %p7639_p3 = por %p7638_p2, %p7637_p1 }
   0xc   :  { %p7640_p4 = pnand %p7639_p3, %p7633_p0 }
   0xe   :  { %7643 = shalt.err (!%p7640_p4)
}
   0xf   :  { %43 = dma.hbm_to_vmem [thread:$0]  %s8157_s2, 256, %s41_s10, [#allocation6]  }
  0x10   :  { %s7652_s16 = scalar_lea.vmem %s63_s12, 64  ;;  %p7657_p6 = scmp.lt.s32.totalorder %s63_s12, %s63_s12 }
  0x11   :  { %p7653_p5 = scmp.ne.s32.totalorder %s63_s12, %s7652_s16  ;;  %p7658_p7 = scmp.lt.s32.totalorder %s7652_s16, %s7652_s16 }
  0x13   :  { %p7659_p8 = por %p7658_p7, %p7657_p6 }
  0x15   :  { %p7660_p9 = pnand %p7659_p8, %p7653_p5 }
  0x17   :  { %7663 = shalt.err (!%p7660_p9)
}
  0x18   :  { %65 = dma.hbm_to_vmem [thread:$0]  %s8159_s4, 64, %s63_s12, [#allocation9]  }
  0x19   :  { %s7818_s19 = smov [#allocation11]   ;;  %s7819_s21 = smov [#allocation2]  }
  0x1a   :  { %s84_s20 = sshll.u32 %s7818_s19, 4  ;;  %s27_s22 = sshll.u32 %s7819_s21, 4  ;;  %s85_s20 = int_to_ptr.vmem [resolvable:$true] %s84_s20  ;;  %s28_s22 = int_to_ptr.vmem [resolvable:$true] %s27_s22 }
  0x1b   :  { %s7672_s23 = scalar_lea.vmem %s85_s20, 64  ;;  %p7677_p11 = scmp.lt.s32.totalorder %s85_s20, %s85_s20 }
  0x1c   :  { %p7673_p10 = scmp.ne.s32.totalorder %s85_s20, %s7672_s23  ;;  %p7678_p12 = scmp.lt.s32.totalorder %s7672_s23, %s7672_s23 }
  0x1e   :  { %p7679_p13 = por %p7678_p12, %p7677_p11 }
  0x20   :  { %p7680_p0 = pnand %p7679_p13, %p7673_p10 }
  0x22   :  { %7683 = shalt.err (!%p7680_p0)
}
  0x23   :  { %87 = dma.hbm_to_vmem [thread:$0]  %s8161_s6, 64, %s85_s20, [#allocation12]  }
  0x24   :  { %s7692_s25 = scalar_lea.vmem %s28_s22, 4096  ;;  %p7697_p2 = scmp.lt.s32.totalorder %s28_s22, %s28_s22 }
  0x25   :  { %p7693_p1 = scmp.ne.s32.totalorder %s28_s22, %s7692_s25  ;;  %p7698_p3 = scmp.lt.s32.totalorder %s7692_s25, %s7692_s25 }
  0x27   :  { %p7699_p4 = por %p7698_p3, %p7697_p2 }
  0x29   :  { %p7700_p5 = pnand %p7699_p4, %p7693_p1 }
  0x2b   :  { %7703 = shalt.err (!%p7700_p5)
}
  0x2c   :  { %s7820_s4 = smov 1024   ;;  %s7821_s26 = smov 64  }
  0x2d   :  { %33 = dma.hbm_to_vmem [thread:$0]  %s8156_s1, 4096, %s28_s22, [#allocation3], %s7820_s4, %s7820_s4, %s7821_s26  }
  0x2e   :  { %s7822_s29 = smov [#allocation7]  }
  0x2f   :  { %s49_s30 = sshll.u32 %s7822_s29, 4  ;;  %s50_s30 = int_to_ptr.vmem [resolvable:$true] %s49_s30 }
  0x30   :  { %s7712_s10 = scalar_lea.vmem %s50_s30, 65536  ;;  %p7717_p7 = scmp.lt.s32.totalorder %s50_s30, %s50_s30 }
  0x31   :  { %p7713_p6 = scmp.ne.s32.totalorder %s50_s30, %s7712_s10  ;;  %p7718_p8 = scmp.lt.s32.totalorder %s7712_s10, %s7712_s10 }
  0x33   :  { %p7719_p9 = por %p7718_p8, %p7717_p7 }
  0x35   :  { %p7720_p10 = pnand %p7719_p9, %p7713_p6 }
  0x37   :  { %7723 = shalt.err (!%p7720_p10)
}
  0x38   :  { %s7823_s6 = smov 256   ;;  %s7824_s11 = smov 16  }
  0x39   :  { %55 = dma.hbm_to_vmem [thread:$0]  %s8158_s3, 65536, %s50_s30, [#allocation6], %s7823_s6, %s7823_s6, %s7824_s11  }
  0x3a   :  { %s7825_s14 = smov [#allocation10]   ;;  %s7826_s1 = smov [#allocation13]  }
  0x3b   :  { %s71_s15 = sshll.u32 %s7825_s14, 4  ;;  %s93_s16 = sshll.u32 %s7826_s1, 4  ;;  %s72_s15 = int_to_ptr.vmem [resolvable:$true] %s71_s15  ;;  %s94_s16 = int_to_ptr.vmem [resolvable:$true] %s93_s16 }
  0x3c   :  { %s7732_s17 = scalar_lea.vmem %s72_s15, 16384  ;;  %p7737_p12 = scmp.lt.s32.totalorder %s72_s15, %s72_s15 }
  0x3d   :  { %p7733_p11 = scmp.ne.s32.totalorder %s72_s15, %s7732_s17  ;;  %p7738_p13 = scmp.lt.s32.totalorder %s7732_s17, %s7732_s17 }
  0x3f   :  { %p7739_p0 = por %p7738_p13, %p7737_p12 }
  0x41   :  { %p7740_p1 = pnand %p7739_p0, %p7733_p11 }
  0x43   :  { %7743 = shalt.err (!%p7740_p1)
}
  0x44   :  { %77 = dma.hbm_to_vmem [thread:$0]  %s8160_s5, 16384, %s72_s15, [#allocation9], %s7823_s6, %s7823_s6, %s7824_s11  }
  0x45   :  { %s7752_s20 = scalar_lea.vmem %s94_s16, 4096  ;;  %p7757_p3 = scmp.lt.s32.totalorder %s94_s16, %s94_s16 }
  0x46   :  { %p7753_p2 = scmp.ne.s32.totalorder %s94_s16, %s7752_s20  ;;  %p7758_p4 = scmp.lt.s32.totalorder %s7752_s20, %s7752_s20 }
  0x48   :  { %p7759_p5 = por %p7758_p4, %p7757_p3 }
  0x4a   :  { %p7760_p6 = pnand %p7759_p5, %p7753_p2 }
  0x4c   :  { %7763 = shalt.err (!%p7760_p6)
}
  0x4d   :  { %s7827_s3 = smov 4   ;;  %s7828_s23 = smov [#allocation14]  }
  0x4e   :  { %99 = dma.hbm_to_vmem [thread:$0]  %s8162_s7, 4096, %s94_s16, [#allocation12], %s7821_s26, %s7821_s26, %s7827_s3  }
  0x4f   :  { %s106_s2 = sshll.u32 %s7828_s23, 4  ;;  %s107_s2 = int_to_ptr.vmem [resolvable:$true] %s106_s2 }
  0x50   :  { %s7772_s24 = scalar_lea.vmem %s107_s2, 16  ;;  %s7776_s5 = scalar_lea.vmem %s107_s2, 32 }
  0x51   :  { %p7773_p7 = scmp.ne.s32.totalorder %s107_s2, %s7772_s24  ;;  %p7777_p8 = scmp.lt.s32.totalorder %s107_s2, %s107_s2 }
  0x52   :  { %p7778_p9 = scmp.lt.s32.totalorder %s7776_s5, %s7772_s24 }
  0x54   :  { %p7779_p10 = por %p7778_p9, %p7777_p8 }
  0x56   :  { %p7780_p11 = pnand %p7779_p10, %p7773_p7 }
  0x58   :  { %7783 = shalt.err (!%p7780_p11)
}
  0x59   :  { %109 = dma.hbm_to_vmem [thread:$0]  %s8163_s8, 16, %s107_s2, [#allocation15]  }
  0x5a   :  { %7804 = dma.done.wait [#allocation3], 4096  }
  0x5b   :  { %7805 = vsyncadd [#allocation3], 4294963200 }
  0x5c   :  { %7806 = dma.done.wait [#allocation6], 65792  }
  0x5d   :  { %7807 = vsyncadd [#allocation6], 4294901504 }
  0x5e   :  { %7808 = dma.done.wait [#allocation9], 16448  }
  0x5f   :  { %7809 = vsyncadd [#allocation9], 4294950848 }
  0x60   :  { %7810 = dma.done.wait [#allocation12], 4160  }
  0x61   :  { %7811 = vsyncadd [#allocation12], 4294963136 }
  0x62   :  { %7812 = dma.done.wait [#allocation15], 16  }
  0x63   :  { %7813 = vsyncadd [#allocation15], 4294967280  ;;  %v7829_v0 = vmov 0   ;;  %v152_v1 = vld [vmem:[#allocation2 + $0x80] sm:$0xff]  ;;  %v153_v3 = vld [vmem:[#allocation2 + $0x88] sm:$0xff]  ;;  %vm412_vm0 = vcmask 261120  }
  0x64   :  { %448 = vmatprep.mubr.bf16.mxu0 %v7829_v0  ;;  %489 = vmatprep.mubr.bf16.mxu1 %v7829_v0  ;;  %v160_v2 = vld [vmem:[#allocation2 + $0xc0] sm:$0xff]  ;;  %v161_v5 = vld [vmem:[#allocation2 + $0xc8] sm:$0xff]  ;;  %v154_v15 = vld [vmem:[#allocation2 + $0x90] sm:$0xff] }
  0x65   :  { %v5876_v4 = vcombine.high %v152_v1, %v160_v2  ;;  %v5875_v6 = vcombine.low %v152_v1, %v160_v2  ;;  %v136_v7 = vld [vmem:[#allocation2] sm:$0xff]  ;;  %v5878_v9 = vcombine.high %v153_v3, %v161_v5  ;;  %v5877_v10 = vcombine.low %v153_v3, %v161_v5  ;;  %v137_v12 = vld [vmem:[#allocation2 + $0x8] sm:$0xff]  ;;  %v162_v16 = vld [vmem:[#allocation2 + $0xd0] sm:$0xff] }
  0x66   :  { %v144_v8 = vld [vmem:[#allocation2 + $0x40] sm:$0xff]  ;;  %v145_v13 = vld [vmem:[#allocation2 + $0x48] sm:$0xff]  ;;  %v155_v17 = vld [vmem:[#allocation2 + $0x98] sm:$0xff]  ;;  %v5880_v21 = vcombine.high %v154_v15, %v162_v16  ;;  %v5879_v28 = vcombine.low %v154_v15, %v162_v16 }
  0x67   :  { %v5860_v11 = vcombine.high %v136_v7, %v144_v8  ;;  %428 = vmatprep.subr.bf16.mxu0 %v5876_v4  ;;  %v5862_v14 = vcombine.high %v137_v12, %v145_v13  ;;  %469 = vmatprep.subr.bf16.mxu1 %v5878_v9  ;;  %v5859_v18 = vcombine.low %v136_v7, %v144_v8  ;;  %v163_v19 = vld [vmem:[#allocation2 + $0xd8] sm:$0xff]  ;;  %v138_v23 = vld [vmem:[#allocation2 + $0x10] sm:$0xff]  ;;  %v7913_v27 = vld [vmem:[%s8155_s0] sm:$0xf]  ;;  %s7830_s0 = smov [#allocation16]  }
  0x68   :  { %429 = vmatpush1.bf16.msra.mxu0 %v5875_v6  ;;  %470 = vmatpush1.bf16.msra.mxu1 %v5877_v10  ;;  %v5861_v20 = vcombine.low %v137_v12, %v145_v13  ;;  %v5882_v22 = vcombine.high %v155_v17, %v163_v19  ;;  %v146_v24 = vld [vmem:[#allocation2 + $0x50] sm:$0xff]  ;;  %v139_v25 = vld [vmem:[#allocation2 + $0x18] sm:$0xff]  ;;  %v5881_v29 = vcombine.low %v155_v17, %v163_v19  ;;  %v156_v32 = vld [vmem:[#allocation2 + $0xa0] sm:$0xff]  ;;  %s5846_s26 = sshll.u32 %s7830_s0, 4  ;;  %s5847_s26 = int_to_ptr.vmem [resolvable:$true] %s5846_s26 }
  0x69   :  { %430 = vmatprep.subr.bf16.mxu0 %v5860_v11  ;;  %471 = vmatprep.subr.bf16.mxu1 %v5862_v14  ;;  %v147_v26 = vld [vmem:[#allocation2 + $0x58] sm:$0xff]  ;;  %v5864_v30 = vcombine.high %v138_v23, %v146_v24  ;;  %v164_v33 = vld [vmem:[#allocation2 + $0xe0] sm:$0xff]  ;;  %v157_v34 = vld [vmem:[#allocation2 + $0xa8] sm:$0xff]  ;;  %v5863_v36 = vcombine.low %v138_v23, %v146_v24  ;;  %s7784_s27 = scalar_lea.vmem %s5847_s26, 128  ;;  %p7789_p13 = scmp.lt.s32.totalorder %s5847_s26, %s5847_s26 }
  0x6a   :  { %v5866_v31 = vcombine.high %v139_v25, %v147_v26  ;;  %v165_v35 = vld [vmem:[#allocation2 + $0xe8] sm:$0xff]  ;;  %v5865_v37 = vcombine.low %v139_v25, %v147_v26  ;;  %v5884_v38 = vcombine.high %v156_v32, %v164_v33  ;;  %v140_v39 = vld [vmem:[#allocation2 + $0x20] sm:$0xff]  ;;  %v5883_v44 = vcombine.low %v156_v32, %v164_v33  ;;  %v158_v47 = vld [vmem:[#allocation2 + $0xb0] sm:$0xff]  ;;  %p7785_p12 = scmp.ne.s32.totalorder %s5847_s26, %s7784_s27  ;;  %p7790_p0 = scmp.lt.s32.totalorder %s7784_s27, %s7784_s27 }
  0x6b   :  { %v5886_v40 = vcombine.high %v157_v34, %v165_v35  ;;  %v148_v41 = vld [vmem:[#allocation2 + $0x60] sm:$0xff]  ;;  %v141_v42 = vld [vmem:[#allocation2 + $0x28] sm:$0xff]  ;;  %v5885_v45 = vcombine.low %v157_v34, %v165_v35  ;;  %v166_v49 = vld [vmem:[#allocation2 + $0xf0] sm:$0xff] }
  0x6c   :  { %431 = vmatpush1.bf16.msra.mxu0 %v5859_v18  ;;  %472 = vmatpush1.bf16.msra.mxu1 %v5861_v20  ;;  %v149_v43 = vld [vmem:[#allocation2 + $0x68] sm:$0xff]  ;;  %v5868_v46 = vcombine.high %v140_v39, %v148_v41  ;;  %v159_v50 = vld [vmem:[#allocation2 + $0xb8] sm:$0xff]  ;;  %v5867_v52 = vcombine.low %v140_v39, %v148_v41  ;;  %v5888_v54 = vcombine.high %v158_v47, %v166_v49  ;;  %v142_v55 = vld [vmem:[#allocation2 + $0x30] sm:$0xff]  ;;  %p7791_p1 = por %p7790_p0, %p7789_p13 }
  0x6d   :  { %510 = vmatprep.subr.bf16.mxu0 %v5880_v21  ;;  %551 = vmatprep.subr.bf16.mxu1 %v5882_v22  ;;  %v5870_v48 = vcombine.high %v141_v42, %v149_v43  ;;  %v167_v51 = vld [vmem:[#allocation2 + $0xf8] sm:$0xff]  ;;  %v5869_v53 = vcombine.low %v141_v42, %v149_v43  ;;  %v150_v57 = vld [vmem:[#allocation2 + $0x70] sm:$0xff]  ;;  %v5887_v60 = vcombine.low %v158_v47, %v166_v49 }
  0x6e   :  { %v5890_v56 = vcombine.high %v159_v50, %v167_v51  ;;  %v143_v58 = vld [vmem:[#allocation2 + $0x38] sm:$0xff]  ;;  %v5889_v61 = vcombine.low %v159_v50, %v167_v51  ;;  %v5872_v62 = vcombine.high %v142_v55, %v150_v57  ;;  %v5871_v1 = vcombine.low %v142_v55, %v150_v57  ;;  %v6633_v3 = vld [vmem:[#allocation7 + $0xe4] ss:$16 sps:$4 sm:$0xff]   ;;  %v6631_v5 = vld [vmem:[#allocation7 + $0xe0] ss:$16 sps:$4 sm:$0xff]   ;;  %p7792_p2 = pnand %p7791_p1, %p7785_p12 }
  0x6f   :  { %5891 = vmatmul.mubr.msk.bf16.vlgmr.msra.gmra.mxu0 %vm412_vm0, %v7913_v27  ;;  %5892 = vmatmul.mubr.msk.bf16.vlgmr.msra.gmra.mxu1 %vm412_vm0, %v7913_v27  ;;  %v151_v59 = vld [vmem:[#allocation2 + $0x78] sm:$0xff]  ;;  %v6636_v4 = vld [vmem:[#allocation7 + $0x2e4] ss:$16 sps:$4 sm:$0xff]   ;;  %v6634_v6 = vld [vmem:[#allocation7 + $0x2e0] ss:$16 sps:$4 sm:$0xff]  }
  0x70   :  { %511 = vmatpush1.bf16.msra.mxu0 %v5879_v28  ;;  %552 = vmatpush1.bf16.msra.mxu1 %v5881_v29  ;;  %v5874_v63 = vcombine.high %v143_v58, %v151_v59  ;;  %v5873_v2 = vcombine.low %v143_v58, %v151_v59  ;;  %v6639_v7 = vld [vmem:[#allocation7 + $0xc4] ss:$16 sps:$4 sm:$0xff]   ;;  %v6637_v9 = vld [vmem:[#allocation7 + $0xc0] ss:$16 sps:$4 sm:$0xff]  }
  0x71   :  { %512 = vmatprep.subr.bf16.mxu0 %v5864_v30  ;;  %553 = vmatprep.subr.bf16.mxu1 %v5866_v31  ;;  %v6642_v8 = vld [vmem:[#allocation7 + $0x2c4] ss:$16 sps:$4 sm:$0xff]   ;;  %v6640_v10 = vld [vmem:[#allocation7 + $0x2c0] ss:$16 sps:$4 sm:$0xff]  }
  0x72   :  { %530 = vmatprep.mubr.bf16.mxu0 %v7829_v0  ;;  %571 = vmatprep.mubr.bf16.mxu1 %v7829_v0  ;;  %v6648_v11 = vld [vmem:[#allocation7 + $0x2a4] ss:$16 sps:$4 sm:$0xff]   ;;  %v6643_v12 = vld [vmem:[#allocation7 + $0xa0] ss:$16 sps:$4 sm:$0xff]  }
  0x73   :  { %v6646_v13 = vld [vmem:[#allocation7 + $0x2a0] ss:$16 sps:$4 sm:$0xff]   ;;  %v6651_v14 = vld [vmem:[#allocation7 + $0x84] ss:$16 sps:$4 sm:$0xff]  }
  0x74   :  { %513 = vmatpush1.bf16.msra.mxu0 %v5863_v36  ;;  %554 = vmatpush1.bf16.msra.mxu1 %v5865_v37  ;;  %v6654_v15 = vld [vmem:[#allocation7 + $0x284] ss:$16 sps:$4 sm:$0xff]   ;;  %v6649_v16 = vld [vmem:[#allocation7 + $0x80] ss:$16 sps:$4 sm:$0xff]  }
  0x75   :  { %592 = vmatprep.subr.bf16.mxu0 %v5884_v38  ;;  %633 = vmatprep.subr.bf16.mxu1 %v5886_v40  ;;  %v6652_v17 = vld [vmem:[#allocation7 + $0x280] ss:$16 sps:$4 sm:$0xff]   ;;  %v6657_v18 = vld [vmem:[#allocation7 + $0x64] ss:$16 sps:$4 sm:$0xff]  }
  0x76   :  { %v6655_v19 = vld [vmem:[#allocation7 + $0x60] ss:$16 sps:$4 sm:$0xff]   ;;  %v6660_v20 = vld [vmem:[#allocation7 + $0x264] ss:$16 sps:$4 sm:$0xff]  }
  0x77   :  { %5893 = vmatmul.mubr.msk.bf16.vlgmr.msra.gmra.mxu0 %vm412_vm0, %v7913_v27  ;;  %5894 = vmatmul.mubr.msk.bf16.vlgmr.msra.gmra.mxu1 %vm412_vm0, %v7913_v27  ;;  %v6658_v21 = vld [vmem:[#allocation7 + $0x260] ss:$16 sps:$4 sm:$0xff]   ;;  %v6663_v22 = vld [vmem:[#allocation7 + $0x44] ss:$16 sps:$4 sm:$0xff]  }
  0x78   :  { %593 = vmatpush1.bf16.msra.mxu0 %v5883_v44  ;;  %634 = vmatpush1.bf16.msra.mxu1 %v5885_v45  ;;  %v6666_v23 = vld [vmem:[#allocation7 + $0x244] ss:$16 sps:$4 sm:$0xff]   ;;  %v6661_v24 = vld [vmem:[#allocation7 + $0x40] ss:$16 sps:$4 sm:$0xff]  }
  0x79   :  { %594 = vmatprep.subr.bf16.mxu0 %v5868_v46  ;;  %635 = vmatprep.subr.bf16.mxu1 %v5870_v48  ;;  %v6664_v25 = vld [vmem:[#allocation7 + $0x240] ss:$16 sps:$4 sm:$0xff]   ;;  %v6669_v26 = vld [vmem:[#allocation7 + $0x24] ss:$16 sps:$4 sm:$0xff]  }
  0x7a   :  { %612 = vmatprep.mubr.bf16.mxu0 %v7829_v0  ;;  %653 = vmatprep.mubr.bf16.mxu1 %v7829_v0  ;;  %v6667_v28 = vld [vmem:[#allocation7 + $0x20] ss:$16 sps:$4 sm:$0xff]   ;;  %v6675_v30 = vld [vmem:[#allocation7 + $0x4] ss:$16 sps:$4 sm:$0xff]  }
  0x7b   :  { %v6670_v29 = vld [vmem:[#allocation7 + $0x220] ss:$16 sps:$4 sm:$0xff]   ;;  %v6678_v31 = vld [vmem:[#allocation7 + $0x204] ss:$16 sps:$4 sm:$0xff]  }
  0x7c   :  { %595 = vmatpush1.bf16.msra.mxu0 %v5867_v52  ;;  %636 = vmatpush1.bf16.msra.mxu1 %v5869_v53  ;;  %v6673_v32 = vld [vmem:[#allocation7] ss:$16 sps:$4 sm:$0xff]   ;;  %v6681_v34 = vld [vmem:[#allocation7 + $0x1e4] ss:$16 sps:$4 sm:$0xff]  }
  0x7d   :  { %674 = vmatprep.subr.bf16.mxu0 %v5888_v54  ;;  %715 = vmatprep.subr.bf16.mxu1 %v5890_v56  ;;  %v6676_v33 = vld [vmem:[#allocation7 + $0x200] ss:$16 sps:$4 sm:$0xff]   ;;  %v6684_v35 = vld [vmem:[#allocation7 + $0x3e4] ss:$16 sps:$4 sm:$0xff]  }
  0x7e   :  { %v6679_v36 = vld [vmem:[#allocation7 + $0x1e0] ss:$16 sps:$4 sm:$0xff]   ;;  %v6687_v38 = vld [vmem:[#allocation7 + $0x1c4] ss:$16 sps:$4 sm:$0xff]  }
  0x7f   :  { %5895 = vmatmul.mubr.msk.bf16.vlgmr.msra.gmra.mxu0 %vm412_vm0, %v7913_v27  ;;  %5896 = vmatmul.mubr.msk.bf16.vlgmr.msra.gmra.mxu1 %vm412_vm0, %v7913_v27  ;;  %v6682_v37 = vld [vmem:[#allocation7 + $0x3e0] ss:$16 sps:$4 sm:$0xff]   ;;  %v6690_v39 = vld [vmem:[#allocation7 + $0x3c4] ss:$16 sps:$4 sm:$0xff]  }
  0x80   :  { %675 = vmatpush1.bf16.msra.mxu0 %v5887_v60  ;;  %716 = vmatpush1.bf16.msra.mxu1 %v5889_v61  ;;  %v6685_v40 = vld [vmem:[#allocation7 + $0x1c0] ss:$16 sps:$4 sm:$0xff]   ;;  %v6693_v42 = vld [vmem:[#allocation7 + $0x1a4] ss:$16 sps:$4 sm:$0xff]  }
  0x81   :  { %676 = vmatprep.subr.bf16.mxu0 %v5872_v62  ;;  %717 = vmatprep.subr.bf16.mxu1 %v5874_v63  ;;  %v6688_v41 = vld [vmem:[#allocation7 + $0x3c0] ss:$16 sps:$4 sm:$0xff]   ;;  %v6696_v43 = vld [vmem:[#allocation7 + $0x3a4] ss:$16 sps:$4 sm:$0xff]  }
  0x82   :  { %694 = vmatprep.mubr.bf16.mxu0 %v7829_v0  ;;  %735 = vmatprep.mubr.bf16.mxu1 %v7829_v0  ;;  %v6645_v0 = vld [vmem:[#allocation7 + $0xa4] ss:$16 sps:$4 sm:$0xff]   ;;  %v6691_v44 = vld [vmem:[#allocation7 + $0x1a0] ss:$16 sps:$4 sm:$0xff]  }
  0x83   :  { %v6694_v45 = vld [vmem:[#allocation7 + $0x3a0] ss:$16 sps:$4 sm:$0xff]   ;;  %v6699_v46 = vld [vmem:[#allocation7 + $0x184] ss:$16 sps:$4 sm:$0xff]  }
  0x84   :  { %677 = vmatpush1.bf16.msra.mxu0 %v5871_v1  ;;  %718 = vmatpush1.bf16.msra.mxu1 %v5873_v2  ;;  %v6702_v47 = vld [vmem:[#allocation7 + $0x384] ss:$16 sps:$4 sm:$0xff]   ;;  %v6697_v48 = vld [vmem:[#allocation7 + $0x180] ss:$16 sps:$4 sm:$0xff]  }
  0x85   :  { %3870 = vmatprep.subr.bf16.mxu0 %v6633_v3  ;;  %3911 = vmatprep.subr.bf16.mxu1 %v6636_v4  ;;  %v6700_v49 = vld [vmem:[#allocation7 + $0x380] ss:$16 sps:$4 sm:$0xff]   ;;  %v6705_v50 = vld [vmem:[#allocation7 + $0x164] ss:$16 sps:$4 sm:$0xff]  }
  0x86   :  { %v6708_v51 = vld [vmem:[#allocation7 + $0x364] ss:$16 sps:$4 sm:$0xff]   ;;  %v6703_v52 = vld [vmem:[#allocation7 + $0x160] ss:$16 sps:$4 sm:$0xff]  }
  0x87   :  { %5897 = vmatmul.mubr.msk.bf16.vlgmr.msra.gmra.mxu0 %vm412_vm0, %v7913_v27  ;;  %5898 = vmatmul.mubr.msk.bf16.vlgmr.msra.gmra.mxu1 %vm412_vm0, %v7913_v27  ;;  %v6672_v27 = vld [vmem:[#allocation7 + $0x224] ss:$16 sps:$4 sm:$0xff]   ;;  %v6706_v53 = vld [vmem:[#allocation7 + $0x360] ss:$16 sps:$4 sm:$0xff]  }
  0x88   :  { %3871 = vmatpush1.bf16.msra.mxu0 %v6631_v5  ;;  %3912 = vmatpush1.bf16.msra.mxu1 %v6634_v6  ;;  %v6711_v54 = vld [vmem:[#allocation7 + $0x144] ss:$16 sps:$4 sm:$0xff]   ;;  %v6709_v56 = vld [vmem:[#allocation7 + $0x140] ss:$16 sps:$4 sm:$0xff]   ;;  %v172_v5 = vlaneseq }
  0x89   :  { %3872 = vmatprep.subr.bf16.mxu0 %v6639_v7  ;;  %3913 = vmatprep.subr.bf16.mxu1 %v6642_v8  ;;  %v6714_v55 = vld [vmem:[#allocation7 + $0x344] ss:$16 sps:$4 sm:$0xff]   ;;  %v6712_v57 = vld [vmem:[#allocation7 + $0x340] ss:$16 sps:$4 sm:$0xff]  }
  0x8a   :  { %v6717_v58 = vld [vmem:[#allocation7 + $0x124] ss:$16 sps:$4 sm:$0xff]   ;;  %v6715_v60 = vld [vmem:[#allocation7 + $0x120] ss:$16 sps:$4 sm:$0xff]   ;;  %v7937_v6 = vshrl.u32 %v172_v5, 7 }
  0x8b   :  { %v6720_v59 = vld [vmem:[#allocation7 + $0x324] ss:$16 sps:$4 sm:$0xff]   ;;  %v6718_v61 = vld [vmem:[#allocation7 + $0x320] ss:$16 sps:$4 sm:$0xff]  }
  0x8c   :  { %3873 = vmatpush1.bf16.msra.mxu0 %v6637_v9  ;;  %3914 = vmatpush1.bf16.msra.mxu1 %v6640_v10  ;;  %v6723_v62 = vld [vmem:[#allocation7 + $0x104] ss:$16 sps:$4 sm:$0xff]   ;;  %v6721_v1 = vld [vmem:[#allocation7 + $0x100] ss:$16 sps:$4 sm:$0xff]   ;;  %v7942_v8 = vsub.s32 0, %v7937_v6  ;;  %v7945_v9 = vsub.s32 2, %v7937_v6 }
  0x8d   :  { %3874 = vmatprep.subr.bf16.mxu0 %v6645_v0  ;;  %3915 = vmatprep.subr.bf16.mxu1 %v6648_v11  ;;  %v6726_v63 = vld [vmem:[#allocation7 + $0x304] ss:$16 sps:$4 sm:$0xff]   ;;  %v6724_v2 = vld [vmem:[#allocation7 + $0x300] ss:$16 sps:$4 sm:$0xff]   ;;  %v7948_v10 = vsub.s32 1, %v7937_v6  ;;  %v7951_v0 = vsub.s32 3, %v7937_v6 }
  0x8e   :  { %v6729_v3 = vld [vmem:[#allocation7 + $0x4e4] ss:$16 sps:$4 sm:$0xff]   ;;  %v6748_v5 = vld [vmem:[#allocation7 + $0x680] ss:$16 sps:$4 sm:$0xff]  }
  0x8f   :  { %v6732_v4 = vld [vmem:[#allocation7 + $0x6e4] ss:$16 sps:$4 sm:$0xff]  }
  0x90   :  { %3875 = vmatpush1.bf16.msra.mxu0 %v6643_v12  ;;  %3916 = vmatpush1.bf16.msra.mxu1 %v6646_v13  ;;  %v7939_v7 = vld [vmem:[#allocation5] sm:$0xff] }
  0x91   :  { %3876 = vmatprep.subr.bf16.mxu0 %v6651_v14  ;;  %3917 = vmatprep.subr.bf16.mxu1 %v6654_v15  ;;  %v175_v11 = vrot.slane %v7939_v7, %v7942_v8  ;;  %v183_v12 = vrot.slane %v7939_v7, %v7945_v9  ;;  %v179_v13 = vrot.slane %v7939_v7, %v7948_v10 }
  0x92   :  { %v187_v15 = vrot.slane %v7939_v7, %v7951_v0 }
  0x94   :  { %3877 = vmatpush1.bf16.msra.mxu0 %v6649_v16  ;;  %3918 = vmatpush1.bf16.msra.mxu1 %v6652_v17 }
  0x95   :  { %3878 = vmatprep.subr.bf16.mxu0 %v6657_v18  ;;  %3919 = vmatprep.subr.bf16.mxu1 %v6660_v20 }
  0x98   :  { %3879 = vmatpush1.bf16.msra.mxu0 %v6655_v19  ;;  %3920 = vmatpush1.bf16.msra.mxu1 %v6658_v21 }
  0x99   :  { %3880 = vmatprep.subr.bf16.mxu0 %v6663_v22  ;;  %3921 = vmatprep.subr.bf16.mxu1 %v6666_v23  ;;  %v194_v22 = vsub.s32 5, %v7937_v6 }
  0x9c   :  { %3881 = vmatpush1.bf16.msra.mxu0 %v6661_v24  ;;  %3922 = vmatpush1.bf16.msra.mxu1 %v6664_v25 }
  0x9d   :  { %3882 = vmatprep.subr.bf16.mxu0 %v6669_v26  ;;  %3923 = vmatprep.subr.bf16.mxu1 %v6672_v27  ;;  %v202_v27 = vsub.s32 7, %v7937_v6 }
  0xa0   :  { %3883 = vmatpush1.bf16.msra.mxu0 %v6667_v28  ;;  %3924 = vmatpush1.bf16.msra.mxu1 %v6670_v29 }
  0xa1   :  { %3884 = vmatprep.subr.bf16.mxu0 %v6675_v30  ;;  %3925 = vmatprep.subr.bf16.mxu1 %v6678_v31  ;;  %v6727_v30 = vld [vmem:[#allocation7 + $0x4e0] ss:$16 sps:$4 sm:$0xff]  }
  0xa4   :  { %3885 = vmatpush1.bf16.msra.mxu0 %v6673_v32  ;;  %3926 = vmatpush1.bf16.msra.mxu1 %v6676_v33  ;;  %v6730_v33 = vld [vmem:[#allocation7 + $0x6e0] ss:$16 sps:$4 sm:$0xff]  }
  0xa5   :  { %3886 = vmatprep.subr.bf16.mxu0 %v6681_v34  ;;  %3927 = vmatprep.subr.bf16.mxu1 %v6684_v35  ;;  %v6735_v34 = vld [vmem:[#allocation7 + $0x4c4] ss:$16 sps:$4 sm:$0xff]  }
  0xa8   :  { %3887 = vmatpush2.bf16.msra.mxu0 %v6679_v36  ;;  %3928 = vmatpush2.bf16.msra.mxu1 %v6682_v37 }
  0xa9   :  { %3888 = vmatprep.subr.bf16.mxu0 %v6687_v38  ;;  %3929 = vmatprep.subr.bf16.mxu1 %v6690_v39  ;;  %v195_v38 = vrot.slane %v7939_v7, %v194_v22 }
  0xac   :  { %3889 = vmatpush2.bf16.msra.mxu0 %v6685_v40  ;;  %3930 = vmatpush2.bf16.msra.mxu1 %v6688_v41 }
  0xad   :  { %3890 = vmatprep.subr.bf16.mxu0 %v6693_v42  ;;  %3931 = vmatprep.subr.bf16.mxu1 %v6696_v43  ;;  %v203_v42 = vrot.slane %v7939_v7, %v202_v27  ;;  %v6738_v43 = vld [vmem:[#allocation7 + $0x6c4] ss:$16 sps:$4 sm:$0xff]  }
  0xb0   :  { %3891 = vmatpush2.bf16.msra.mxu0 %v6691_v44  ;;  %3932 = vmatpush2.bf16.msra.mxu1 %v6694_v45  ;;  %v6733_v45 = vld [vmem:[#allocation7 + $0x4c0] ss:$16 sps:$4 sm:$0xff]  }
  0xb1   :  { %3892 = vmatprep.subr.bf16.mxu0 %v6699_v46  ;;  %3933 = vmatprep.subr.bf16.mxu1 %v6702_v47 }
  0xb4   :  { %3893 = vmatpush2.bf16.msra.mxu0 %v6697_v48  ;;  %3934 = vmatpush2.bf16.msra.mxu1 %v6700_v49  ;;  %v6736_v49 = vld [vmem:[#allocation7 + $0x6c0] ss:$16 sps:$4 sm:$0xff]  }
  0xb5   :  { %3894 = vmatprep.subr.bf16.mxu0 %v6705_v50  ;;  %3935 = vmatprep.subr.bf16.mxu1 %v6708_v51  ;;  %v6741_v50 = vld [vmem:[#allocation7 + $0x4a4] ss:$16 sps:$4 sm:$0xff]  }
  0xb8   :  { %3895 = vmatpush2.bf16.msra.mxu0 %v6703_v52  ;;  %3936 = vmatpush2.bf16.msra.mxu1 %v6706_v53  ;;  %v6739_v53 = vld [vmem:[#allocation7 + $0x4a0] ss:$16 sps:$4 sm:$0xff]  }
  0xb9   :  { %3896 = vmatprep.subr.bf16.mxu0 %v6711_v54  ;;  %3937 = vmatprep.subr.bf16.mxu1 %v6714_v55  ;;  %v6744_v54 = vld [vmem:[#allocation7 + $0x6a4] ss:$16 sps:$4 sm:$0xff]  }
  0xbc   :  { %3897 = vmatpush2.bf16.msra.mxu0 %v6709_v56  ;;  %3938 = vmatpush2.bf16.msra.mxu1 %v6712_v57 }
  0xbd   :  { %3898 = vmatprep.subr.bf16.mxu0 %v6717_v58  ;;  %3939 = vmatprep.subr.bf16.mxu1 %v6720_v59 }
  0xc0   :  { %3899 = vmatpush2.bf16.msra.mxu0 %v6715_v60  ;;  %3940 = vmatpush2.bf16.msra.mxu1 %v6718_v61  ;;  %v6742_v61 = vld [vmem:[#allocation7 + $0x6a0] ss:$16 sps:$4 sm:$0xff]  }
  0xc1   :  { %3900 = vmatprep.subr.bf16.mxu0 %v6723_v62  ;;  %3941 = vmatprep.subr.bf16.mxu1 %v6726_v63  ;;  %v6747_v62 = vld [vmem:[#allocation7 + $0x484] ss:$16 sps:$4 sm:$0xff]  }
  0xc4   :  { %3901 = vmatpush2.bf16.msra.mxu0 %v6721_v1  ;;  %3942 = vmatpush2.bf16.msra.mxu1 %v6724_v2  ;;  %v6745_v2 = vld [vmem:[#allocation7 + $0x480] ss:$16 sps:$4 sm:$0xff]  }
  0xc5   :  { %3952 = vmatprep.subr.bf16.mxu0 %v6729_v3  ;;  %3993 = vmatprep.subr.bf16.mxu1 %v6732_v4  ;;  %v6750_v3 = vld [vmem:[#allocation7 + $0x684] ss:$16 sps:$4 sm:$0xff]  }
 0x12f   :  { %v450_v14 = vpop.f32.mrf.mxu0  ;;  %v491_v17 = vpop.f32.mrf.mxu1 }
 0x130   :  { %v451_v16 = vadd.f32 %v450_v14, %v175_v11  ;;  %v492_v18 = vadd.f32 %v491_v17, %v183_v12  ;;  %v190_v12 = vsub.s32 4, %v7937_v6  ;;  %v6753_v14 = vld [vmem:[#allocation7 + $0x464] ss:$16 sps:$4 sm:$0xff]  }
 0x131   :  { %v452_v19 = vpop.f32.mrf.mxu0  ;;  %v493_v21 = vpop.f32.mrf.mxu1 }
 0x132   :  { %v453_v20 = vadd.f32 %v452_v19, %v179_v13  ;;  %v744_v23 = vmax.f32 %v451_v16, 0.0  ;;  %v746_v24 = vmax.f32 %v492_v18, 0.0  ;;  %v494_v25 = vadd.f32 %v493_v21, %v187_v15  ;;  %v8001_v16 = vld [vmem:[#allocation5 + $0x8] sm:$0xff]  ;;  %v6751_v18 = vld [vmem:[#allocation7 + $0x460] ss:$16 sps:$4 sm:$0xff]  }
 0x133   :  { %v454_v26 = vpop.f32.mrf.mxu0  ;;  %v495_v29 = vpop.f32.mrf.mxu1  ;;  %v198_v15 = vsub.s32 6, %v7937_v6  ;;  %v6756_v19 = vld [vmem:[#allocation7 + $0x664] ss:$16 sps:$4 sm:$0xff]   ;;  %v223_v21 = vrot.slane %v8001_v16, %v190_v12 }
 0x134   :  { %v745_v28 = vmax.f32 %v453_v20, 0.0  ;;  %v747_v31 = vmax.f32 %v494_v25, 0.0  ;;  %v7963_v35 = vpack.c.bf16 %v746_v24, %v746_v24  ;;  %v7970_v39 = vpack.c.bf16 %v744_v23, %v744_v23  ;;  %v6759_v29 = vld [vmem:[#allocation7 + $0x444] ss:$16 sps:$4 sm:$0xff]  }
 0x135   :  { %v455_v32 = vpop.f32.mrf.mxu0  ;;  %v496_v37 = vpop.f32.mrf.mxu1  ;;  %v231_v24 = vrot.slane %v8001_v16, %v198_v15  ;;  %v227_v26 = vrot.slane %v8001_v16, %v194_v22 }
 0x136   :  { %v7965_v36 = vpack.c.bf16 %v745_v28, %v745_v28  ;;  %v7972_v40 = vpack.c.bf16 %v747_v31, %v747_v31  ;;  %v6754_v28 = vld [vmem:[#allocation7 + $0x660] ss:$16 sps:$4 sm:$0xff]   ;;  %v235_v31 = vrot.slane %v8001_v16, %v202_v27 }
 0x137   :  { %v7974_v41 = vpop.f32.mrf.mxu0  ;;  %v7980_v44 = vpop.f32.mrf.mxu1  ;;  %v6757_v32 = vld [vmem:[#allocation7 + $0x440] ss:$16 sps:$4 sm:$0xff]  }
 0x138   :  { %3902 = vmatprep.mubr.bf16.mxu0 %v7965_v36  ;;  %3943 = vmatprep.mubr.bf16.mxu1 %v7972_v40  ;;  %v6763_v27 = vld [vmem:[#allocation7 + $0x420] ss:$16 sps:$4 sm:$0xff]  }
 0x139   :  { %3903 = vmatmul.mubr.bf16.vlgmr.msra.gmra.mxu0 %v7970_v39  ;;  %v534_v46 = vpop.f32.mrf.mxu0  ;;  %3944 = vmatmul.mubr.bf16.vlgmr.msra.gmra.mxu1 %v7963_v35  ;;  %v575_v48 = vpop.f32.mrf.mxu1 }
 0x13a   :  { %3953 = vmatpush1.bf16.msra.mxu0 %v6727_v30  ;;  %v535_v47 = vadd.f32 %v534_v46, %v195_v38  ;;  %3994 = vmatpush1.bf16.msra.mxu1 %v6730_v33  ;;  %v576_v52 = vadd.f32 %v575_v48, %v203_v42  ;;  %v6762_v33 = vld [vmem:[#allocation7 + $0x644] ss:$16 sps:$4 sm:$0xff]  }
 0x13b   :  { %3954 = vmatprep.subr.bf16.mxu0 %v6735_v34  ;;  %v536_v51 = vpop.f32.mrf.mxu0  ;;  %3995 = vmatprep.subr.bf16.mxu1 %v6738_v43  ;;  %v577_v56 = vpop.f32.mrf.mxu1  ;;  %v6765_v46 = vld [vmem:[#allocation7 + $0x424] ss:$16 sps:$4 sm:$0xff]  }
 0x13c   :  { %v749_v55 = vmax.f32 %v535_v47, 0.0  ;;  %v751_v57 = vmax.f32 %v576_v52, 0.0  ;;  %v6774_v56 = vld [vmem:[#allocation7 + $0x604] ss:$16 sps:$4 sm:$0xff]  }
 0x13d   :  { %v537_v58 = vpop.f32.mrf.mxu0  ;;  %v578_v60 = vpop.f32.mrf.mxu1 }
 0x13e   :  { %3955 = vmatpush1.bf16.msra.mxu0 %v6733_v45  ;;  %v7985_v59 = vpack.c.bf16 %v749_v55, %v749_v55  ;;  %3996 = vmatpush1.bf16.msra.mxu1 %v6736_v49  ;;  %v7987_v63 = vpack.c.bf16 %v751_v57, %v751_v57  ;;  %v6760_v45 = vld [vmem:[#allocation7 + $0x640] ss:$16 sps:$4 sm:$0xff]   ;;  %v6768_v49 = vld [vmem:[#allocation7 + $0x624] ss:$16 sps:$4 sm:$0xff]  }
 0x13f   :  { %3956 = vmatprep.subr.bf16.mxu0 %v6741_v50  ;;  %v7989_v1 = vpop.f32.mrf.mxu0  ;;  %3997 = vmatprep.subr.bf16.mxu1 %v6744_v54  ;;  %v7992_v4 = vpop.f32.mrf.mxu1  ;;  %v6771_v54 = vld [vmem:[#allocation7 + $0x404] ss:$16 sps:$4 sm:$0xff]   ;;  %v6769_v55 = vld [vmem:[#allocation7 + $0x400] ss:$16 sps:$4 sm:$0xff]  }
 0x140   :  { %3984 = vmatprep.mubr.bf16.mxu0 %v7985_v59  ;;  %4025 = vmatprep.mubr.bf16.mxu1 %v7987_v63  ;;  %v6772_v57 = vld [vmem:[#allocation7 + $0x600] ss:$16 sps:$4 sm:$0xff]   ;;  %v6777_v58 = vld [vmem:[#allocation7 + $0x5e4] ss:$16 sps:$4 sm:$0xff]  }
 0x141   :  { %v7995_v11 = vpop.f32.mrf.mxu0  ;;  %v7998_v13 = vpop.f32.mrf.mxu1  ;;  %v6775_v60 = vld [vmem:[#allocation7 + $0x5e0] ss:$16 sps:$4 sm:$0xff]  }
 0x142   :  { %3957 = vmatpush1.bf16.msra.mxu0 %v6739_v53  ;;  %3998 = vmatpush1.bf16.msra.mxu1 %v6742_v61  ;;  %v6766_v53 = vld [vmem:[#allocation7 + $0x620] ss:$16 sps:$4 sm:$0xff]   ;;  %v6780_v61 = vld [vmem:[#allocation7 + $0x7e4] ss:$16 sps:$4 sm:$0xff]  }
 0x143   :  { %3958 = vmatprep.subr.bf16.mxu0 %v6747_v62  ;;  %v618_v17 = vpop.f32.mrf.mxu0  ;;  %3999 = vmatprep.subr.bf16.mxu1 %v6750_v3  ;;  %v659_v20 = vpop.f32.mrf.mxu1  ;;  %v6778_v62 = vld [vmem:[#allocation7 + $0x7e0] ss:$16 sps:$4 sm:$0xff]  }
 0x144   :  { %v6781_v3 = vld [vmem:[#allocation7 + $0x5c0] ss:$16 sps:$4 sm:$0xff]   ;;  %v6789_v17 = vld [vmem:[#allocation7 + $0x5a4] ss:$16 sps:$4 sm:$0xff]  }
 0x145   :  { %v619_v23 = vpop.f32.mrf.mxu0  ;;  %v660_v25 = vpop.f32.mrf.mxu1  ;;  %v6790_v20 = vld [vmem:[#allocation7 + $0x7a0] ss:$16 sps:$4 sm:$0xff]  }
 0x146   :  { %3959 = vmatpush1.bf16.msra.mxu0 %v6745_v2  ;;  %4000 = vmatpush1.bf16.msra.mxu1 %v6748_v5  ;;  %v6783_v2 = vld [vmem:[#allocation7 + $0x5c4] ss:$16 sps:$4 sm:$0xff]   ;;  %v6793_v23 = vld [vmem:[#allocation7 + $0x580] ss:$16 sps:$4 sm:$0xff]  }
 0x147   :  { %3960 = vmatprep.subr.bf16.mxu0 %v6753_v14  ;;  %v696_v30 = vpop.f32.mrf.mxu0  ;;  %4001 = vmatprep.subr.bf16.mxu1 %v6756_v19  ;;  %v737_v37 = vpop.f32.mrf.mxu1  ;;  %v6786_v5 = vld [vmem:[#allocation7 + $0x7c4] ss:$16 sps:$4 sm:$0xff]   ;;  %v6784_v14 = vld [vmem:[#allocation7 + $0x7c0] ss:$16 sps:$4 sm:$0xff]  }
 0x148   :  { %v8015_v34 = vadd.f32 %v696_v30, %v223_v21  ;;  %v8017_v42 = vadd.f32 %v737_v37, %v231_v24  ;;  %v6792_v19 = vld [vmem:[#allocation7 + $0x7a4] ss:$16 sps:$4 sm:$0xff]   ;;  %v6796_v25 = vld [vmem:[#allocation7 + $0x780] ss:$16 sps:$4 sm:$0xff]   ;;  %v199_v37 = vrot.slane %v7939_v7, %v198_v15 }
 0x149   :  { %v698_v38 = vpop.f32.mrf.mxu0  ;;  %v739_v43 = vpop.f32.mrf.mxu1  ;;  %v6795_v21 = vld [vmem:[#allocation7 + $0x584] ss:$16 sps:$4 sm:$0xff]   ;;  %v6802_v30 = vld [vmem:[#allocation7 + $0x760] ss:$16 sps:$4 sm:$0xff]  }
 0x14a   :  { %3961 = vmatpush1.bf16.msra.mxu0 %v6751_v18  ;;  %v8019_v22 = vadd.f32 %v698_v38, %v227_v26  ;;  %4002 = vmatpush1.bf16.msra.mxu1 %v6754_v28  ;;  %v8021_v48 = vadd.f32 %v739_v43, %v235_v31  ;;  %v6787_v18 = vld [vmem:[#allocation7 + $0x5a0] ss:$16 sps:$4 sm:$0xff]   ;;  %v6798_v24 = vld [vmem:[#allocation7 + $0x784] ss:$16 sps:$4 sm:$0xff]   ;;  %v191_v38 = vrot.slane %v7939_v7, %v190_v12 }
 0x14b   :  { %3962 = vmatprep.subr.bf16.mxu0 %v6759_v29  ;;  %v700_v47 = vpop.f32.mrf.mxu0  ;;  %4003 = vmatprep.subr.bf16.mxu1 %v6762_v33  ;;  %v741_v50 = vpop.f32.mrf.mxu1  ;;  %v6801_v26 = vld [vmem:[#allocation7 + $0x564] ss:$16 sps:$4 sm:$0xff]   ;;  %v6799_v28 = vld [vmem:[#allocation7 + $0x560] ss:$16 sps:$4 sm:$0xff]  }
 0x14c   :  { %v6804_v29 = vld [vmem:[#allocation7 + $0x764] ss:$16 sps:$4 sm:$0xff]   ;;  %v6808_v43 = vld [vmem:[#allocation7 + $0x740] ss:$16 sps:$4 sm:$0xff]   ;;  %v574_v50 = vadd.f32 %v7980_v44, %v199_v37  ;;  %v533_v6 = vadd.f32 %v7974_v41, %v191_v38 }
 0x14d   :  { %v701_v51 = vpop.f32.mrf.mxu0  ;;  %v742_v52 = vpop.f32.mrf.mxu1  ;;  %v6807_v31 = vld [vmem:[#allocation7 + $0x544] ss:$16 sps:$4 sm:$0xff]   ;;  %v6814_v7 = vld [vmem:[#allocation7 + $0x720] ss:$16 sps:$4 sm:$0xff]  }
 0x14e   :  { %3963 = vmatpush1.bf16.msra.mxu0 %v6757_v32  ;;  %4004 = vmatpush1.bf16.msra.mxu1 %v6760_v45  ;;  %v6805_v32 = vld [vmem:[#allocation7 + $0x540] ss:$16 sps:$4 sm:$0xff]   ;;  %v6810_v33 = vld [vmem:[#allocation7 + $0x744] ss:$16 sps:$4 sm:$0xff]  }
 0x14f   :  { %3964 = vmatprep.subr.bf16.mxu0 %v6765_v46  ;;  %4005 = vmatprep.subr.bf16.mxu1 %v6768_v49  ;;  %v6813_v45 = vld [vmem:[#allocation7 + $0x524] ss:$16 sps:$4 sm:$0xff]   ;;  %v6811_v46 = vld [vmem:[#allocation7 + $0x520] ss:$16 sps:$4 sm:$0xff]   ;;  %v219_v49 = vrot.slane %v8001_v16, %v7951_v0 }
 0x150   :  { %v6816_v47 = vld [vmem:[#allocation7 + $0x724] ss:$16 sps:$4 sm:$0xff]   ;;  %v6817_v15 = vld [vmem:[#allocation7 + $0x500] ss:$16 sps:$4 sm:$0xff]  }
 0x151   :  { %v6819_v12 = vld [vmem:[#allocation7 + $0x504] ss:$16 sps:$4 sm:$0xff]   ;;  %v6823_v41 = vld [vmem:[#allocation7 + $0x8e0] ss:$16 sps:$4 sm:$0xff]  }
 0x152   :  { %3965 = vmatpush1.bf16.msra.mxu0 %v6763_v27  ;;  %4006 = vmatpush1.bf16.msra.mxu1 %v6766_v53  ;;  %v211_v27 = vrot.slane %v8001_v16, %v7948_v10  ;;  %v6822_v51 = vld [vmem:[#allocation7 + $0x704] ss:$16 sps:$4 sm:$0xff]   ;;  %v6820_v53 = vld [vmem:[#allocation7 + $0x700] ss:$16 sps:$4 sm:$0xff]  }
 0x153   :  { %3966 = vmatprep.subr.bf16.mxu0 %v6771_v54  ;;  %4007 = vmatprep.subr.bf16.mxu1 %v6774_v56  ;;  %v658_v54 = vadd.f32 %v7998_v13, %v219_v49  ;;  %v748_v56 = vmax.f32 %v533_v6, 0.0  ;;  %v6825_v44 = vld [vmem:[#allocation7 + $0x8e4] ss:$16 sps:$4 sm:$0xff]   ;;  %v6856_v38 = vld [vmem:[#allocation7 + $0xa40] ss:$16 sps:$4 sm:$0xff]  }
 0x154   :  { %v617_v52 = vadd.f32 %v7995_v11, %v211_v27  ;;  %v6834_v13 = vld [vmem:[#allocation7 + $0xac4] ss:$16 sps:$4 sm:$0xff]   ;;  %v6865_v49 = vld [vmem:[#allocation7 + $0x800] ss:$16 sps:$4 sm:$0xff]  }
 0x155   :  { %v8039_v11 = vpack.c.bf16 %v748_v56, %v748_v56  ;;  %v6858_v37 = vld [vmem:[#allocation7 + $0xa44] ss:$16 sps:$4 sm:$0xff]   ;;  %v6868_v6 = vld [vmem:[#allocation7 + $0xa00] ss:$16 sps:$4 sm:$0xff]  }
 0x156   :  { %3967 = vmatpush1.bf16.msra.mxu0 %v6769_v55  ;;  %4008 = vmatpush1.bf16.msra.mxu1 %v6772_v57  ;;  %v750_v55 = vmax.f32 %v574_v50, 0.0  ;;  %v6828_v57 = vld [vmem:[#allocation7 + $0xae4] ss:$16 sps:$4 sm:$0xff]  }
 0x157   :  { %3968 = vmatprep.subr.bf16.mxu0 %v6777_v58  ;;  %4009 = vmatprep.subr.bf16.mxu1 %v6780_v61  ;;  %v753_v58 = vmax.f32 %v617_v52, 0.0  ;;  %v6831_v61 = vld [vmem:[#allocation7 + $0x8c4] ss:$16 sps:$4 sm:$0xff]  }
 0x158   :  { %v6867_v27 = vld [vmem:[#allocation7 + $0x804] ss:$16 sps:$4 sm:$0xff]  }
 0x159   :  { %v6870_v50 = vld [vmem:[#allocation7 + $0xa04] ss:$16 sps:$4 sm:$0xff]  }
 0x15a   :  { %3969 = vmatpush2.bf16.msra.mxu0 %v6775_v60  ;;  %4010 = vmatpush2.bf16.msra.mxu1 %v6778_v62  ;;  %v6826_v60 = vld [vmem:[#allocation7 + $0xae0] ss:$16 sps:$4 sm:$0xff]   ;;  %v755_v62 = vmax.f32 %v658_v54, 0.0  ;;  %v6879_v52 = vld [vmem:[#allocation7 + $0x9c4] ss:$16 sps:$4 sm:$0xff]  }
 0x15b   :  { %3970 = vmatprep.subr.bf16.mxu0 %v6783_v2  ;;  %4011 = vmatprep.subr.bf16.mxu1 %v6786_v5  ;;  %v8037_v2 = vpack.c.bf16 %v750_v55, %v750_v55  ;;  %v6829_v5 = vld [vmem:[#allocation7 + $0x8c0] ss:$16 sps:$4 sm:$0xff]   ;;  %v6882_v54 = vld [vmem:[#allocation7 + $0xbc4] ss:$16 sps:$4 sm:$0xff]  }
 0x15c   :  { %v6880_v55 = vld [vmem:[#allocation7 + $0xbc0] ss:$16 sps:$4 sm:$0xff]   ;;  %v6885_v56 = vld [vmem:[#allocation7 + $0x9a4] ss:$16 sps:$4 sm:$0xff]  }
 0x15e   :  { %3971 = vmatpush2.bf16.msra.mxu0 %v6781_v3  ;;  %4012 = vmatpush2.bf16.msra.mxu1 %v6784_v14  ;;  %v8041_v3 = vpack.c.bf16 %v753_v58, %v753_v58  ;;  %v6832_v14 = vld [vmem:[#allocation7 + $0xac0] ss:$16 sps:$4 sm:$0xff]   ;;  %v6891_v58 = vld [vmem:[#allocation7 + $0x984] ss:$16 sps:$4 sm:$0xff]  }
 0x15f   :  { %3972 = vmatprep.subr.bf16.mxu0 %v6789_v17  ;;  %4013 = vmatprep.subr.bf16.mxu1 %v6792_v19  ;;  %v6837_v17 = vld [vmem:[#allocation7 + $0x8a4] ss:$16 sps:$4 sm:$0xff]  }
 0x160   :  { %v6840_v19 = vld [vmem:[#allocation7 + $0xaa4] ss:$16 sps:$4 sm:$0xff]  }
 0x162   :  { %3973 = vmatpush2.bf16.msra.mxu0 %v6787_v18  ;;  %4014 = vmatpush2.bf16.msra.mxu1 %v6790_v20  ;;  %v8044_v18 = vpack.c.bf16 %v755_v62, %v755_v62  ;;  %v6835_v20 = vld [vmem:[#allocation7 + $0x8a0] ss:$16 sps:$4 sm:$0xff]  }
 0x163   :  { %3974 = vmatprep.subr.bf16.mxu0 %v6795_v21  ;;  %4015 = vmatprep.subr.bf16.mxu1 %v6798_v24  ;;  %v6838_v21 = vld [vmem:[#allocation7 + $0xaa0] ss:$16 sps:$4 sm:$0xff]   ;;  %v6846_v24 = vld [vmem:[#allocation7 + $0xa84] ss:$16 sps:$4 sm:$0xff]  }
 0x164   :  { %v6892_v62 = vld [vmem:[#allocation7 + $0xb80] ss:$16 sps:$4 sm:$0xff]  }
 0x166   :  { %3975 = vmatpush2.bf16.msra.mxu0 %v6793_v23  ;;  %4016 = vmatpush2.bf16.msra.mxu1 %v6796_v25  ;;  %v6843_v23 = vld [vmem:[#allocation7 + $0x884] ss:$16 sps:$4 sm:$0xff]   ;;  %v6841_v25 = vld [vmem:[#allocation7 + $0x880] ss:$16 sps:$4 sm:$0xff]  }
 0x167   :  { %3976 = vmatprep.subr.bf16.mxu0 %v6801_v26  ;;  %4017 = vmatprep.subr.bf16.mxu1 %v6804_v29  ;;  %v6844_v26 = vld [vmem:[#allocation7 + $0xa80] ss:$16 sps:$4 sm:$0xff]  }
 0x168   :  { %v6847_v29 = vld [vmem:[#allocation7 + $0x860] ss:$16 sps:$4 sm:$0xff]  }
 0x16a   :  { %3977 = vmatpush2.bf16.msra.mxu0 %v6799_v28  ;;  %4018 = vmatpush2.bf16.msra.mxu1 %v6802_v30  ;;  %v6849_v28 = vld [vmem:[#allocation7 + $0x864] ss:$16 sps:$4 sm:$0xff]  }
 0x16b   :  { %3978 = vmatprep.subr.bf16.mxu0 %v6807_v31  ;;  %4019 = vmatprep.subr.bf16.mxu1 %v6810_v33  ;;  %v6852_v30 = vld [vmem:[#allocation7 + $0xa64] ss:$16 sps:$4 sm:$0xff]   ;;  %v6850_v31 = vld [vmem:[#allocation7 + $0xa60] ss:$16 sps:$4 sm:$0xff]  }
 0x16c   :  { %v6853_v33 = vld [vmem:[#allocation7 + $0x840] ss:$16 sps:$4 sm:$0xff]  }
 0x16e   :  { %3979 = vmatpush2.bf16.msra.mxu0 %v6805_v32  ;;  %4020 = vmatpush2.bf16.msra.mxu1 %v6808_v43  ;;  %v6855_v32 = vld [vmem:[#allocation7 + $0x844] ss:$16 sps:$4 sm:$0xff]  }
 0x16f   :  { %3980 = vmatprep.subr.bf16.mxu0 %v6813_v45  ;;  %4021 = vmatprep.subr.bf16.mxu1 %v6816_v47  ;;  %v6861_v43 = vld [vmem:[#allocation7 + $0x824] ss:$16 sps:$4 sm:$0xff]   ;;  %v6859_v45 = vld [vmem:[#allocation7 + $0x820] ss:$16 sps:$4 sm:$0xff]  }
 0x170   :  { %v6862_v47 = vld [vmem:[#allocation7 + $0xa20] ss:$16 sps:$4 sm:$0xff]  }
 0x172   :  { %3981 = vmatpush2.bf16.msra.mxu0 %v6811_v46  ;;  %4022 = vmatpush2.bf16.msra.mxu1 %v6814_v7  ;;  %v6864_v46 = vld [vmem:[#allocation7 + $0xa24] ss:$16 sps:$4 sm:$0xff]  }
 0x173   :  { %3982 = vmatprep.subr.bf16.mxu0 %v6819_v12  ;;  %4023 = vmatprep.subr.bf16.mxu1 %v6822_v51  ;;  %v6873_v7 = vld [vmem:[#allocation7 + $0x9e4] ss:$16 sps:$4 sm:$0xff]   ;;  %v6871_v12 = vld [vmem:[#allocation7 + $0x9e0] ss:$16 sps:$4 sm:$0xff]  }
 0x174   :  { %v6874_v51 = vld [vmem:[#allocation7 + $0xbe0] ss:$16 sps:$4 sm:$0xff]  }
 0x176   :  { %3983 = vmatpush2.bf16.msra.mxu0 %v6817_v15  ;;  %4024 = vmatpush2.bf16.msra.mxu1 %v6820_v53  ;;  %v6876_v15 = vld [vmem:[#allocation7 + $0xbe4] ss:$16 sps:$4 sm:$0xff]   ;;  %v6877_v53 = vld [vmem:[#allocation7 + $0x9c0] ss:$16 sps:$4 sm:$0xff]  }
 0x177   :  { %4034 = vmatprep.subr.bf16.mxu0 %v6825_v44  ;;  %4075 = vmatprep.subr.bf16.mxu1 %v6828_v57  ;;  %v6883_v44 = vld [vmem:[#allocation7 + $0x9a0] ss:$16 sps:$4 sm:$0xff]   ;;  %v6888_v57 = vld [vmem:[#allocation7 + $0xba4] ss:$16 sps:$4 sm:$0xff]  }
 0x179   :  { %3985 = vmatmul.mubr.bf16.vlgmr.msra.gmra.mxu0 %v8039_v11  ;;  %4026 = vmatmul.mubr.bf16.vlgmr.msra.gmra.mxu1 %v8037_v2 }
 0x17a   :  { %4035 = vmatpush1.bf16.msra.mxu0 %v6823_v41  ;;  %4076 = vmatpush1.bf16.msra.mxu1 %v6826_v60  ;;  %v6886_v41 = vld [vmem:[#allocation7 + $0xba0] ss:$16 sps:$4 sm:$0xff]  }
 0x17b   :  { %4036 = vmatprep.subr.bf16.mxu0 %v6831_v61  ;;  %4077 = vmatprep.subr.bf16.mxu1 %v6834_v13  ;;  %v6889_v60 = vld [vmem:[#allocation7 + $0x980] ss:$16 sps:$4 sm:$0xff]   ;;  %v6894_v61 = vld [vmem:[#allocation7 + $0xb84] ss:$16 sps:$4 sm:$0xff]  }
 0x17c   :  { %4066 = vmatprep.mubr.bf16.mxu0 %v8041_v3  ;;  %4107 = vmatprep.mubr.bf16.mxu1 %v8044_v18  ;;  %v6897_v13 = vld [vmem:[#allocation7 + $0x964] ss:$16 sps:$4 sm:$0xff]  }
 0x17e   :  { %4037 = vmatpush1.bf16.msra.mxu0 %v6829_v5  ;;  %4078 = vmatpush1.bf16.msra.mxu1 %v6832_v14  ;;  %v6895_v5 = vld [vmem:[#allocation7 + $0x960] ss:$16 sps:$4 sm:$0xff]   ;;  %v6900_v14 = vld [vmem:[#allocation7 + $0xb64] ss:$16 sps:$4 sm:$0xff]  }
 0x17f   :  { %4038 = vmatprep.subr.bf16.mxu0 %v6837_v17  ;;  %4079 = vmatprep.subr.bf16.mxu1 %v6840_v19  ;;  %v6898_v17 = vld [vmem:[#allocation7 + $0xb60] ss:$16 sps:$4 sm:$0xff]   ;;  %v6903_v19 = vld [vmem:[#allocation7 + $0x944] ss:$16 sps:$4 sm:$0xff]  }
 0x182   :  { %4039 = vmatpush1.bf16.msra.mxu0 %v6835_v20  ;;  %4080 = vmatpush1.bf16.msra.mxu1 %v6838_v21  ;;  %v215_v20 = vrot.slane %v8001_v16, %v7945_v9  ;;  %v6901_v21 = vld [vmem:[#allocation7 + $0x940] ss:$16 sps:$4 sm:$0xff]  }
 0x183   :  { %4040 = vmatprep.subr.bf16.mxu0 %v6843_v23  ;;  %4081 = vmatprep.subr.bf16.mxu1 %v6846_v24  ;;  %v6906_v23 = vld [vmem:[#allocation7 + $0xb44] ss:$16 sps:$4 sm:$0xff]   ;;  %v207_v24 = vrot.slane %v8001_v16, %v7942_v8  ;;  %v6913_v16 = vld [vmem:[#allocation7 + $0x900] ss:$16 sps:$4 sm:$0xff]  }
 0x186   :  { %4041 = vmatpush1.bf16.msra.mxu0 %v6841_v25  ;;  %4082 = vmatpush1.bf16.msra.mxu1 %v6844_v26  ;;  %v6904_v25 = vld [vmem:[#allocation7 + $0xb40] ss:$16 sps:$4 sm:$0xff]   ;;  %v6909_v26 = vld [vmem:[#allocation7 + $0x924] ss:$16 sps:$4 sm:$0xff]  }
 0x187   :  { %4042 = vmatprep.subr.bf16.mxu0 %v6849_v28  ;;  %4083 = vmatprep.subr.bf16.mxu1 %v6852_v30  ;;  %v656_v28 = vadd.f32 %v7992_v4, %v215_v20  ;;  %v6912_v30 = vld [vmem:[#allocation7 + $0xb24] ss:$16 sps:$4 sm:$0xff]  }
 0x188   :  { %v6921_v4 = vld [vmem:[#allocation7 + $0xce4] ss:$16 sps:$4 sm:$0xff]  }
 0x189   :  { %v6960_v20 = vld [vmem:[#allocation7 + $0xe24] ss:$16 sps:$4 sm:$0xff]  }
 0x18a   :  { %4043 = vmatpush1.bf16.msra.mxu0 %v6847_v29  ;;  %4084 = vmatpush1.bf16.msra.mxu1 %v6850_v31  ;;  %v6907_v29 = vld [vmem:[#allocation7 + $0x920] ss:$16 sps:$4 sm:$0xff]   ;;  %v615_v31 = vadd.f32 %v7989_v1, %v207_v24  ;;  %v759_v1 = vmax.f32 %v8021_v48, 0.0  ;;  %v6963_v24 = vld [vmem:[#allocation7 + $0xc04] ss:$16 sps:$4 sm:$0xff]  }
 0x18b   :  { %4044 = vmatprep.subr.bf16.mxu0 %v6855_v32  ;;  %4085 = vmatprep.subr.bf16.mxu1 %v6858_v37  ;;  %v6910_v32 = vld [vmem:[#allocation7 + $0xb20] ss:$16 sps:$4 sm:$0xff]   ;;  %v6918_v37 = vld [vmem:[#allocation7 + $0xb04] ss:$16 sps:$4 sm:$0xff]  }
 0x18c   :  { %v6928_v48 = vld [vmem:[#allocation7 + $0xec0] ss:$16 sps:$4 sm:$0xff]  }
 0x18e   :  { %4045 = vmatpush1.bf16.msra.mxu0 %v6853_v33  ;;  %4086 = vmatpush1.bf16.msra.mxu1 %v6856_v38  ;;  %v6915_v33 = vld [vmem:[#allocation7 + $0x904] ss:$16 sps:$4 sm:$0xff]   ;;  %v754_v38 = vmax.f32 %v656_v28, 0.0  ;;  %v6964_v28 = vld [vmem:[#allocation7 + $0xe00] ss:$16 sps:$4 sm:$0xff]  }
 0x18f   :  { %4046 = vmatprep.subr.bf16.mxu0 %v6861_v43  ;;  %4087 = vmatprep.subr.bf16.mxu1 %v6864_v46  ;;  %v6916_v43 = vld [vmem:[#allocation7 + $0xb00] ss:$16 sps:$4 sm:$0xff]   ;;  %v6924_v46 = vld [vmem:[#allocation7 + $0xee4] ss:$16 sps:$4 sm:$0xff]  }
 0x192   :  { %4047 = vmatpush1.bf16.msra.mxu0 %v6859_v45  ;;  %4088 = vmatpush1.bf16.msra.mxu1 %v6862_v47  ;;  %v752_v45 = vmax.f32 %v615_v31, 0.0  ;;  %v757_v47 = vmax.f32 %v8019_v22, 0.0  ;;  %v6925_v22 = vld [vmem:[#allocation7 + $0xcc0] ss:$16 sps:$4 sm:$0xff]  }
 0x193   :  { %4048 = vmatprep.subr.bf16.mxu0 %v6867_v27  ;;  %4089 = vmatprep.subr.bf16.mxu1 %v6870_v50  ;;  %v6919_v27 = vld [vmem:[#allocation7 + $0xce0] ss:$16 sps:$4 sm:$0xff]   ;;  %v6927_v50 = vld [vmem:[#allocation7 + $0xcc4] ss:$16 sps:$4 sm:$0xff]  }
 0x194   :  { %v6967_v31 = vld [vmem:[#allocation7 + $0xde0] ss:$16 sps:$4 sm:$0xff]  }
 0x196   :  { %4049 = vmatpush1.bf16.msra.mxu0 %v6865_v49  ;;  %4090 = vmatpush1.bf16.msra.mxu1 %v6868_v6  ;;  %v6922_v49 = vld [vmem:[#allocation7 + $0xee0] ss:$16 sps:$4 sm:$0xff]   ;;  %v8057_v6 = vpack.c.bf16 %v754_v38, %v754_v38 }
 0x197   :  { %4050 = vmatprep.subr.bf16.mxu0 %v6873_v7  ;;  %4091 = vmatprep.subr.bf16.mxu1 %v6876_v15  ;;  %v6930_v7 = vld [vmem:[#allocation7 + $0xec4] ss:$16 sps:$4 sm:$0xff]   ;;  %v8061_v15 = vpack.c.bf16 %v757_v47, %v757_v47  ;;  %v6973_v38 = vld [vmem:[#allocation7 + $0xdc0] ss:$16 sps:$4 sm:$0xff]  }
 0x198   :  { %v6987_v47 = vld [vmem:[#allocation7 + $0xd84] ss:$16 sps:$4 sm:$0xff]  }
 0x19a   :  { %4051 = vmatpush2.bf16.msra.mxu0 %v6871_v12  ;;  %4092 = vmatpush2.bf16.msra.mxu1 %v6874_v51  ;;  %v8059_v12 = vpack.c.bf16 %v752_v45, %v752_v45  ;;  %v8063_v51 = vpack.c.bf16 %v759_v1, %v759_v1  ;;  %v6984_v45 = vld [vmem:[#allocation7 + $0xfa4] ss:$16 sps:$4 sm:$0xff]  }
 0x19b   :  { %4052 = vmatprep.subr.bf16.mxu0 %v6879_v52  ;;  %4093 = vmatprep.subr.bf16.mxu1 %v6882_v54  ;;  %v6933_v52 = vld [vmem:[#allocation7 + $0xca4] ss:$16 sps:$4 sm:$0xff]   ;;  %v6931_v54 = vld [vmem:[#allocation7 + $0xca0] ss:$16 sps:$4 sm:$0xff]  }
 0x19c   :  { %v6990_v1 = vld [vmem:[#allocation7 + $0xf84] ss:$16 sps:$4 sm:$0xff]  }
 0x19e   :  { %4053 = vmatpush2.bf16.msra.mxu0 %v6877_v53  ;;  %4094 = vmatpush2.bf16.msra.mxu1 %v6880_v55  ;;  %v6936_v53 = vld [vmem:[#allocation7 + $0xea4] ss:$16 sps:$4 sm:$0xff]   ;;  %v6934_v55 = vld [vmem:[#allocation7 + $0xea0] ss:$16 sps:$4 sm:$0xff]  }
 0x19f   :  { %4054 = vmatprep.subr.bf16.mxu0 %v6885_v56  ;;  %4095 = vmatprep.subr.bf16.mxu1 %v6888_v57  ;;  %v6939_v56 = vld [vmem:[#allocation7 + $0xc84] ss:$16 sps:$4 sm:$0xff]   ;;  %v6937_v57 = vld [vmem:[#allocation7 + $0xc80] ss:$16 sps:$4 sm:$0xff]  }
 0x1a2   :  { %4055 = vmatpush2.bf16.msra.mxu0 %v6883_v44  ;;  %4096 = vmatpush2.bf16.msra.mxu1 %v6886_v41  ;;  %v6942_v44 = vld [vmem:[#allocation7 + $0xe84] ss:$16 sps:$4 sm:$0xff]   ;;  %v6940_v41 = vld [vmem:[#allocation7 + $0xe80] ss:$16 sps:$4 sm:$0xff]  }
 0x1a3   :  { %4056 = vmatprep.subr.bf16.mxu0 %v6891_v58  ;;  %4097 = vmatprep.subr.bf16.mxu1 %v6894_v61  ;;  %v6945_v58 = vld [vmem:[#allocation7 + $0xc64] ss:$16 sps:$4 sm:$0xff]  }
 0x1a4   :  { %v6948_v61 = vld [vmem:[#allocation7 + $0xe64] ss:$16 sps:$4 sm:$0xff]  }
 0x1a6   :  { %4057 = vmatpush2.bf16.msra.mxu0 %v6889_v60  ;;  %4098 = vmatpush2.bf16.msra.mxu1 %v6892_v62  ;;  %v6943_v60 = vld [vmem:[#allocation7 + $0xc60] ss:$16 sps:$4 sm:$0xff]  }
 0x1a7   :  { %4058 = vmatprep.subr.bf16.mxu0 %v6897_v13  ;;  %4099 = vmatprep.subr.bf16.mxu1 %v6900_v14  ;;  %v6946_v62 = vld [vmem:[#allocation7 + $0xe60] ss:$16 sps:$4 sm:$0xff]   ;;  %v6951_v13 = vld [vmem:[#allocation7 + $0xc44] ss:$16 sps:$4 sm:$0xff]  }
 0x1a8   :  { %v6954_v14 = vld [vmem:[#allocation7 + $0xe44] ss:$16 sps:$4 sm:$0xff]  }
 0x1aa   :  { %4059 = vmatpush2.bf16.msra.mxu0 %v6895_v5  ;;  %4100 = vmatpush2.bf16.msra.mxu1 %v6898_v17  ;;  %v6949_v5 = vld [vmem:[#allocation7 + $0xc40] ss:$16 sps:$4 sm:$0xff]  }
 0x1ab   :  { %4060 = vmatprep.subr.bf16.mxu0 %v6903_v19  ;;  %4101 = vmatprep.subr.bf16.mxu1 %v6906_v23  ;;  %v6952_v17 = vld [vmem:[#allocation7 + $0xe40] ss:$16 sps:$4 sm:$0xff]   ;;  %v6957_v19 = vld [vmem:[#allocation7 + $0xc24] ss:$16 sps:$4 sm:$0xff]  }
 0x1ac   :  { %v6958_v23 = vld [vmem:[#allocation7 + $0xe20] ss:$16 sps:$4 sm:$0xff]  }
 0x1ae   :  { %4061 = vmatpush2.bf16.msra.mxu0 %v6901_v21  ;;  %4102 = vmatpush2.bf16.msra.mxu1 %v6904_v25  ;;  %v6955_v21 = vld [vmem:[#allocation7 + $0xc20] ss:$16 sps:$4 sm:$0xff]   ;;  %v6966_v25 = vld [vmem:[#allocation7 + $0xe04] ss:$16 sps:$4 sm:$0xff]  }
 0x1af   :  { %4062 = vmatprep.subr.bf16.mxu0 %v6909_v26  ;;  %4103 = vmatprep.subr.bf16.mxu1 %v6912_v30  ;;  %v6961_v26 = vld [vmem:[#allocation7 + $0xc00] ss:$16 sps:$4 sm:$0xff]   ;;  %v6972_v30 = vld [vmem:[#allocation7 + $0xfe4] ss:$16 sps:$4 sm:$0xff]  }
 0x1b2   :  { %4063 = vmatpush2.bf16.msra.mxu0 %v6907_v29  ;;  %4104 = vmatpush2.bf16.msra.mxu1 %v6910_v32  ;;  %v6969_v29 = vld [vmem:[#allocation7 + $0xde4] ss:$16 sps:$4 sm:$0xff]   ;;  %v6970_v32 = vld [vmem:[#allocation7 + $0xfe0] ss:$16 sps:$4 sm:$0xff]  }
 0x1b3   :  { %4064 = vmatprep.subr.bf16.mxu0 %v6915_v33  ;;  %4105 = vmatprep.subr.bf16.mxu1 %v6918_v37  ;;  %v6975_v33 = vld [vmem:[#allocation7 + $0xdc4] ss:$16 sps:$4 sm:$0xff]  }
 0x1b4   :  { %v6978_v37 = vld [vmem:[#allocation7 + $0xfc4] ss:$16 sps:$4 sm:$0xff]  }
 0x1b6   :  { %4065 = vmatpush2.bf16.msra.mxu0 %v6913_v16  ;;  %4106 = vmatpush2.bf16.msra.mxu1 %v6916_v43  ;;  %v6976_v16 = vld [vmem:[#allocation7 + $0xfc0] ss:$16 sps:$4 sm:$0xff]   ;;  %v6981_v43 = vld [vmem:[#allocation7 + $0xda4] ss:$16 sps:$4 sm:$0xff]  }
 0x1b7   :  { %4116 = vmatprep.subr.bf16.mxu0 %v6921_v4  ;;  %4157 = vmatprep.subr.bf16.mxu1 %v6924_v46  ;;  %v6979_v4 = vld [vmem:[#allocation7 + $0xda0] ss:$16 sps:$4 sm:$0xff]  }
 0x1b8   :  { %v6982_v46 = vld [vmem:[#allocation7 + $0xfa0] ss:$16 sps:$4 sm:$0xff]  }
 0x1b9   :  { %4067 = vmatmul.mubr.bf16.vlgmr.msra.gmra.mxu0 %v8059_v12  ;;  %4108 = vmatmul.mubr.bf16.vlgmr.msra.gmra.mxu1 %v8057_v6 }
 0x1ba   :  { %4117 = vmatpush1.bf16.msra.mxu0 %v6919_v27  ;;  %4158 = vmatpush1.bf16.msra.mxu1 %v6922_v49  ;;  %v6985_v27 = vld [vmem:[#allocation7 + $0xd80] ss:$16 sps:$4 sm:$0xff]  }
 0x1bb   :  { %4118 = vmatprep.subr.bf16.mxu0 %v6927_v50  ;;  %4159 = vmatprep.subr.bf16.mxu1 %v6930_v7  ;;  %v6988_v49 = vld [vmem:[#allocation7 + $0xf80] ss:$16 sps:$4 sm:$0xff]   ;;  %v6993_v50 = vld [vmem:[#allocation7 + $0xd64] ss:$16 sps:$4 sm:$0xff]  }
 0x1bc   :  { %4148 = vmatprep.mubr.bf16.mxu0 %v8061_v15  ;;  %4189 = vmatprep.mubr.bf16.mxu1 %v8063_v51  ;;  %v6996_v7 = vld [vmem:[#allocation7 + $0xf64] ss:$16 sps:$4 sm:$0xff]  }
 0x1be   :  { %4119 = vmatpush1.bf16.msra.mxu0 %v6925_v22  ;;  %4160 = vmatpush1.bf16.msra.mxu1 %v6928_v48  ;;  %v6991_v22 = vld [vmem:[#allocation7 + $0xd60] ss:$16 sps:$4 sm:$0xff]  }
 0x1bf   :  { %4120 = vmatprep.subr.bf16.mxu0 %v6933_v52  ;;  %4161 = vmatprep.subr.bf16.mxu1 %v6936_v53  ;;  %v6994_v48 = vld [vmem:[#allocation7 + $0xf60] ss:$16 sps:$4 sm:$0xff]   ;;  %v6999_v52 = vld [vmem:[#allocation7 + $0xd44] ss:$16 sps:$4 sm:$0xff]  }
 0x1c0   :  { %v7002_v53 = vld [vmem:[#allocation7 + $0xf44] ss:$16 sps:$4 sm:$0xff]  }
 0x1c2   :  { %4121 = vmatpush1.bf16.msra.mxu0 %v6931_v54  ;;  %4162 = vmatpush1.bf16.msra.mxu1 %v6934_v55  ;;  %v6997_v54 = vld [vmem:[#allocation7 + $0xd40] ss:$16 sps:$4 sm:$0xff]  }
 0x1c3   :  { %4122 = vmatprep.subr.bf16.mxu0 %v6939_v56  ;;  %4163 = vmatprep.subr.bf16.mxu1 %v6942_v44  ;;  %v7000_v55 = vld [vmem:[#allocation7 + $0xf40] ss:$16 sps:$4 sm:$0xff]   ;;  %v7005_v56 = vld [vmem:[#allocation7 + $0xd24] ss:$16 sps:$4 sm:$0xff]  }
 0x1c4   :  { %v7008_v44 = vld [vmem:[#allocation7 + $0xf24] ss:$16 sps:$4 sm:$0xff]  }
 0x1c6   :  { %4123 = vmatpush1.bf16.msra.mxu0 %v6937_v57  ;;  %4164 = vmatpush1.bf16.msra.mxu1 %v6940_v41  ;;  %v7003_v57 = vld [vmem:[#allocation7 + $0xd20] ss:$16 sps:$4 sm:$0xff]  }
 0x1c7   :  { %4124 = vmatprep.subr.bf16.mxu0 %v6945_v58  ;;  %4165 = vmatprep.subr.bf16.mxu1 %v6948_v61  ;;  %v7006_v41 = vld [vmem:[#allocation7 + $0xf20] ss:$16 sps:$4 sm:$0xff]   ;;  %v7011_v58 = vld [vmem:[#allocation7 + $0xd04] ss:$16 sps:$4 sm:$0xff]   ;;  %v756_v61 = vmax.f32 %v8015_v34, 0.0 }
 0x1c8   :  { %v7018_v34 = vld [vmem:[#allocation7 + $0x2e8] ss:$16 sps:$4 sm:$0xff]  }
 0x1ca   :  { %4125 = vmatpush1.bf16.msra.mxu0 %v6943_v60  ;;  %4166 = vmatpush1.bf16.msra.mxu1 %v6946_v62  ;;  %v7014_v60 = vld [vmem:[#allocation7 + $0xf04] ss:$16 sps:$4 sm:$0xff]   ;;  %v7009_v62 = vld [vmem:[#allocation7 + $0xd00] ss:$16 sps:$4 sm:$0xff]  }
 0x1cb   :  { %4126 = vmatprep.subr.bf16.mxu0 %v6951_v13  ;;  %4167 = vmatprep.subr.bf16.mxu1 %v6954_v14  ;;  %v7012_v13 = vld [vmem:[#allocation7 + $0xf00] ss:$16 sps:$4 sm:$0xff]  }
 0x1cc   :  { %v1288_v14 = vld [vmem:[#allocation8] sm:$0xf] }
 0x1ce   :  { %4127 = vmatpush1.bf16.msra.mxu0 %v6949_v5  ;;  %4168 = vmatpush1.bf16.msra.mxu1 %v6952_v17  ;;  %v7017_v5 = vld [vmem:[#allocation7 + $0xec] ss:$16 sps:$4 sm:$0xff]   ;;  %v758_v17 = vmax.f32 %v8017_v42, 0.0 }
 0x1cf   :  { %4128 = vmatprep.subr.bf16.mxu0 %v6957_v19  ;;  %4169 = vmatprep.subr.bf16.mxu1 %v6960_v20  ;;  %v7020_v19 = vld [vmem:[#allocation7 + $0x2ec] ss:$16 sps:$4 sm:$0xff]   ;;  %v7015_v20 = vld [vmem:[#allocation7 + $0xe8] ss:$16 sps:$4 sm:$0xff]  }
 0x1d2   :  { %4129 = vmatpush1.bf16.msra.mxu0 %v6955_v21  ;;  %4170 = vmatpush1.bf16.msra.mxu1 %v6958_v23  ;;  %v1293_v21 = vrot.slane %v1288_v14, %v7942_v8  ;;  %v8072_v23 = vpack.c.bf16 %v756_v61, %v756_v61  ;;  %v7054_v61 = vld [vmem:[#allocation7 + $0x228] ss:$16 sps:$4 sm:$0xff]  }
 0x1d3   :  { %4130 = vmatprep.subr.bf16.mxu0 %v6963_v24  ;;  %4171 = vmatprep.subr.bf16.mxu1 %v6966_v25  ;;  %v8074_v24 = vpack.c.bf16 %v758_v17, %v758_v17  ;;  %v1297_v25 = vrot.slane %v1288_v14, %v7948_v10  ;;  %v7060_v14 = vld [vmem:[#allocation7 + $0x208] ss:$16 sps:$4 sm:$0xff]   ;;  %v7065_v17 = vld [vmem:[#allocation7 + $0x1ec] ss:$16 sps:$4 sm:$0xff]  }
 0x1d6   :  { %4131 = vmatpush1.bf16.msra.mxu0 %v6961_v26  ;;  %4172 = vmatpush1.bf16.msra.mxu1 %v6964_v28  ;;  %v7023_v26 = vld [vmem:[#allocation7 + $0xcc] ss:$16 sps:$4 sm:$0xff]  }
 0x1d7   :  { %4132 = vmatprep.subr.bf16.mxu0 %v6969_v29  ;;  %4173 = vmatprep.subr.bf16.mxu1 %v6972_v30  ;;  %v7026_v28 = vld [vmem:[#allocation7 + $0x2cc] ss:$16 sps:$4 sm:$0xff]  }
 0x1da   :  { %4133 = vmatpush2.bf16.msra.mxu0 %v6967_v31  ;;  %4174 = vmatpush2.bf16.msra.mxu1 %v6970_v32  ;;  %v7021_v31 = vld [vmem:[#allocation7 + $0xc8] ss:$16 sps:$4 sm:$0xff]  }
 0x1db   :  { %4134 = vmatprep.subr.bf16.mxu0 %v6975_v33  ;;  %4175 = vmatprep.subr.bf16.mxu1 %v6978_v37  ;;  %v7024_v33 = vld [vmem:[#allocation7 + $0x2c8] ss:$16 sps:$4 sm:$0xff]   ;;  %v7029_v37 = vld [vmem:[#allocation7 + $0xac] ss:$16 sps:$4 sm:$0xff]  }
 0x1de   :  { %4135 = vmatpush2.bf16.msra.mxu0 %v6973_v38  ;;  %4176 = vmatpush2.bf16.msra.mxu1 %v6976_v16 }
 0x1df   :  { %4136 = vmatprep.subr.bf16.mxu0 %v6981_v43  ;;  %4177 = vmatprep.subr.bf16.mxu1 %v6984_v45  ;;  %v7032_v45 = vld [vmem:[#allocation7 + $0x2ac] ss:$16 sps:$4 sm:$0xff]  }
 0x1e2   :  { %4137 = vmatpush2.bf16.msra.mxu0 %v6979_v4  ;;  %4178 = vmatpush2.bf16.msra.mxu1 %v6982_v46 }
 0x1e3   :  { %4138 = vmatprep.subr.bf16.mxu0 %v6987_v47  ;;  %4179 = vmatprep.subr.bf16.mxu1 %v6990_v1  ;;  %v7027_v1 = vld [vmem:[#allocation7 + $0xa8] ss:$16 sps:$4 sm:$0xff]  }
 0x1e6   :  { %4139 = vmatpush2.bf16.msra.mxu0 %v6985_v27  ;;  %4180 = vmatpush2.bf16.msra.mxu1 %v6988_v49  ;;  %v7030_v27 = vld [vmem:[#allocation7 + $0x2a8] ss:$16 sps:$4 sm:$0xff]   ;;  %v7035_v49 = vld [vmem:[#allocation7 + $0x8c] ss:$16 sps:$4 sm:$0xff]  }
 0x1e7   :  { %4140 = vmatprep.subr.bf16.mxu0 %v6993_v50  ;;  %4181 = vmatprep.subr.bf16.mxu1 %v6996_v7  ;;  %v7038_v7 = vld [vmem:[#allocation7 + $0x28c] ss:$16 sps:$4 sm:$0xff]  }
 0x1ea   :  { %4141 = vmatpush2.bf16.msra.mxu0 %v6991_v22  ;;  %4182 = vmatpush2.bf16.msra.mxu1 %v6994_v48  ;;  %v7036_v22 = vld [vmem:[#allocation7 + $0x288] ss:$16 sps:$4 sm:$0xff]   ;;  %v7041_v48 = vld [vmem:[#allocation7 + $0x6c] ss:$16 sps:$4 sm:$0xff]  }
 0x1eb   :  { %4142 = vmatprep.subr.bf16.mxu0 %v6999_v52  ;;  %4183 = vmatprep.subr.bf16.mxu1 %v7002_v53  ;;  %v7044_v52 = vld [vmem:[#allocation7 + $0x26c] ss:$16 sps:$4 sm:$0xff]   ;;  %v7039_v53 = vld [vmem:[#allocation7 + $0x68] ss:$16 sps:$4 sm:$0xff]  }
 0x1ee   :  { %4143 = vmatpush2.bf16.msra.mxu0 %v6997_v54  ;;  %4184 = vmatpush2.bf16.msra.mxu1 %v7000_v55  ;;  %v7042_v54 = vld [vmem:[#allocation7 + $0x268] ss:$16 sps:$4 sm:$0xff]   ;;  %v7047_v55 = vld [vmem:[#allocation7 + $0x4c] ss:$16 sps:$4 sm:$0xff]  }
 0x1ef   :  { %4144 = vmatprep.subr.bf16.mxu0 %v7005_v56  ;;  %4185 = vmatprep.subr.bf16.mxu1 %v7008_v44  ;;  %v7050_v56 = vld [vmem:[#allocation7 + $0x24c] ss:$16 sps:$4 sm:$0xff]   ;;  %v7045_v44 = vld [vmem:[#allocation7 + $0x48] ss:$16 sps:$4 sm:$0xff]  }
 0x1f2   :  { %4145 = vmatpush2.bf16.msra.mxu0 %v7003_v57  ;;  %4186 = vmatpush2.bf16.msra.mxu1 %v7006_v41  ;;  %v7048_v57 = vld [vmem:[#allocation7 + $0x248] ss:$16 sps:$4 sm:$0xff]   ;;  %v7053_v41 = vld [vmem:[#allocation7 + $0x2c] ss:$16 sps:$4 sm:$0xff]  }
 0x1f3   :  { %4146 = vmatprep.subr.bf16.mxu0 %v7011_v58  ;;  %4187 = vmatprep.subr.bf16.mxu1 %v7014_v60  ;;  %v7056_v58 = vld [vmem:[#allocation7 + $0x22c] ss:$16 sps:$4 sm:$0xff]   ;;  %v7051_v60 = vld [vmem:[#allocation7 + $0x28] ss:$16 sps:$4 sm:$0xff]  }
 0x1f6   :  { %4147 = vmatpush2.bf16.msra.mxu0 %v7009_v62  ;;  %4188 = vmatpush2.bf16.msra.mxu1 %v7012_v13  ;;  %v7059_v62 = vld [vmem:[#allocation7 + $0xc] ss:$16 sps:$4 sm:$0xff]  }
 0x1f7   :  { %4198 = vmatprep.subr.bf16.mxu0 %v7017_v5  ;;  %4239 = vmatprep.subr.bf16.mxu1 %v7020_v19  ;;  %v7062_v13 = vld [vmem:[#allocation7 + $0x20c] ss:$16 sps:$4 sm:$0xff]   ;;  %v7057_v5 = vld [vmem:[#allocation7 + $0x8] ss:$16 sps:$4 sm:$0xff]  }
 0x1f8   :  { %v7068_v19 = vld [vmem:[#allocation7 + $0x3ec] ss:$16 sps:$4 sm:$0xff]  }
 0x1f9   :  { %4149 = vmatmul.mubr.bf16.vlgmr.msra.gmra.mxu0 %v8072_v23  ;;  %v3904_v42 = vpop.f32.mrf.mxu0  ;;  %4190 = vmatmul.mubr.bf16.vlgmr.msra.gmra.mxu1 %v8074_v24  ;;  %v3945_v30 = vpop.f32.mrf.mxu1 }
 0x1fa   :  { %v3905_v29 = vadd.f32 %v3904_v42, %v1293_v21  ;;  %4199 = vmatpush1.bf16.msra.mxu0 %v7015_v20  ;;  %4230 = vmatprep.mubr.bf16.mxu0 %v7965_v36  ;;  %v7063_v20 = vld [vmem:[#allocation7 + $0x1e8] ss:$16 sps:$4 sm:$0xff]  }
 0x1fb   :  { %4240 = vmatpush1.bf16.msra.mxu1 %v7018_v34  ;;  %v3906_v32 = vpop.f32.mrf.mxu0  ;;  %4271 = vmatprep.mubr.bf16.mxu1 %v7972_v40  ;;  %v3947_v43 = vpop.f32.mrf.mxu1  ;;  %v7033_v40 = vld [vmem:[#allocation7 + $0x88] ss:$16 sps:$4 sm:$0xff]   ;;  %v7071_v34 = vld [vmem:[#allocation7 + $0x1cc] ss:$16 sps:$4 sm:$0xff]  }
 0x1fc   :  { %v8080_v38 = vadd.f32 %v3945_v30, %v3905_v29  ;;  %v3907_v16 = vadd.f32 %v3906_v32, %v1297_v25  ;;  %4200 = vmatprep.subr.bf16.mxu0 %v7023_v26  ;;  %4241 = vmatprep.subr.bf16.mxu1 %v7026_v28  ;;  %v7066_v21 = vld [vmem:[#allocation7 + $0x3e8] ss:$16 sps:$4 sm:$0xff]   ;;  %v7074_v25 = vld [vmem:[#allocation7 + $0x3cc] ss:$16 sps:$4 sm:$0xff]  }
 0x1fd   :  { %v3908_v4 = vpop.f32.mrf.mxu0  ;;  %v3949_v47 = vpop.f32.mrf.mxu1  ;;  %v7069_v26 = vld [vmem:[#allocation7 + $0x1c8] ss:$16 sps:$4 sm:$0xff]   ;;  %v7077_v28 = vld [vmem:[#allocation7 + $0x1ac] ss:$16 sps:$4 sm:$0xff]  }
 0x1fe   :  { %v8083_v46 = vadd.f32 %v3947_v43, %v3907_v16  ;;  %4201 = vmatpush1.bf16.msra.mxu0 %v7021_v31  ;;  %v7072_v42 = vld [vmem:[#allocation7 + $0x3c8] ss:$16 sps:$4 sm:$0xff]   ;;  %v7080_v29 = vld [vmem:[#allocation7 + $0x3ac] ss:$16 sps:$4 sm:$0xff]  }
 0x1ff   :  { %4242 = vmatpush1.bf16.msra.mxu1 %v7024_v33  ;;  %v3909_v36 = vpop.f32.mrf.mxu0  ;;  %4202 = vmatprep.subr.bf16.mxu0 %v7029_v37  ;;  %v3950_v50 = vpop.f32.mrf.mxu1  ;;  %v7075_v30 = vld [vmem:[#allocation7 + $0x1a8] ss:$16 sps:$4 sm:$0xff]   ;;  %v7083_v32 = vld [vmem:[#allocation7 + $0x18c] ss:$16 sps:$4 sm:$0xff]  }
 0x200   :  { %4243 = vmatprep.subr.bf16.mxu1 %v7032_v45  ;;  %v7078_v31 = vld [vmem:[#allocation7 + $0x3a8] ss:$16 sps:$4 sm:$0xff]   ;;  %v7086_v33 = vld [vmem:[#allocation7 + $0x38c] ss:$16 sps:$4 sm:$0xff]  }
 0x201   :  { %v7081_v37 = vld [vmem:[#allocation7 + $0x188] ss:$16 sps:$4 sm:$0xff]   ;;  %v7089_v43 = vld [vmem:[#allocation7 + $0x16c] ss:$16 sps:$4 sm:$0xff]  }
 0x202   :  { %4203 = vmatpush1.bf16.msra.mxu0 %v7027_v1  ;;  %v7084_v16 = vld [vmem:[#allocation7 + $0x388] ss:$16 sps:$4 sm:$0xff]   ;;  %v7092_v45 = vld [vmem:[#allocation7 + $0x36c] ss:$16 sps:$4 sm:$0xff]  }
 0x203   :  { %4244 = vmatpush1.bf16.msra.mxu1 %v7030_v27  ;;  %4204 = vmatprep.subr.bf16.mxu0 %v7035_v49  ;;  %v7087_v4 = vld [vmem:[#allocation7 + $0x168] ss:$16 sps:$4 sm:$0xff]   ;;  %v7095_v1 = vld [vmem:[#allocation7 + $0x14c] ss:$16 sps:$4 sm:$0xff]  }
 0x204   :  { %4245 = vmatprep.subr.bf16.mxu1 %v7038_v7  ;;  %v7090_v47 = vld [vmem:[#allocation7 + $0x368] ss:$16 sps:$4 sm:$0xff]   ;;  %v7098_v36 = vld [vmem:[#allocation7 + $0x34c] ss:$16 sps:$4 sm:$0xff]  }
 0x205   :  { %v7093_v27 = vld [vmem:[#allocation7 + $0x148] ss:$16 sps:$4 sm:$0xff]   ;;  %v7101_v50 = vld [vmem:[#allocation7 + $0x12c] ss:$16 sps:$4 sm:$0xff]  }
 0x206   :  { %4205 = vmatpush1.bf16.msra.mxu0 %v7033_v40  ;;  %v7096_v49 = vld [vmem:[#allocation7 + $0x348] ss:$16 sps:$4 sm:$0xff]   ;;  %v7104_v7 = vld [vmem:[#allocation7 + $0x32c] ss:$16 sps:$4 sm:$0xff]  }
 0x207   :  { %4246 = vmatpush1.bf16.msra.mxu1 %v7036_v22  ;;  %4206 = vmatprep.subr.bf16.mxu0 %v7041_v48  ;;  %v7099_v40 = vld [vmem:[#allocation7 + $0x128] ss:$16 sps:$4 sm:$0xff]   ;;  %v7107_v48 = vld [vmem:[#allocation7 + $0x10c] ss:$16 sps:$4 sm:$0xff]  }
 0x208   :  { %4247 = vmatprep.subr.bf16.mxu1 %v7044_v52  ;;  %v7102_v22 = vld [vmem:[#allocation7 + $0x328] ss:$16 sps:$4 sm:$0xff]   ;;  %v7110_v52 = vld [vmem:[#allocation7 + $0x30c] ss:$16 sps:$4 sm:$0xff]  }
 0x20a   :  { %4207 = vmatpush1.bf16.msra.mxu0 %v7039_v53  ;;  %v7105_v53 = vld [vmem:[#allocation7 + $0x108] ss:$16 sps:$4 sm:$0xff]  }
 0x20b   :  { %4248 = vmatpush1.bf16.msra.mxu1 %v7042_v54  ;;  %4208 = vmatprep.subr.bf16.mxu0 %v7047_v55  ;;  %v7108_v54 = vld [vmem:[#allocation7 + $0x308] ss:$16 sps:$4 sm:$0xff]   ;;  %v7113_v55 = vld [vmem:[#allocation7 + $0x4ec] ss:$16 sps:$4 sm:$0xff]  }
 0x20c   :  { %4249 = vmatprep.subr.bf16.mxu1 %v7050_v56  ;;  %v7116_v56 = vld [vmem:[#allocation7 + $0x6ec] ss:$16 sps:$4 sm:$0xff]  }
 0x20e   :  { %4209 = vmatpush1.bf16.msra.mxu0 %v7045_v44  ;;  %v7111_v44 = vld [vmem:[#allocation7 + $0x4e8] ss:$16 sps:$4 sm:$0xff]  }
 0x20f   :  { %4250 = vmatpush1.bf16.msra.mxu1 %v7048_v57  ;;  %4210 = vmatprep.subr.bf16.mxu0 %v7053_v41  ;;  %v7114_v57 = vld [vmem:[#allocation7 + $0x6e8] ss:$16 sps:$4 sm:$0xff]   ;;  %v7119_v41 = vld [vmem:[#allocation7 + $0x4cc] ss:$16 sps:$4 sm:$0xff]  }
 0x210   :  { %4251 = vmatprep.subr.bf16.mxu1 %v7056_v58 }
 0x212   :  { %4211 = vmatpush1.bf16.msra.mxu0 %v7051_v60  ;;  %v7122_v60 = vld [vmem:[#allocation7 + $0x6cc] ss:$16 sps:$4 sm:$0xff]  }
 0x213   :  { %4252 = vmatpush1.bf16.msra.mxu1 %v7054_v61  ;;  %4212 = vmatprep.subr.bf16.mxu0 %v7059_v62 }
 0x214   :  { %4253 = vmatprep.subr.bf16.mxu1 %v7062_v13  ;;  %v7117_v13 = vld [vmem:[#allocation7 + $0x4c8] ss:$16 sps:$4 sm:$0xff]  }
 0x216   :  { %4213 = vmatpush1.bf16.msra.mxu0 %v7057_v5 }
 0x217   :  { %4254 = vmatpush1.bf16.msra.mxu1 %v7060_v14  ;;  %4214 = vmatprep.subr.bf16.mxu0 %v7065_v17  ;;  %v7120_v14 = vld [vmem:[#allocation7 + $0x6c8] ss:$16 sps:$4 sm:$0xff]   ;;  %v7125_v17 = vld [vmem:[#allocation7 + $0x4ac] ss:$16 sps:$4 sm:$0xff]  }
 0x218   :  { %4255 = vmatprep.subr.bf16.mxu1 %v7068_v19 }
 0x21a   :  { %4215 = vmatpush2.bf16.msra.mxu0 %v7063_v20 }
 0x21b   :  { %4256 = vmatpush2.bf16.msra.mxu1 %v7066_v21  ;;  %4216 = vmatprep.subr.bf16.mxu0 %v7071_v34 }
 0x21c   :  { %4257 = vmatprep.subr.bf16.mxu1 %v7074_v25 }
 0x21e   :  { %4217 = vmatpush2.bf16.msra.mxu0 %v7069_v26  ;;  %v7126_v26 = vld [vmem:[#allocation7 + $0x6a8] ss:$16 sps:$4 sm:$0xff]  }
 0x21f   :  { %4258 = vmatpush2.bf16.msra.mxu1 %v7072_v42  ;;  %4218 = vmatprep.subr.bf16.mxu0 %v7077_v28  ;;  %v7131_v42 = vld [vmem:[#allocation7 + $0x48c] ss:$16 sps:$4 sm:$0xff]  }
 0x220   :  { %4259 = vmatprep.subr.bf16.mxu1 %v7080_v29  ;;  %v7132_v29 = vld [vmem:[#allocation7 + $0x688] ss:$16 sps:$4 sm:$0xff]  }
 0x222   :  { %4219 = vmatpush2.bf16.msra.mxu0 %v7075_v30  ;;  %v7137_v30 = vld [vmem:[#allocation7 + $0x46c] ss:$16 sps:$4 sm:$0xff]  }
 0x223   :  { %4260 = vmatpush2.bf16.msra.mxu1 %v7078_v31  ;;  %4220 = vmatprep.subr.bf16.mxu0 %v7083_v32  ;;  %v7140_v31 = vld [vmem:[#allocation7 + $0x66c] ss:$16 sps:$4 sm:$0xff]   ;;  %v7135_v32 = vld [vmem:[#allocation7 + $0x468] ss:$16 sps:$4 sm:$0xff]  }
 0x224   :  { %4261 = vmatprep.subr.bf16.mxu1 %v7086_v33  ;;  %v7138_v33 = vld [vmem:[#allocation7 + $0x668] ss:$16 sps:$4 sm:$0xff]  }
 0x226   :  { %4221 = vmatpush2.bf16.msra.mxu0 %v7081_v37  ;;  %v7143_v37 = vld [vmem:[#allocation7 + $0x44c] ss:$16 sps:$4 sm:$0xff]  }
 0x227   :  { %4262 = vmatpush2.bf16.msra.mxu1 %v7084_v16  ;;  %4222 = vmatprep.subr.bf16.mxu0 %v7089_v43  ;;  %v7146_v16 = vld [vmem:[#allocation7 + $0x64c] ss:$16 sps:$4 sm:$0xff]   ;;  %v7141_v43 = vld [vmem:[#allocation7 + $0x448] ss:$16 sps:$4 sm:$0xff]  }
 0x228   :  { %4263 = vmatprep.subr.bf16.mxu1 %v7092_v45  ;;  %v7144_v45 = vld [vmem:[#allocation7 + $0x648] ss:$16 sps:$4 sm:$0xff]  }
 0x22a   :  { %4223 = vmatpush2.bf16.msra.mxu0 %v7087_v4  ;;  %v7149_v4 = vld [vmem:[#allocation7 + $0x42c] ss:$16 sps:$4 sm:$0xff]  }
 0x22b   :  { %4264 = vmatpush2.bf16.msra.mxu1 %v7090_v47  ;;  %4224 = vmatprep.subr.bf16.mxu0 %v7095_v1  ;;  %v7152_v47 = vld [vmem:[#allocation7 + $0x62c] ss:$16 sps:$4 sm:$0xff]   ;;  %v7147_v1 = vld [vmem:[#allocation7 + $0x428] ss:$16 sps:$4 sm:$0xff]  }
 0x22c   :  { %4265 = vmatprep.subr.bf16.mxu1 %v7098_v36  ;;  %v7150_v36 = vld [vmem:[#allocation7 + $0x628] ss:$16 sps:$4 sm:$0xff]  }
 0x22e   :  { %4225 = vmatpush2.bf16.msra.mxu0 %v7093_v27  ;;  %v7155_v27 = vld [vmem:[#allocation7 + $0x40c] ss:$16 sps:$4 sm:$0xff]  }
 0x22f   :  { %4266 = vmatpush2.bf16.msra.mxu1 %v7096_v49  ;;  %4226 = vmatprep.subr.bf16.mxu0 %v7101_v50  ;;  %v7158_v49 = vld [vmem:[#allocation7 + $0x60c] ss:$16 sps:$4 sm:$0xff]   ;;  %v7153_v50 = vld [vmem:[#allocation7 + $0x408] ss:$16 sps:$4 sm:$0xff]  }
 0x230   :  { %4267 = vmatprep.subr.bf16.mxu1 %v7104_v7  ;;  %v7156_v7 = vld [vmem:[#allocation7 + $0x608] ss:$16 sps:$4 sm:$0xff]  }
 0x232   :  { %4227 = vmatpush2.bf16.msra.mxu0 %v7099_v40  ;;  %v7161_v40 = vld [vmem:[#allocation7 + $0x5ec] ss:$16 sps:$4 sm:$0xff]  }
 0x233   :  { %4268 = vmatpush2.bf16.msra.mxu1 %v7102_v22  ;;  %4228 = vmatprep.subr.bf16.mxu0 %v7107_v48  ;;  %v7164_v22 = vld [vmem:[#allocation7 + $0x7ec] ss:$16 sps:$4 sm:$0xff]   ;;  %v7159_v48 = vld [vmem:[#allocation7 + $0x5e8] ss:$16 sps:$4 sm:$0xff]  }
 0x234   :  { %4269 = vmatprep.subr.bf16.mxu1 %v7110_v52  ;;  %v7162_v52 = vld [vmem:[#allocation7 + $0x7e8] ss:$16 sps:$4 sm:$0xff]  }
 0x236   :  { %4229 = vmatpush2.bf16.msra.mxu0 %v7105_v53  ;;  %v7167_v53 = vld [vmem:[#allocation7 + $0x5cc] ss:$16 sps:$4 sm:$0xff]  }
 0x237   :  { %4270 = vmatpush2.bf16.msra.mxu1 %v7108_v54  ;;  %4280 = vmatprep.subr.bf16.mxu0 %v7113_v55  ;;  %v7170_v54 = vld [vmem:[#allocation7 + $0x7cc] ss:$16 sps:$4 sm:$0xff]   ;;  %v7165_v55 = vld [vmem:[#allocation7 + $0x5c8] ss:$16 sps:$4 sm:$0xff]  }
 0x238   :  { %4321 = vmatprep.subr.bf16.mxu1 %v7116_v56  ;;  %v7168_v56 = vld [vmem:[#allocation7 + $0x7c8] ss:$16 sps:$4 sm:$0xff]  }
 0x239   :  { %v3986_v58 = vpop.f32.mrf.mxu0  ;;  %4231 = vmatmul.mubr.bf16.vlgmr.msra.gmra.mxu0 %v7970_v39  ;;  %v4027_v62 = vpop.f32.mrf.mxu1 }
 0x23a   :  { %v3987_v61 = vadd.f32 %v3986_v58, %v8080_v38  ;;  %4272 = vmatmul.mubr.bf16.vlgmr.msra.gmra.mxu1 %v7963_v35  ;;  %4281 = vmatpush1.bf16.msra.mxu0 %v7111_v44  ;;  %v7128_v38 = vld [vmem:[#allocation7 + $0x6ac] ss:$16 sps:$4 sm:$0xff]   ;;  %v7174_v58 = vld [vmem:[#allocation7 + $0x7a8] ss:$16 sps:$4 sm:$0xff]  }
 0x23b   :  { %4312 = vmatprep.mubr.bf16.mxu0 %v7985_v59  ;;  %4322 = vmatpush1.bf16.msra.mxu1 %v7114_v57  ;;  %v3988_v5 = vpop.f32.mrf.mxu0  ;;  %v4029_v20 = vpop.f32.mrf.mxu1  ;;  %v7123_v59 = vld [vmem:[#allocation7 + $0x4a8] ss:$16 sps:$4 sm:$0xff]   ;;  %v7173_v44 = vld [vmem:[#allocation7 + $0x5ac] ss:$16 sps:$4 sm:$0xff]  }
 0x23c   :  { %v8089_v19 = vadd.f32 %v4027_v62, %v3987_v61  ;;  %4353 = vmatprep.mubr.bf16.mxu1 %v7987_v63  ;;  %v3989_v39 = vadd.f32 %v3988_v5, %v8083_v46  ;;  %4282 = vmatprep.subr.bf16.mxu0 %v7119_v41  ;;  %v7134_v63 = vld [vmem:[#allocation7 + $0x68c] ss:$16 sps:$4 sm:$0xff]   ;;  %v7129_v46 = vld [vmem:[#allocation7 + $0x488] ss:$16 sps:$4 sm:$0xff]  }
 0x23d   :  { %v3990_v21 = vpop.f32.mrf.mxu0  ;;  %4323 = vmatprep.subr.bf16.mxu1 %v7122_v60  ;;  %v4031_v34 = vpop.f32.mrf.mxu1  ;;  %v7176_v57 = vld [vmem:[#allocation7 + $0x7ac] ss:$16 sps:$4 sm:$0xff]   ;;  %v7171_v41 = vld [vmem:[#allocation7 + $0x5a8] ss:$16 sps:$4 sm:$0xff]  }
 0x23e   :  { %v8093_v35 = vadd.f32 %v4029_v20, %v3989_v39  ;;  %4283 = vmatpush1.bf16.msra.mxu0 %v7117_v13  ;;  %v7179_v60 = vld [vmem:[#allocation7 + $0x58c] ss:$16 sps:$4 sm:$0xff]   ;;  %v7177_v62 = vld [vmem:[#allocation7 + $0x588] ss:$16 sps:$4 sm:$0xff]  }
 0x23f   :  { %4324 = vmatpush1.bf16.msra.mxu1 %v7120_v14  ;;  %v3991_v25 = vpop.f32.mrf.mxu0  ;;  %4284 = vmatprep.subr.bf16.mxu0 %v7125_v17  ;;  %v4032_v28 = vpop.f32.mrf.mxu1  ;;  %v7182_v61 = vld [vmem:[#allocation7 + $0x78c] ss:$16 sps:$4 sm:$0xff]   ;;  %v7180_v13 = vld [vmem:[#allocation7 + $0x788] ss:$16 sps:$4 sm:$0xff]  }
 0x240   :  { %4325 = vmatprep.subr.bf16.mxu1 %v7128_v38  ;;  %v7185_v5 = vld [vmem:[#allocation7 + $0x56c] ss:$16 sps:$4 sm:$0xff]   ;;  %v7183_v17 = vld [vmem:[#allocation7 + $0x568] ss:$16 sps:$4 sm:$0xff]  }
 0x241   :  { %v7188_v14 = vld [vmem:[#allocation7 + $0x76c] ss:$16 sps:$4 sm:$0xff]   ;;  %v7186_v39 = vld [vmem:[#allocation7 + $0x768] ss:$16 sps:$4 sm:$0xff]  }
 0x242   :  { %4285 = vmatpush1.bf16.msra.mxu0 %v7123_v59  ;;  %v7191_v20 = vld [vmem:[#allocation7 + $0x54c] ss:$16 sps:$4 sm:$0xff]   ;;  %v7189_v21 = vld [vmem:[#allocation7 + $0x548] ss:$16 sps:$4 sm:$0xff]  }
 0x243   :  { %4326 = vmatpush1.bf16.msra.mxu1 %v7126_v26  ;;  %4286 = vmatprep.subr.bf16.mxu0 %v7131_v42  ;;  %v7194_v38 = vld [vmem:[#allocation7 + $0x74c] ss:$16 sps:$4 sm:$0xff]   ;;  %v7192_v34 = vld [vmem:[#allocation7 + $0x748] ss:$16 sps:$4 sm:$0xff]  }
 0x244   :  { %4327 = vmatprep.subr.bf16.mxu1 %v7134_v63  ;;  %v7197_v59 = vld [vmem:[#allocation7 + $0x52c] ss:$16 sps:$4 sm:$0xff]   ;;  %v7195_v26 = vld [vmem:[#allocation7 + $0x528] ss:$16 sps:$4 sm:$0xff]  }
 0x245   :  { %v7200_v25 = vld [vmem:[#allocation7 + $0x72c] ss:$16 sps:$4 sm:$0xff]   ;;  %v7198_v42 = vld [vmem:[#allocation7 + $0x728] ss:$16 sps:$4 sm:$0xff]  }
 0x246   :  { %4287 = vmatpush1.bf16.msra.mxu0 %v7129_v46  ;;  %v7203_v28 = vld [vmem:[#allocation7 + $0x50c] ss:$16 sps:$4 sm:$0xff]   ;;  %v7201_v46 = vld [vmem:[#allocation7 + $0x508] ss:$16 sps:$4 sm:$0xff]  }
 0x247   :  { %4328 = vmatpush1.bf16.msra.mxu1 %v7132_v29  ;;  %4288 = vmatprep.subr.bf16.mxu0 %v7137_v30  ;;  %v7206_v63 = vld [vmem:[#allocation7 + $0x70c] ss:$16 sps:$4 sm:$0xff]   ;;  %v7204_v29 = vld [vmem:[#allocation7 + $0x708] ss:$16 sps:$4 sm:$0xff]  }
 0x248   :  { %4329 = vmatprep.subr.bf16.mxu1 %v7140_v31  ;;  %v7209_v30 = vld [vmem:[#allocation7 + $0x8ec] ss:$16 sps:$4 sm:$0xff]  }
 0x249   :  { %v7212_v31 = vld [vmem:[#allocation7 + $0xaec] ss:$16 sps:$4 sm:$0xff]  }
 0x24a   :  { %4289 = vmatpush1.bf16.msra.mxu0 %v7135_v32  ;;  %v7207_v32 = vld [vmem:[#allocation7 + $0x8e8] ss:$16 sps:$4 sm:$0xff]  }
 0x24b   :  { %4330 = vmatpush1.bf16.msra.mxu1 %v7138_v33  ;;  %4290 = vmatprep.subr.bf16.mxu0 %v7143_v37  ;;  %v7210_v33 = vld [vmem:[#allocation7 + $0xae8] ss:$16 sps:$4 sm:$0xff]   ;;  %v7215_v37 = vld [vmem:[#allocation7 + $0x8cc] ss:$16 sps:$4 sm:$0xff]  }
 0x24c   :  { %4331 = vmatprep.subr.bf16.mxu1 %v7146_v16 }
 0x24e   :  { %4291 = vmatpush1.bf16.msra.mxu0 %v7141_v43  ;;  %v7218_v43 = vld [vmem:[#allocation7 + $0xacc] ss:$16 sps:$4 sm:$0xff]  }
 0x24f   :  { %4332 = vmatpush1.bf16.msra.mxu1 %v7144_v45  ;;  %4292 = vmatprep.subr.bf16.mxu0 %v7149_v4 }
 0x250   :  { %4333 = vmatprep.subr.bf16.mxu1 %v7152_v47  ;;  %v7213_v47 = vld [vmem:[#allocation7 + $0x8c8] ss:$16 sps:$4 sm:$0xff]  }
 0x252   :  { %4293 = vmatpush1.bf16.msra.mxu0 %v7147_v1 }
 0x253   :  { %4334 = vmatpush1.bf16.msra.mxu1 %v7150_v36  ;;  %4294 = vmatprep.subr.bf16.mxu0 %v7155_v27  ;;  %v7216_v36 = vld [vmem:[#allocation7 + $0xac8] ss:$16 sps:$4 sm:$0xff]   ;;  %v7221_v27 = vld [vmem:[#allocation7 + $0x8ac] ss:$16 sps:$4 sm:$0xff]  }
 0x254   :  { %4335 = vmatprep.subr.bf16.mxu1 %v7158_v49 }
 0x256   :  { %4295 = vmatpush1.bf16.msra.mxu0 %v7153_v50 }
 0x257   :  { %4336 = vmatpush1.bf16.msra.mxu1 %v7156_v7  ;;  %4296 = vmatprep.subr.bf16.mxu0 %v7161_v40 }
 0x258   :  { %4337 = vmatprep.subr.bf16.mxu1 %v7164_v22 }
 0x25a   :  { %4297 = vmatpush2.bf16.msra.mxu0 %v7159_v48  ;;  %v7222_v48 = vld [vmem:[#allocation7 + $0xaa8] ss:$16 sps:$4 sm:$0xff]  }
 0x25b   :  { %4338 = vmatpush2.bf16.msra.mxu1 %v7162_v52  ;;  %4298 = vmatprep.subr.bf16.mxu0 %v7167_v53  ;;  %v7227_v52 = vld [vmem:[#allocation7 + $0x88c] ss:$16 sps:$4 sm:$0xff]  }
 0x25c   :  { %4339 = vmatprep.subr.bf16.mxu1 %v7170_v54  ;;  %v7228_v54 = vld [vmem:[#allocation7 + $0xa88] ss:$16 sps:$4 sm:$0xff]  }
 0x25e   :  { %4299 = vmatpush2.bf16.msra.mxu0 %v7165_v55  ;;  %v7233_v55 = vld [vmem:[#allocation7 + $0x86c] ss:$16 sps:$4 sm:$0xff]  }
 0x25f   :  { %4340 = vmatpush2.bf16.msra.mxu1 %v7168_v56  ;;  %4300 = vmatprep.subr.bf16.mxu0 %v7173_v44  ;;  %v7236_v56 = vld [vmem:[#allocation7 + $0xa6c] ss:$16 sps:$4 sm:$0xff]   ;;  %v7231_v44 = vld [vmem:[#allocation7 + $0x868] ss:$16 sps:$4 sm:$0xff]  }
 0x260   :  { %4341 = vmatprep.subr.bf16.mxu1 %v7176_v57  ;;  %v7234_v57 = vld [vmem:[#allocation7 + $0xa68] ss:$16 sps:$4 sm:$0xff]  }
 0x262   :  { %4301 = vmatpush2.bf16.msra.mxu0 %v7171_v41  ;;  %v7239_v41 = vld [vmem:[#allocation7 + $0x84c] ss:$16 sps:$4 sm:$0xff]  }
 0x263   :  { %4342 = vmatpush2.bf16.msra.mxu1 %v7174_v58  ;;  %4302 = vmatprep.subr.bf16.mxu0 %v7179_v60  ;;  %v7242_v58 = vld [vmem:[#allocation7 + $0xa4c] ss:$16 sps:$4 sm:$0xff]   ;;  %v7237_v60 = vld [vmem:[#allocation7 + $0x848] ss:$16 sps:$4 sm:$0xff]  }
 0x264   :  { %4343 = vmatprep.subr.bf16.mxu1 %v7182_v61  ;;  %v7240_v61 = vld [vmem:[#allocation7 + $0xa48] ss:$16 sps:$4 sm:$0xff]  }
 0x266   :  { %4303 = vmatpush2.bf16.msra.mxu0 %v7177_v62  ;;  %v7245_v62 = vld [vmem:[#allocation7 + $0x82c] ss:$16 sps:$4 sm:$0xff]  }
 0x267   :  { %4344 = vmatpush2.bf16.msra.mxu1 %v7180_v13  ;;  %4304 = vmatprep.subr.bf16.mxu0 %v7185_v5  ;;  %v7248_v13 = vld [vmem:[#allocation7 + $0xa2c] ss:$16 sps:$4 sm:$0xff]   ;;  %v7243_v5 = vld [vmem:[#allocation7 + $0x828] ss:$16 sps:$4 sm:$0xff]  }
 0x268   :  { %4345 = vmatprep.subr.bf16.mxu1 %v7188_v14  ;;  %v7246_v14 = vld [vmem:[#allocation7 + $0xa28] ss:$16 sps:$4 sm:$0xff]  }
 0x26a   :  { %4305 = vmatpush2.bf16.msra.mxu0 %v7183_v17  ;;  %v7251_v17 = vld [vmem:[#allocation7 + $0x80c] ss:$16 sps:$4 sm:$0xff]  }
 0x26b   :  { %4346 = vmatpush2.bf16.msra.mxu1 %v7186_v39  ;;  %4306 = vmatprep.subr.bf16.mxu0 %v7191_v20  ;;  %v7254_v39 = vld [vmem:[#allocation7 + $0xa0c] ss:$16 sps:$4 sm:$0xff]   ;;  %v7249_v20 = vld [vmem:[#allocation7 + $0x808] ss:$16 sps:$4 sm:$0xff]  }
 0x26c   :  { %4347 = vmatprep.subr.bf16.mxu1 %v7194_v38  ;;  %v7252_v38 = vld [vmem:[#allocation7 + $0xa08] ss:$16 sps:$4 sm:$0xff]  }
 0x26e   :  { %4307 = vmatpush2.bf16.msra.mxu0 %v7189_v21  ;;  %v7257_v21 = vld [vmem:[#allocation7 + $0x9ec] ss:$16 sps:$4 sm:$0xff]  }
 0x26f   :  { %4348 = vmatpush2.bf16.msra.mxu1 %v7192_v34  ;;  %4308 = vmatprep.subr.bf16.mxu0 %v7197_v59  ;;  %v7260_v34 = vld [vmem:[#allocation7 + $0xbec] ss:$16 sps:$4 sm:$0xff]   ;;  %v7255_v59 = vld [vmem:[#allocation7 + $0x9e8] ss:$16 sps:$4 sm:$0xff]  }
 0x270   :  { %4349 = vmatprep.subr.bf16.mxu1 %v7200_v25  ;;  %v7258_v25 = vld [vmem:[#allocation7 + $0xbe8] ss:$16 sps:$4 sm:$0xff]  }
 0x272   :  { %4309 = vmatpush2.bf16.msra.mxu0 %v7195_v26  ;;  %v7263_v26 = vld [vmem:[#allocation7 + $0x9cc] ss:$16 sps:$4 sm:$0xff]  }
 0x273   :  { %4350 = vmatpush2.bf16.msra.mxu1 %v7198_v42  ;;  %4310 = vmatprep.subr.bf16.mxu0 %v7203_v28  ;;  %v7266_v42 = vld [vmem:[#allocation7 + $0xbcc] ss:$16 sps:$4 sm:$0xff]   ;;  %v7261_v28 = vld [vmem:[#allocation7 + $0x9c8] ss:$16 sps:$4 sm:$0xff]  }
 0x274   :  { %4351 = vmatprep.subr.bf16.mxu1 %v7206_v63  ;;  %v7264_v63 = vld [vmem:[#allocation7 + $0xbc8] ss:$16 sps:$4 sm:$0xff]  }
 0x276   :  { %4311 = vmatpush2.bf16.msra.mxu0 %v7201_v46  ;;  %v7269_v46 = vld [vmem:[#allocation7 + $0x9ac] ss:$16 sps:$4 sm:$0xff]  }
 0x277   :  { %4352 = vmatpush2.bf16.msra.mxu1 %v7204_v29  ;;  %4362 = vmatprep.subr.bf16.mxu0 %v7209_v30  ;;  %v7272_v29 = vld [vmem:[#allocation7 + $0xbac] ss:$16 sps:$4 sm:$0xff]   ;;  %v7267_v30 = vld [vmem:[#allocation7 + $0x9a8] ss:$16 sps:$4 sm:$0xff]  }
 0x278   :  { %4403 = vmatprep.subr.bf16.mxu1 %v7212_v31  ;;  %v7270_v31 = vld [vmem:[#allocation7 + $0xba8] ss:$16 sps:$4 sm:$0xff]  }
 0x279   :  { %v4068_v16 = vpop.f32.mrf.mxu0  ;;  %4313 = vmatmul.mubr.bf16.vlgmr.msra.gmra.mxu0 %v8039_v11  ;;  %v4109_v4 = vpop.f32.mrf.mxu1 }
 0x27a   :  { %v4069_v45 = vadd.f32 %v4068_v16, %v8089_v19  ;;  %4354 = vmatmul.mubr.bf16.vlgmr.msra.gmra.mxu1 %v8037_v2  ;;  %4363 = vmatpush1.bf16.msra.mxu0 %v7207_v32  ;;  %v7224_v19 = vld [vmem:[#allocation7 + $0xaac] ss:$16 sps:$4 sm:$0xff]   ;;  %v7276_v16 = vld [vmem:[#allocation7 + $0xb88] ss:$16 sps:$4 sm:$0xff]  }
 0x27b   :  { %4394 = vmatprep.mubr.bf16.mxu0 %v8041_v3  ;;  %4404 = vmatpush1.bf16.msra.mxu1 %v7210_v33  ;;  %v4070_v1 = vpop.f32.mrf.mxu0  ;;  %v4111_v50 = vpop.f32.mrf.mxu1  ;;  %v7219_v3 = vld [vmem:[#allocation7 + $0x8a8] ss:$16 sps:$4 sm:$0xff]   ;;  %v7275_v32 = vld [vmem:[#allocation7 + $0x98c] ss:$16 sps:$4 sm:$0xff]  }
 0x27c   :  { %v8099_v49 = vadd.f32 %v4109_v4, %v4069_v45  ;;  %4435 = vmatprep.mubr.bf16.mxu1 %v8044_v18  ;;  %v4071_v11 = vadd.f32 %v4070_v1, %v8093_v35  ;;  %4364 = vmatprep.subr.bf16.mxu0 %v7215_v37  ;;  %v7230_v18 = vld [vmem:[#allocation7 + $0xa8c] ss:$16 sps:$4 sm:$0xff]   ;;  %v7225_v35 = vld [vmem:[#allocation7 + $0x888] ss:$16 sps:$4 sm:$0xff]  }
 0x27d   :  { %v4072_v7 = vpop.f32.mrf.mxu0  ;;  %4405 = vmatprep.subr.bf16.mxu1 %v7218_v43  ;;  %v4113_v40 = vpop.f32.mrf.mxu1  ;;  %v7278_v33 = vld [vmem:[#allocation7 + $0xb8c] ss:$16 sps:$4 sm:$0xff]   ;;  %v7273_v37 = vld [vmem:[#allocation7 + $0x988] ss:$16 sps:$4 sm:$0xff]  }
 0x27e   :  { %v8103_v2 = vadd.f32 %v4111_v50, %v4071_v11  ;;  %4365 = vmatpush1.bf16.msra.mxu0 %v7213_v47  ;;  %v7281_v43 = vld [vmem:[#allocation7 + $0x96c] ss:$16 sps:$4 sm:$0xff]   ;;  %v7279_v4 = vld [vmem:[#allocation7 + $0x968] ss:$16 sps:$4 sm:$0xff]  }
 0x27f   :  { %4406 = vmatpush1.bf16.msra.mxu1 %v7216_v36  ;;  %v4073_v22 = vpop.f32.mrf.mxu0  ;;  %4366 = vmatprep.subr.bf16.mxu0 %v7221_v27  ;;  %v4114_v53 = vpop.f32.mrf.mxu1  ;;  %v7284_v45 = vld [vmem:[#allocation7 + $0xb6c] ss:$16 sps:$4 sm:$0xff]   ;;  %v7282_v47 = vld [vmem:[#allocation7 + $0xb68] ss:$16 sps:$4 sm:$0xff]  }
 0x280   :  { %4407 = vmatprep.subr.bf16.mxu1 %v7224_v19  ;;  %v7287_v1 = vld [vmem:[#allocation7 + $0x94c] ss:$16 sps:$4 sm:$0xff]   ;;  %v7285_v27 = vld [vmem:[#allocation7 + $0x948] ss:$16 sps:$4 sm:$0xff]  }
 0x281   :  { %v7290_v36 = vld [vmem:[#allocation7 + $0xb4c] ss:$16 sps:$4 sm:$0xff]   ;;  %v7288_v11 = vld [vmem:[#allocation7 + $0xb48] ss:$16 sps:$4 sm:$0xff]  }
 0x282   :  { %4367 = vmatpush1.bf16.msra.mxu0 %v7219_v3  ;;  %v7293_v50 = vld [vmem:[#allocation7 + $0x92c] ss:$16 sps:$4 sm:$0xff]   ;;  %v7291_v7 = vld [vmem:[#allocation7 + $0x928] ss:$16 sps:$4 sm:$0xff]  }
 0x283   :  { %4408 = vmatpush1.bf16.msra.mxu1 %v7222_v48  ;;  %4368 = vmatprep.subr.bf16.mxu0 %v7227_v52  ;;  %v7296_v19 = vld [vmem:[#allocation7 + $0xb2c] ss:$16 sps:$4 sm:$0xff]   ;;  %v7294_v40 = vld [vmem:[#allocation7 + $0xb28] ss:$16 sps:$4 sm:$0xff]  }
 0x284   :  { %4409 = vmatprep.subr.bf16.mxu1 %v7230_v18  ;;  %v7299_v3 = vld [vmem:[#allocation7 + $0x90c] ss:$16 sps:$4 sm:$0xff]   ;;  %v7297_v48 = vld [vmem:[#allocation7 + $0x908] ss:$16 sps:$4 sm:$0xff]  }
 0x285   :  { %v7302_v22 = vld [vmem:[#allocation7 + $0xb0c] ss:$16 sps:$4 sm:$0xff]   ;;  %v7300_v52 = vld [vmem:[#allocation7 + $0xb08] ss:$16 sps:$4 sm:$0xff]  }
 0x286   :  { %4369 = vmatpush1.bf16.msra.mxu0 %v7225_v35  ;;  %v7305_v53 = vld [vmem:[#allocation7 + $0xcec] ss:$16 sps:$4 sm:$0xff]   ;;  %v7303_v35 = vld [vmem:[#allocation7 + $0xce8] ss:$16 sps:$4 sm:$0xff]  }
 0x287   :  { %4410 = vmatpush1.bf16.msra.mxu1 %v7228_v54  ;;  %4370 = vmatprep.subr.bf16.mxu0 %v7233_v55  ;;  %v7308_v18 = vld [vmem:[#allocation7 + $0xeec] ss:$16 sps:$4 sm:$0xff]   ;;  %v7306_v54 = vld [vmem:[#allocation7 + $0xee8] ss:$16 sps:$4 sm:$0xff]  }
 0x288   :  { %4411 = vmatprep.subr.bf16.mxu1 %v7236_v56  ;;  %v7311_v55 = vld [vmem:[#allocation7 + $0xccc] ss:$16 sps:$4 sm:$0xff]  }
 0x28a   :  { %4371 = vmatpush1.bf16.msra.mxu0 %v7231_v44  ;;  %v7314_v44 = vld [vmem:[#allocation7 + $0xecc] ss:$16 sps:$4 sm:$0xff]  }
 0x28b   :  { %4412 = vmatpush1.bf16.msra.mxu1 %v7234_v57  ;;  %4372 = vmatprep.subr.bf16.mxu0 %v7239_v41 }
 0x28c   :  { %4413 = vmatprep.subr.bf16.mxu1 %v7242_v58  ;;  %v7309_v58 = vld [vmem:[#allocation7 + $0xcc8] ss:$16 sps:$4 sm:$0xff]  }
 0x28e   :  { %4373 = vmatpush1.bf16.msra.mxu0 %v7237_v60 }
 0x28f   :  { %4414 = vmatpush1.bf16.msra.mxu1 %v7240_v61  ;;  %4374 = vmatprep.subr.bf16.mxu0 %v7245_v62  ;;  %v7312_v61 = vld [vmem:[#allocation7 + $0xec8] ss:$16 sps:$4 sm:$0xff]   ;;  %v7317_v62 = vld [vmem:[#allocation7 + $0xcac] ss:$16 sps:$4 sm:$0xff]  }
 0x290   :  { %4415 = vmatprep.subr.bf16.mxu1 %v7248_v13 }
 0x292   :  { %4375 = vmatpush1.bf16.msra.mxu0 %v7243_v5 }
 0x293   :  { %4416 = vmatpush1.bf16.msra.mxu1 %v7246_v14  ;;  %4376 = vmatprep.subr.bf16.mxu0 %v7251_v17  ;;  %v7315_v14 = vld [vmem:[#allocation7 + $0xca8] ss:$16 sps:$4 sm:$0xff]  }
 0x294   :  { %4417 = vmatprep.subr.bf16.mxu1 %v7254_v39  ;;  %v7318_v17 = vld [vmem:[#allocation7 + $0xea8] ss:$16 sps:$4 sm:$0xff]   ;;  %v7323_v39 = vld [vmem:[#allocation7 + $0xc8c] ss:$16 sps:$4 sm:$0xff]  }
 0x296   :  { %4377 = vmatpush1.bf16.msra.mxu0 %v7249_v20 }
 0x297   :  { %4418 = vmatpush1.bf16.msra.mxu1 %v7252_v38  ;;  %4378 = vmatprep.subr.bf16.mxu0 %v7257_v21  ;;  %v7326_v38 = vld [vmem:[#allocation7 + $0xe8c] ss:$16 sps:$4 sm:$0xff]   ;;  %v7321_v21 = vld [vmem:[#allocation7 + $0xc88] ss:$16 sps:$4 sm:$0xff]  }
 0x298   :  { %4419 = vmatprep.subr.bf16.mxu1 %v7260_v34  ;;  %v7329_v34 = vld [vmem:[#allocation7 + $0xc6c] ss:$16 sps:$4 sm:$0xff]  }
 0x29a   :  { %4379 = vmatpush2.bf16.msra.mxu0 %v7255_v59  ;;  %v7332_v59 = vld [vmem:[#allocation7 + $0xe6c] ss:$16 sps:$4 sm:$0xff]  }
 0x29b   :  { %4420 = vmatpush2.bf16.msra.mxu1 %v7258_v25  ;;  %4380 = vmatprep.subr.bf16.mxu0 %v7263_v26  ;;  %v7327_v25 = vld [vmem:[#allocation7 + $0xc68] ss:$16 sps:$4 sm:$0xff]  }
 0x29c   :  { %4421 = vmatprep.subr.bf16.mxu1 %v7266_v42  ;;  %v7330_v26 = vld [vmem:[#allocation7 + $0xe68] ss:$16 sps:$4 sm:$0xff]   ;;  %v7335_v42 = vld [vmem:[#allocation7 + $0xc4c] ss:$16 sps:$4 sm:$0xff]  }
 0x29e   :  { %4381 = vmatpush2.bf16.msra.mxu0 %v7261_v28  ;;  %v7338_v28 = vld [vmem:[#allocation7 + $0xe4c] ss:$16 sps:$4 sm:$0xff]  }
 0x29f   :  { %4422 = vmatpush2.bf16.msra.mxu1 %v7264_v63  ;;  %4382 = vmatprep.subr.bf16.mxu0 %v7269_v46  ;;  %v7333_v63 = vld [vmem:[#allocation7 + $0xc48] ss:$16 sps:$4 sm:$0xff]  }
 0x2a0   :  { %4423 = vmatprep.subr.bf16.mxu1 %v7272_v29  ;;  %v7336_v46 = vld [vmem:[#allocation7 + $0xe48] ss:$16 sps:$4 sm:$0xff]   ;;  %v7341_v29 = vld [vmem:[#allocation7 + $0xc2c] ss:$16 sps:$4 sm:$0xff]  }
 0x2a2   :  { %4383 = vmatpush2.bf16.msra.mxu0 %v7267_v30  ;;  %v7344_v30 = vld [vmem:[#allocation7 + $0xe2c] ss:$16 sps:$4 sm:$0xff]  }
 0x2a3   :  { %4424 = vmatpush2.bf16.msra.mxu1 %v7270_v31  ;;  %4384 = vmatprep.subr.bf16.mxu0 %v7275_v32  ;;  %v7339_v31 = vld [vmem:[#allocation7 + $0xc28] ss:$16 sps:$4 sm:$0xff]  }
 0x2a4   :  { %4425 = vmatprep.subr.bf16.mxu1 %v7278_v33  ;;  %v7342_v32 = vld [vmem:[#allocation7 + $0xe28] ss:$16 sps:$4 sm:$0xff]   ;;  %v7347_v33 = vld [vmem:[#allocation7 + $0xc0c] ss:$16 sps:$4 sm:$0xff]  }
 0x2a6   :  { %4385 = vmatpush2.bf16.msra.mxu0 %v7273_v37  ;;  %v7350_v37 = vld [vmem:[#allocation7 + $0xe0c] ss:$16 sps:$4 sm:$0xff]  }
 0x2a7   :  { %4426 = vmatpush2.bf16.msra.mxu1 %v7276_v16  ;;  %4386 = vmatprep.subr.bf16.mxu0 %v7281_v43  ;;  %v7345_v16 = vld [vmem:[#allocation7 + $0xc08] ss:$16 sps:$4 sm:$0xff]  }
 0x2a8   :  { %4427 = vmatprep.subr.bf16.mxu1 %v7284_v45  ;;  %v7348_v43 = vld [vmem:[#allocation7 + $0xe08] ss:$16 sps:$4 sm:$0xff]   ;;  %v7353_v45 = vld [vmem:[#allocation7 + $0xdec] ss:$16 sps:$4 sm:$0xff]  }
 0x2aa   :  { %4387 = vmatpush2.bf16.msra.mxu0 %v7279_v4  ;;  %v7356_v4 = vld [vmem:[#allocation7 + $0xfec] ss:$16 sps:$4 sm:$0xff]  }
 0x2ab   :  { %4428 = vmatpush2.bf16.msra.mxu1 %v7282_v47  ;;  %4388 = vmatprep.subr.bf16.mxu0 %v7287_v1  ;;  %v7351_v47 = vld [vmem:[#allocation7 + $0xde8] ss:$16 sps:$4 sm:$0xff]  }
 0x2ac   :  { %4429 = vmatprep.subr.bf16.mxu1 %v7290_v36  ;;  %v7354_v1 = vld [vmem:[#allocation7 + $0xfe8] ss:$16 sps:$4 sm:$0xff]   ;;  %v7359_v36 = vld [vmem:[#allocation7 + $0xdcc] ss:$16 sps:$4 sm:$0xff]  }
 0x2ae   :  { %4389 = vmatpush2.bf16.msra.mxu0 %v7285_v27  ;;  %v7362_v27 = vld [vmem:[#allocation7 + $0xfcc] ss:$16 sps:$4 sm:$0xff]  }
 0x2af   :  { %4430 = vmatpush2.bf16.msra.mxu1 %v7288_v11  ;;  %4390 = vmatprep.subr.bf16.mxu0 %v7293_v50  ;;  %v7357_v11 = vld [vmem:[#allocation7 + $0xdc8] ss:$16 sps:$4 sm:$0xff]  }
 0x2b0   :  { %4431 = vmatprep.subr.bf16.mxu1 %v7296_v19  ;;  %v7360_v50 = vld [vmem:[#allocation7 + $0xfc8] ss:$16 sps:$4 sm:$0xff]   ;;  %v7365_v19 = vld [vmem:[#allocation7 + $0xdac] ss:$16 sps:$4 sm:$0xff]  }
 0x2b2   :  { %4391 = vmatpush2.bf16.msra.mxu0 %v7291_v7  ;;  %v7368_v7 = vld [vmem:[#allocation7 + $0xfac] ss:$16 sps:$4 sm:$0xff]  }
 0x2b3   :  { %4432 = vmatpush2.bf16.msra.mxu1 %v7294_v40  ;;  %4392 = vmatprep.subr.bf16.mxu0 %v7299_v3  ;;  %v7363_v40 = vld [vmem:[#allocation7 + $0xda8] ss:$16 sps:$4 sm:$0xff]  }
 0x2b4   :  { %4433 = vmatprep.subr.bf16.mxu1 %v7302_v22  ;;  %v7366_v3 = vld [vmem:[#allocation7 + $0xfa8] ss:$16 sps:$4 sm:$0xff]   ;;  %v7371_v22 = vld [vmem:[#allocation7 + $0xd8c] ss:$16 sps:$4 sm:$0xff]  }
 0x2b6   :  { %4393 = vmatpush2.bf16.msra.mxu0 %v7297_v48  ;;  %v7374_v48 = vld [vmem:[#allocation7 + $0xf8c] ss:$16 sps:$4 sm:$0xff]  }
 0x2b7   :  { %4434 = vmatpush2.bf16.msra.mxu1 %v7300_v52  ;;  %4444 = vmatprep.subr.bf16.mxu0 %v7305_v53  ;;  %v7369_v52 = vld [vmem:[#allocation7 + $0xd88] ss:$16 sps:$4 sm:$0xff]  }
 0x2b8   :  { %4485 = vmatprep.subr.bf16.mxu1 %v7308_v18  ;;  %v7372_v53 = vld [vmem:[#allocation7 + $0xf88] ss:$16 sps:$4 sm:$0xff]   ;;  %v7377_v18 = vld [vmem:[#allocation7 + $0xd6c] ss:$16 sps:$4 sm:$0xff]  }
 0x2b9   :  { %v4150_v56 = vpop.f32.mrf.mxu0  ;;  %4395 = vmatmul.mubr.bf16.vlgmr.msra.gmra.mxu0 %v8059_v12  ;;  %v4191_v41 = vpop.f32.mrf.mxu1 }
 0x2ba   :  { %v4151_v57 = vadd.f32 %v4150_v56, %v8099_v49  ;;  %4436 = vmatmul.mubr.bf16.vlgmr.msra.gmra.mxu1 %v8057_v6  ;;  %4445 = vmatpush1.bf16.msra.mxu0 %v7303_v35  ;;  %v7320_v49 = vld [vmem:[#allocation7 + $0xeac] ss:$16 sps:$4 sm:$0xff]  }
 0x2bb   :  { %4476 = vmatprep.mubr.bf16.mxu0 %v8061_v15  ;;  %4486 = vmatpush1.bf16.msra.mxu1 %v7306_v54  ;;  %v8109_v60 = vpop.f32.mrf.mxu0  ;;  %v8114_v12 = vpop.f32.mrf.mxu1  ;;  %v7380_v35 = vld [vmem:[#allocation7 + $0xf6c] ss:$16 sps:$4 sm:$0xff]   ;;  %v7375_v54 = vld [vmem:[#allocation7 + $0xd68] ss:$16 sps:$4 sm:$0xff]  }
 0x2bc   :  { %v8111_v13 = vadd.f32 %v4191_v41, %v4151_v57  ;;  %4517 = vmatprep.mubr.bf16.mxu1 %v8063_v51  ;;  %4446 = vmatprep.subr.bf16.mxu0 %v7311_v55  ;;  %v7324_v51 = vld [vmem:[#allocation7 + $0xe88] ss:$16 sps:$4 sm:$0xff]   ;;  %v7383_v56 = vld [vmem:[#allocation7 + $0xd4c] ss:$16 sps:$4 sm:$0xff]  }
 0x2bd   :  { %v4154_v5 = vpop.f32.mrf.mxu0  ;;  %4487 = vmatprep.subr.bf16.mxu1 %v7314_v44  ;;  %v4195_v6 = vpop.f32.mrf.mxu1  ;;  %v7378_v55 = vld [vmem:[#allocation7 + $0xf68] ss:$16 sps:$4 sm:$0xff]   ;;  %v7386_v44 = vld [vmem:[#allocation7 + $0xf4c] ss:$16 sps:$4 sm:$0xff]  }
 0x2be   :  { %4447 = vmatpush1.bf16.msra.mxu0 %v7309_v58  ;;  %v7381_v57 = vld [vmem:[#allocation7 + $0xd48] ss:$16 sps:$4 sm:$0xff]   ;;  %v7389_v58 = vld [vmem:[#allocation7 + $0xd2c] ss:$16 sps:$4 sm:$0xff]  }
 0x2bf   :  { %4488 = vmatpush1.bf16.msra.mxu1 %v7312_v61  ;;  %v4155_v15 = vpop.f32.mrf.mxu0  ;;  %4448 = vmatprep.subr.bf16.mxu0 %v7317_v62  ;;  %v4196_v20 = vpop.f32.mrf.mxu1  ;;  %v7384_v41 = vld [vmem:[#allocation7 + $0xf48] ss:$16 sps:$4 sm:$0xff]   ;;  %v7392_v61 = vld [vmem:[#allocation7 + $0xf2c] ss:$16 sps:$4 sm:$0xff]   ;;  %v4153_v62 = vadd.f32 %v8109_v60, %v8103_v2  ;;  %v7623_v2 = vld [vmem:[#allocation8] sm:$0xf] }
 0x2c0   :  { %4489 = vmatprep.subr.bf16.mxu1 %v7320_v49  ;;  %v7387_v49 = vld [vmem:[#allocation7 + $0xd28] ss:$16 sps:$4 sm:$0xff]   ;;  %v7395_v6 = vld [vmem:[#allocation7 + $0xd0c] ss:$16 sps:$4 sm:$0xff]   ;;  %v1301_v60 = vrot.slane %v7623_v2, %v7945_v9 }
 0x2c1   :  { %v7390_v5 = vld [vmem:[#allocation7 + $0xf28] ss:$16 sps:$4 sm:$0xff]   ;;  %v4194_v15 = vadd.f32 %v8114_v12, %v4153_v62  ;;  %v7426_v62 = vld [vmem:[#allocation10 + $0x1c0] ss:$16 sps:$4 sm:$0xff]  }
 0x2c2   :  { %4449 = vmatpush1.bf16.msra.mxu0 %v7315_v14  ;;  %v7398_v14 = vld [vmem:[#allocation7 + $0xf0c] ss:$16 sps:$4 sm:$0xff]   ;;  %v7401_v20 = vld [vmem:[#allocation10 + $0xe4] ss:$16 sps:$4 sm:$0xff]  }
 0x2c3   :  { %4490 = vmatpush1.bf16.msra.mxu1 %v7318_v17  ;;  %4450 = vmatprep.subr.bf16.mxu0 %v7323_v39  ;;  %v7393_v17 = vld [vmem:[#allocation7 + $0xd08] ss:$16 sps:$4 sm:$0xff]  }
 0x2c4   :  { %4491 = vmatprep.subr.bf16.mxu1 %v7326_v38  ;;  %v7396_v39 = vld [vmem:[#allocation7 + $0xf08] ss:$16 sps:$4 sm:$0xff]   ;;  %v4527_v38 = vmax.f32 %v4194_v15, 0.0 }
 0x2c5   :  { %v7434_v15 = vld [vmem:[#allocation10 + $0x184] ss:$16 sps:$4 sm:$0xff]  }
 0x2c6   :  { %4451 = vmatpush1.bf16.msra.mxu0 %v7321_v21  ;;  %v7399_v21 = vld [vmem:[#allocation10 + $0xe0] ss:$16 sps:$4 sm:$0xff]  }
 0x2c7   :  { %4492 = vmatpush1.bf16.msra.mxu1 %v7324_v51  ;;  %4452 = vmatprep.subr.bf16.mxu0 %v7329_v34  ;;  %v7404_v51 = vld [vmem:[#allocation10 + $0xc4] ss:$16 sps:$4 sm:$0xff]   ;;  %v1305_v34 = vrot.slane %v7623_v2, %v7951_v0  ;;  %v7522_v2 = vld [vmem:[#allocation10 + $0x3c0] ss:$16 sps:$4 sm:$0xff]  }
 0x2c8   :  { %4493 = vmatprep.subr.bf16.mxu1 %v7332_v59  ;;  %v8121_v59 = vpack.c.bf16 %v4527_v38, %v4527_v38  ;;  %v7437_v38 = vld [vmem:[#allocation10 + $0x164] ss:$16 sps:$4 sm:$0xff]  }
 0x2ca   :  { %4453 = vmatpush1.bf16.msra.mxu0 %v7327_v25 }
 0x2cb   :  { %4494 = vmatpush1.bf16.msra.mxu1 %v7330_v26  ;;  %4454 = vmatprep.subr.bf16.mxu0 %v7335_v42  ;;  %v7402_v42 = vld [vmem:[#allocation10 + $0xc0] ss:$16 sps:$4 sm:$0xff]  }
 0x2cc   :  { %4495 = vmatprep.subr.bf16.mxu1 %v7338_v28 }
 0x2ce   :  { %4455 = vmatpush1.bf16.msra.mxu0 %v7333_v63  ;;  %v7407_v63 = vld [vmem:[#allocation10 + $0xa4] ss:$16 sps:$4 sm:$0xff]  }
 0x2cf   :  { %4496 = vmatpush1.bf16.msra.mxu1 %v7336_v46  ;;  %4456 = vmatprep.subr.bf16.mxu0 %v7341_v29 }
 0x2d0   :  { %4497 = vmatprep.subr.bf16.mxu1 %v7344_v30 }
 0x2d2   :  { %4457 = vmatpush1.bf16.msra.mxu0 %v7339_v31 }
 0x2d3   :  { %4498 = vmatpush1.bf16.msra.mxu1 %v7342_v32  ;;  %4458 = vmatprep.subr.bf16.mxu0 %v7347_v33 }
 0x2d4   :  { %4499 = vmatprep.subr.bf16.mxu1 %v7350_v37 }
 0x2d6   :  { %4459 = vmatpush1.bf16.msra.mxu0 %v7345_v16 }
 0x2d7   :  { %4500 = vmatpush1.bf16.msra.mxu1 %v7348_v43  ;;  %4460 = vmatprep.subr.bf16.mxu0 %v7353_v45  ;;  %v7495_v43 = vld [vmem:[#allocation10 + $0x2e0] ss:$16 sps:$4 sm:$0xff]   ;;  %v7497_v45 = vld [vmem:[#allocation10 + $0x2e4] ss:$16 sps:$4 sm:$0xff]  }
 0x2d8   :  { %4501 = vmatprep.subr.bf16.mxu1 %v7356_v4  ;;  %v7500_v4 = vld [vmem:[#allocation10 + $0x2c4] ss:$16 sps:$4 sm:$0xff]  }
 0x2da   :  { %4461 = vmatpush2.bf16.msra.mxu0 %v7351_v47  ;;  %v7408_v47 = vld [vmem:[#allocation10 + $0x80] ss:$16 sps:$4 sm:$0xff]  }
 0x2db   :  { %4502 = vmatpush2.bf16.msra.mxu1 %v7354_v1  ;;  %4462 = vmatprep.subr.bf16.mxu0 %v7359_v36  ;;  %v7413_v1 = vld [vmem:[#allocation10 + $0x64] ss:$16 sps:$4 sm:$0xff]   ;;  %v7498_v36 = vld [vmem:[#allocation10 + $0x2c0] ss:$16 sps:$4 sm:$0xff]  }
 0x2dc   :  { %4503 = vmatprep.subr.bf16.mxu1 %v7362_v27  ;;  %v7503_v27 = vld [vmem:[#allocation10 + $0x2a4] ss:$16 sps:$4 sm:$0xff]  }
 0x2de   :  { %4463 = vmatpush2.bf16.msra.mxu0 %v7357_v11  ;;  %v7411_v11 = vld [vmem:[#allocation10 + $0x60] ss:$16 sps:$4 sm:$0xff]  }
 0x2df   :  { %4504 = vmatpush2.bf16.msra.mxu1 %v7360_v50  ;;  %4464 = vmatprep.subr.bf16.mxu0 %v7365_v19  ;;  %v7416_v50 = vld [vmem:[#allocation10 + $0x44] ss:$16 sps:$4 sm:$0xff]   ;;  %v7501_v19 = vld [vmem:[#allocation10 + $0x2a0] ss:$16 sps:$4 sm:$0xff]  }
 0x2e0   :  { %4505 = vmatprep.subr.bf16.mxu1 %v7368_v7  ;;  %v7506_v7 = vld [vmem:[#allocation10 + $0x284] ss:$16 sps:$4 sm:$0xff]  }
 0x2e2   :  { %4465 = vmatpush2.bf16.msra.mxu0 %v7363_v40  ;;  %v7414_v40 = vld [vmem:[#allocation10 + $0x40] ss:$16 sps:$4 sm:$0xff]  }
 0x2e3   :  { %4506 = vmatpush2.bf16.msra.mxu1 %v7366_v3  ;;  %4466 = vmatprep.subr.bf16.mxu0 %v7371_v22  ;;  %v7419_v3 = vld [vmem:[#allocation10 + $0x24] ss:$16 sps:$4 sm:$0xff]   ;;  %v7504_v22 = vld [vmem:[#allocation10 + $0x280] ss:$16 sps:$4 sm:$0xff]  }
 0x2e4   :  { %4507 = vmatprep.subr.bf16.mxu1 %v7374_v48  ;;  %v7509_v48 = vld [vmem:[#allocation10 + $0x264] ss:$16 sps:$4 sm:$0xff]  }
 0x2e6   :  { %4467 = vmatpush2.bf16.msra.mxu0 %v7369_v52  ;;  %v7417_v52 = vld [vmem:[#allocation10 + $0x20] ss:$16 sps:$4 sm:$0xff]  }
 0x2e7   :  { %4508 = vmatpush2.bf16.msra.mxu1 %v7372_v53  ;;  %4468 = vmatprep.subr.bf16.mxu0 %v7377_v18  ;;  %v7422_v53 = vld [vmem:[#allocation10 + $0x4] ss:$16 sps:$4 sm:$0xff]   ;;  %v7507_v18 = vld [vmem:[#allocation10 + $0x260] ss:$16 sps:$4 sm:$0xff]  }
 0x2e8   :  { %4509 = vmatprep.subr.bf16.mxu1 %v7380_v35  ;;  %v7512_v35 = vld [vmem:[#allocation10 + $0x244] ss:$16 sps:$4 sm:$0xff]  }
 0x2ea   :  { %4469 = vmatpush2.bf16.msra.mxu0 %v7375_v54  ;;  %v7420_v54 = vld [vmem:[#allocation10] ss:$16 sps:$4 sm:$0xff]  }
 0x2eb   :  { %4510 = vmatpush2.bf16.msra.mxu1 %v7378_v55  ;;  %4470 = vmatprep.subr.bf16.mxu0 %v7383_v56  ;;  %v7425_v55 = vld [vmem:[#allocation10 + $0x1e4] ss:$16 sps:$4 sm:$0xff]   ;;  %v7510_v56 = vld [vmem:[#allocation10 + $0x240] ss:$16 sps:$4 sm:$0xff]  }
 0x2ec   :  { %4511 = vmatprep.subr.bf16.mxu1 %v7386_v44  ;;  %v7515_v44 = vld [vmem:[#allocation10 + $0x224] ss:$16 sps:$4 sm:$0xff]  }
 0x2ee   :  { %4471 = vmatpush2.bf16.msra.mxu0 %v7381_v57  ;;  %v7423_v57 = vld [vmem:[#allocation10 + $0x1e0] ss:$16 sps:$4 sm:$0xff]  }
 0x2ef   :  { %4512 = vmatpush2.bf16.msra.mxu1 %v7384_v41  ;;  %4472 = vmatprep.subr.bf16.mxu0 %v7389_v58  ;;  %v7428_v41 = vld [vmem:[#allocation10 + $0x1c4] ss:$16 sps:$4 sm:$0xff]   ;;  %v7513_v58 = vld [vmem:[#allocation10 + $0x220] ss:$16 sps:$4 sm:$0xff]  }
 0x2f0   :  { %4513 = vmatprep.subr.bf16.mxu1 %v7392_v61  ;;  %v7518_v61 = vld [vmem:[#allocation10 + $0x204] ss:$16 sps:$4 sm:$0xff]  }
 0x2f2   :  { %4473 = vmatpush2.bf16.msra.mxu0 %v7387_v49  ;;  %v7431_v49 = vld [vmem:[#allocation10 + $0x1a4] ss:$16 sps:$4 sm:$0xff]  }
 0x2f3   :  { %4514 = vmatpush2.bf16.msra.mxu1 %v7390_v5  ;;  %4474 = vmatprep.subr.bf16.mxu0 %v7395_v6  ;;  %v7516_v5 = vld [vmem:[#allocation10 + $0x200] ss:$16 sps:$4 sm:$0xff]   ;;  %v7521_v6 = vld [vmem:[#allocation10 + $0x3e4] ss:$16 sps:$4 sm:$0xff]  }
 0x2f4   :  { %4515 = vmatprep.subr.bf16.mxu1 %v7398_v14  ;;  %v7429_v14 = vld [vmem:[#allocation10 + $0x1a0] ss:$16 sps:$4 sm:$0xff]  }
 0x2f6   :  { %4475 = vmatpush2.bf16.msra.mxu0 %v7393_v17  ;;  %v7519_v17 = vld [vmem:[#allocation10 + $0x3e0] ss:$16 sps:$4 sm:$0xff]  }
 0x2f7   :  { %4516 = vmatpush2.bf16.msra.mxu1 %v7396_v39  ;;  %5324 = vmatprep.subr.bf16.mxu0 %v7401_v20  ;;  %v7524_v39 = vld [vmem:[#allocation10 + $0x3c4] ss:$16 sps:$4 sm:$0xff]   ;;  %v7432_v20 = vld [vmem:[#allocation10 + $0x180] ss:$16 sps:$4 sm:$0xff]  }
 0x2f8   :  { %5365 = vmatprep.subr.bf16.mxu1 %v7497_v45  ;;  %v7452_v45 = vld [vmem:[#allocation10 + $0xcc] ss:$16 sps:$4 sm:$0xff]  }
 0x2f9   :  { %v4232_v12 = vpop.f32.mrf.mxu0  ;;  %4477 = vmatmul.mubr.bf16.vlgmr.msra.gmra.mxu0 %v8072_v23  ;;  %v7405_v23 = vld [vmem:[#allocation10 + $0xa0] ss:$16 sps:$4 sm:$0xff]  }
 0x2fa   :  { %v4233_v25 = vadd.f32 %v4232_v12, %v1301_v60  ;;  %v4273_v26 = vpop.f32.mrf.mxu1  ;;  %4518 = vmatmul.mubr.bf16.vlgmr.msra.gmra.mxu1 %v8074_v24  ;;  %5325 = vmatpush1.bf16.msra.mxu0 %v7399_v21  ;;  %v7410_v24 = vld [vmem:[#allocation10 + $0x84] ss:$16 sps:$4 sm:$0xff]   ;;  %v7435_v21 = vld [vmem:[#allocation10 + $0x160] ss:$16 sps:$4 sm:$0xff]  }
 0x2fb   :  { %5356 = vmatprep.mubr.bf16.mxu0 %v8121_v59  ;;  %v4234_v28 = vpop.f32.mrf.mxu0  ;;  %5326 = vmatprep.subr.bf16.mxu0 %v7404_v51  ;;  %v7527_v60 = vld [vmem:[#allocation10 + $0x3a4] ss:$16 sps:$4 sm:$0xff]  }
 0x2fc   :  { %v8126_v46 = vadd.f32 %v4273_v26, %v4233_v25  ;;  %v4235_v29 = vadd.f32 %v4234_v28, %v1305_v34  ;;  %v4275_v30 = vpop.f32.mrf.mxu1  ;;  %5366 = vmatpush1.bf16.msra.mxu1 %v7495_v43  ;;  %v7440_v51 = vld [vmem:[#allocation10 + $0x144] ss:$16 sps:$4 sm:$0xff]   ;;  %v7525_v34 = vld [vmem:[#allocation10 + $0x3a0] ss:$16 sps:$4 sm:$0xff]  }
 0x2fd   :  { %v4236_v31 = vpop.f32.mrf.mxu0  ;;  %5367 = vmatprep.subr.bf16.mxu1 %v7500_v4  ;;  %v7530_v12 = vld [vmem:[#allocation10 + $0x384] ss:$16 sps:$4 sm:$0xff]   ;;  %v7438_v25 = vld [vmem:[#allocation10 + $0x140] ss:$16 sps:$4 sm:$0xff]  }
 0x2fe   :  { %v8128_v32 = vadd.f32 %v4275_v30, %v4235_v29  ;;  %v4277_v33 = vpop.f32.mrf.mxu1  ;;  %5327 = vmatpush1.bf16.msra.mxu0 %v7402_v42  ;;  %v7443_v26 = vld [vmem:[#allocation10 + $0x124] ss:$16 sps:$4 sm:$0xff]   ;;  %v7528_v42 = vld [vmem:[#allocation10 + $0x380] ss:$16 sps:$4 sm:$0xff]  }
 0x2ff   :  { %v4237_v37 = vpop.f32.mrf.mxu0  ;;  %5328 = vmatprep.subr.bf16.mxu0 %v7407_v63  ;;  %v7533_v28 = vld [vmem:[#allocation10 + $0x364] ss:$16 sps:$4 sm:$0xff]   ;;  %v7441_v63 = vld [vmem:[#allocation10 + $0x120] ss:$16 sps:$4 sm:$0xff]  }
 0x300   :  { %v4278_v16 = vpop.f32.mrf.mxu1  ;;  %5368 = vmatpush1.bf16.msra.mxu1 %v7498_v36  ;;  %v7446_v29 = vld [vmem:[#allocation10 + $0x104] ss:$16 sps:$4 sm:$0xff]   ;;  %v7531_v30 = vld [vmem:[#allocation10 + $0x360] ss:$16 sps:$4 sm:$0xff]   ;;  %v7449_v37 = vld [vmem:[#allocation10 + $0xec] ss:$16 sps:$4 sm:$0xff]  }
 0x301   :  { %5369 = vmatprep.subr.bf16.mxu1 %v7503_v27  ;;  %v7536_v31 = vld [vmem:[#allocation10 + $0x344] ss:$16 sps:$4 sm:$0xff]   ;;  %v7444_v33 = vld [vmem:[#allocation10 + $0x100] ss:$16 sps:$4 sm:$0xff]   ;;  %v7447_v16 = vld [vmem:[#allocation10 + $0xe8] ss:$16 sps:$4 sm:$0xff]  }
 0x302   :  { %5329 = vmatpush1.bf16.msra.mxu0 %v7405_v23  ;;  %v4526_v23 = vmax.f32 %v8111_v13, 0.0  ;;  %v7450_v13 = vld [vmem:[#allocation10 + $0xc8] ss:$16 sps:$4 sm:$0xff]   ;;  %v7455_v27 = vld [vmem:[#allocation10 + $0xac] ss:$16 sps:$4 sm:$0xff]  }
 0x303   :  { %5330 = vmatprep.subr.bf16.mxu0 %v7410_v24  ;;  %v7534_v24 = vld [vmem:[#allocation10 + $0x340] ss:$16 sps:$4 sm:$0xff]  }
 0x304   :  { %5370 = vmatpush1.bf16.msra.mxu1 %v7501_v19  ;;  %v8131_v43 = vpack.c.bf16 %v4526_v23, %v4526_v23 }
 0x305   :  { %5371 = vmatprep.subr.bf16.mxu1 %v7506_v7  ;;  %v7539_v7 = vld [vmem:[#allocation10 + $0x324] ss:$16 sps:$4 sm:$0xff]  }
 0x306   :  { %5331 = vmatpush1.bf16.msra.mxu0 %v7408_v47 }
 0x307   :  { %5332 = vmatprep.subr.bf16.mxu0 %v7413_v1 }
 0x308   :  { %5372 = vmatpush1.bf16.msra.mxu1 %v7504_v22 }
 0x309   :  { %5373 = vmatprep.subr.bf16.mxu1 %v7509_v48 }
 0x30a   :  { %5333 = vmatpush1.bf16.msra.mxu0 %v7411_v11 }
 0x30b   :  { %5334 = vmatprep.subr.bf16.mxu0 %v7416_v50 }
 0x30c   :  { %5374 = vmatpush1.bf16.msra.mxu1 %v7507_v18  ;;  %v7542_v18 = vld [vmem:[#allocation10 + $0x304] ss:$16 sps:$4 sm:$0xff]  }
 0x30d   :  { %5375 = vmatprep.subr.bf16.mxu1 %v7512_v35  ;;  %v7540_v35 = vld [vmem:[#allocation10 + $0x300] ss:$16 sps:$4 sm:$0xff]  }
 0x30e   :  { %5335 = vmatpush1.bf16.msra.mxu0 %v7414_v40 }
 0x30f   :  { %5336 = vmatprep.subr.bf16.mxu0 %v7419_v3  ;;  %v7537_v3 = vld [vmem:[#allocation10 + $0x320] ss:$16 sps:$4 sm:$0xff]  }
 0x310   :  { %5376 = vmatpush1.bf16.msra.mxu1 %v7510_v56  ;;  %v7459_v56 = vld [vmem:[#allocation10 + $0x68] ss:$16 sps:$4 sm:$0xff]  }
 0x311   :  { %5377 = vmatprep.subr.bf16.mxu1 %v7515_v44  ;;  %v7464_v44 = vld [vmem:[#allocation10 + $0x4c] ss:$16 sps:$4 sm:$0xff]  }
 0x312   :  { %5337 = vmatpush1.bf16.msra.mxu0 %v7417_v52 }
 0x313   :  { %5338 = vmatprep.subr.bf16.mxu0 %v7422_v53 }
 0x314   :  { %5378 = vmatpush1.bf16.msra.mxu1 %v7513_v58  ;;  %v7465_v58 = vld [vmem:[#allocation10 + $0x28] ss:$16 sps:$4 sm:$0xff]  }
 0x315   :  { %5379 = vmatprep.subr.bf16.mxu1 %v7518_v61  ;;  %v7470_v61 = vld [vmem:[#allocation10 + $0xc] ss:$16 sps:$4 sm:$0xff]  }
 0x316   :  { %5339 = vmatpush1.bf16.msra.mxu0 %v7420_v54  ;;  %v7456_v54 = vld [vmem:[#allocation10 + $0x88] ss:$16 sps:$4 sm:$0xff]  }
 0x317   :  { %5340 = vmatprep.subr.bf16.mxu0 %v7425_v55  ;;  %v7545_v55 = vld [vmem:[#allocation10 + $0x2ec] ss:$16 sps:$4 sm:$0xff]  }
 0x318   :  { %5380 = vmatpush1.bf16.msra.mxu1 %v7516_v5  ;;  %v7471_v5 = vld [vmem:[#allocation10 + $0x1e8] ss:$16 sps:$4 sm:$0xff]  }
 0x319   :  { %5381 = vmatprep.subr.bf16.mxu1 %v7521_v6  ;;  %v7476_v6 = vld [vmem:[#allocation10 + $0x1cc] ss:$16 sps:$4 sm:$0xff]  }
 0x31a   :  { %5341 = vmatpush2.bf16.msra.mxu0 %v7423_v57  ;;  %v7462_v57 = vld [vmem:[#allocation10 + $0x48] ss:$16 sps:$4 sm:$0xff]  }
 0x31b   :  { %5342 = vmatprep.subr.bf16.mxu0 %v7428_v41  ;;  %v7467_v41 = vld [vmem:[#allocation10 + $0x2c] ss:$16 sps:$4 sm:$0xff]  }
 0x31c   :  { %5382 = vmatpush2.bf16.msra.mxu1 %v7519_v17  ;;  %v7477_v17 = vld [vmem:[#allocation10 + $0x1a8] ss:$16 sps:$4 sm:$0xff]  }
 0x31d   :  { %5383 = vmatprep.subr.bf16.mxu1 %v7524_v39  ;;  %v7482_v39 = vld [vmem:[#allocation10 + $0x18c] ss:$16 sps:$4 sm:$0xff]  }
 0x31e   :  { %5343 = vmatpush2.bf16.msra.mxu0 %v7426_v62  ;;  %v7468_v62 = vld [vmem:[#allocation10 + $0x8] ss:$16 sps:$4 sm:$0xff]  }
 0x31f   :  { %5344 = vmatprep.subr.bf16.mxu0 %v7431_v49  ;;  %v7473_v49 = vld [vmem:[#allocation10 + $0x1ec] ss:$16 sps:$4 sm:$0xff]  }
 0x320   :  { %5384 = vmatpush2.bf16.msra.mxu1 %v7522_v2  ;;  %v7483_v2 = vld [vmem:[#allocation10 + $0x168] ss:$16 sps:$4 sm:$0xff]  }
 0x321   :  { %5385 = vmatprep.subr.bf16.mxu1 %v7527_v60  ;;  %v7488_v60 = vld [vmem:[#allocation10 + $0x14c] ss:$16 sps:$4 sm:$0xff]  }
 0x322   :  { %5345 = vmatpush2.bf16.msra.mxu0 %v7429_v14  ;;  %v7474_v14 = vld [vmem:[#allocation10 + $0x1c8] ss:$16 sps:$4 sm:$0xff]  }
 0x323   :  { %5346 = vmatprep.subr.bf16.mxu0 %v7434_v15  ;;  %v7479_v15 = vld [vmem:[#allocation10 + $0x1ac] ss:$16 sps:$4 sm:$0xff]  }
 0x324   :  { %5386 = vmatpush2.bf16.msra.mxu1 %v7525_v34  ;;  %v7489_v34 = vld [vmem:[#allocation10 + $0x128] ss:$16 sps:$4 sm:$0xff]  }
 0x325   :  { %5387 = vmatprep.subr.bf16.mxu1 %v7530_v12  ;;  %v7494_v12 = vld [vmem:[#allocation10 + $0x10c] ss:$16 sps:$4 sm:$0xff]  }
 0x326   :  { %5347 = vmatpush2.bf16.msra.mxu0 %v7432_v20  ;;  %v7480_v20 = vld [vmem:[#allocation10 + $0x188] ss:$16 sps:$4 sm:$0xff]  }
 0x327   :  { %5348 = vmatprep.subr.bf16.mxu0 %v7437_v38  ;;  %v7485_v38 = vld [vmem:[#allocation10 + $0x16c] ss:$16 sps:$4 sm:$0xff]  }
 0x328   :  { %5388 = vmatpush2.bf16.msra.mxu1 %v7528_v42 }
 0x329   :  { %5389 = vmatprep.subr.bf16.mxu1 %v7533_v28 }
 0x32a   :  { %5349 = vmatpush2.bf16.msra.mxu0 %v7435_v21  ;;  %v7486_v21 = vld [vmem:[#allocation10 + $0x148] ss:$16 sps:$4 sm:$0xff]  }
 0x32b   :  { %5350 = vmatprep.subr.bf16.mxu0 %v7440_v51  ;;  %v7491_v51 = vld [vmem:[#allocation10 + $0x12c] ss:$16 sps:$4 sm:$0xff]  }
 0x32c   :  { %5390 = vmatpush2.bf16.msra.mxu1 %v7531_v30 }
 0x32d   :  { %5391 = vmatprep.subr.bf16.mxu1 %v7536_v31 }
 0x32e   :  { %5351 = vmatpush2.bf16.msra.mxu0 %v7438_v25  ;;  %v7492_v25 = vld [vmem:[#allocation10 + $0x108] ss:$16 sps:$4 sm:$0xff]  }
 0x32f   :  { %5352 = vmatprep.subr.bf16.mxu0 %v7443_v26 }
 0x330   :  { %5392 = vmatpush2.bf16.msra.mxu1 %v7534_v24 }
 0x331   :  { %5393 = vmatprep.subr.bf16.mxu1 %v7539_v7 }
 0x332   :  { %5353 = vmatpush2.bf16.msra.mxu0 %v7441_v63 }
 0x333   :  { %5354 = vmatprep.subr.bf16.mxu0 %v7446_v29 }
 0x334   :  { %5394 = vmatpush2.bf16.msra.mxu1 %v7537_v3  ;;  %v7592_v3 = vld [vmem:[#allocation13 + $0x38] sm:$0xff]  }
 0x335   :  { %5395 = vmatprep.subr.bf16.mxu1 %v7542_v18  ;;  %v7548_v18 = vld [vmem:[#allocation10 + $0x2cc] ss:$16 sps:$4 sm:$0xff]  }
 0x336   :  { %5355 = vmatpush2.bf16.msra.mxu0 %v7444_v33 }
 0x337   :  { %5406 = vmatprep.subr.bf16.mxu0 %v7449_v37 }
 0x338   :  { %5396 = vmatpush2.bf16.msra.mxu1 %v7540_v35  ;;  %v7594_v35 = vld [vmem:[#allocation13 + $0x30] sm:$0xff]  }
 0x339   :  { %v4314_v4 = vpop.f32.mrf.mxu0  ;;  %5357 = vmatmul.mubr.bf16.vlgmr.msra.gmra.mxu0 %v8131_v43  ;;  %5447 = vmatprep.subr.bf16.mxu1 %v7545_v55  ;;  %v7551_v55 = vld [vmem:[#allocation10 + $0x2ac] ss:$16 sps:$4 sm:$0xff]  }
 0x33a   :  { %v4315_v47 = vadd.f32 %v4314_v4, %v8126_v46  ;;  %v4355_v1 = vpop.f32.mrf.mxu1  ;;  %5407 = vmatpush1.bf16.msra.mxu0 %v7447_v16  ;;  %5438 = vmatprep.mubr.bf16.mxu0 %v8121_v59  ;;  %v7453_v46 = vld [vmem:[#allocation10 + $0xa8] ss:$16 sps:$4 sm:$0xff]   ;;  %v7458_v59 = vld [vmem:[#allocation10 + $0x8c] ss:$16 sps:$4 sm:$0xff]  }
 0x33b   :  { %v4316_v36 = vpop.f32.mrf.mxu0  ;;  %5408 = vmatprep.subr.bf16.mxu0 %v7452_v45 }
 0x33c   :  { %v8136_v11 = vadd.f32 %v4355_v1, %v4315_v47  ;;  %v4317_v50 = vadd.f32 %v4316_v36, %v8128_v32  ;;  %v4357_v19 = vpop.f32.mrf.mxu1  ;;  %v7461_v32 = vld [vmem:[#allocation10 + $0x6c] ss:$16 sps:$4 sm:$0xff]  }
 0x33d   :  { %v4318_v40 = vpop.f32.mrf.mxu0 }
 0x33e   :  { %v8139_v22 = vadd.f32 %v4357_v19, %v4317_v50  ;;  %v4359_v48 = vpop.f32.mrf.mxu1  ;;  %5409 = vmatpush1.bf16.msra.mxu0 %v7450_v13  ;;  %v7591_v40 = vld [vmem:[#allocation13 + $0x78] sm:$0xff]  }
 0x33f   :  { %v4319_v52 = vpop.f32.mrf.mxu0  ;;  %5410 = vmatprep.subr.bf16.mxu0 %v7455_v27  ;;  %v7593_v48 = vld [vmem:[#allocation13 + $0x70] sm:$0xff]  }
 0x340   :  { %v4360_v53 = vpop.f32.mrf.mxu1 }
 0x342   :  { %5411 = vmatpush1.bf16.msra.mxu0 %v7453_v46 }
 0x343   :  { %5412 = vmatprep.subr.bf16.mxu0 %v7458_v59  ;;  %v7543_v59 = vld [vmem:[#allocation10 + $0x2e8] ss:$16 sps:$4 sm:$0xff]  }
 0x346   :  { %5413 = vmatpush1.bf16.msra.mxu0 %v7456_v54  ;;  %v7595_v54 = vld [vmem:[#allocation13 + $0x68] sm:$0xff]  }
 0x347   :  { %5414 = vmatprep.subr.bf16.mxu0 %v7461_v32  ;;  %v7546_v32 = vld [vmem:[#allocation10 + $0x2c8] ss:$16 sps:$4 sm:$0xff]  }
 0x34a   :  { %5415 = vmatpush1.bf16.msra.mxu0 %v7459_v56  ;;  %v7596_v56 = vld [vmem:[#allocation13 + $0x28] sm:$0xff]  }
 0x34b   :  { %5416 = vmatprep.subr.bf16.mxu0 %v7464_v44  ;;  %v7597_v44 = vld [vmem:[#allocation13 + $0x60] sm:$0xff]  }
 0x34e   :  { %5417 = vmatpush1.bf16.msra.mxu0 %v7462_v57  ;;  %v7549_v57 = vld [vmem:[#allocation10 + $0x2a8] ss:$16 sps:$4 sm:$0xff]  }
 0x34f   :  { %5418 = vmatprep.subr.bf16.mxu0 %v7467_v41  ;;  %v7554_v41 = vld [vmem:[#allocation10 + $0x28c] ss:$16 sps:$4 sm:$0xff]  }
 0x352   :  { %5419 = vmatpush1.bf16.msra.mxu0 %v7465_v58  ;;  %v7598_v58 = vld [vmem:[#allocation13 + $0x20] sm:$0xff]  }
 0x353   :  { %5420 = vmatprep.subr.bf16.mxu0 %v7470_v61  ;;  %v7599_v61 = vld [vmem:[#allocation13 + $0x58] sm:$0xff]  }
 0x356   :  { %5421 = vmatpush1.bf16.msra.mxu0 %v7468_v62  ;;  %v7552_v62 = vld [vmem:[#allocation10 + $0x288] ss:$16 sps:$4 sm:$0xff]  }
 0x357   :  { %5422 = vmatprep.subr.bf16.mxu0 %v7473_v49  ;;  %v7557_v49 = vld [vmem:[#allocation10 + $0x26c] ss:$16 sps:$4 sm:$0xff]  }
 0x35a   :  { %5423 = vmatpush2.bf16.msra.mxu0 %v7471_v5  ;;  %v7600_v5 = vld [vmem:[#allocation13 + $0x18] sm:$0xff]  }
 0x35b   :  { %5424 = vmatprep.subr.bf16.mxu0 %v7476_v6  ;;  %v7601_v6 = vld [vmem:[#allocation13 + $0x50] sm:$0xff]  }
 0x35e   :  { %5425 = vmatpush2.bf16.msra.mxu0 %v7474_v14  ;;  %v7555_v14 = vld [vmem:[#allocation10 + $0x268] ss:$16 sps:$4 sm:$0xff]  }
 0x35f   :  { %5426 = vmatprep.subr.bf16.mxu0 %v7479_v15  ;;  %v7560_v15 = vld [vmem:[#allocation10 + $0x24c] ss:$16 sps:$4 sm:$0xff]  }
 0x362   :  { %5427 = vmatpush2.bf16.msra.mxu0 %v7477_v17  ;;  %v7602_v17 = vld [vmem:[#allocation13 + $0x10] sm:$0xff]  }
 0x363   :  { %5428 = vmatprep.subr.bf16.mxu0 %v7482_v39  ;;  %v7558_v39 = vld [vmem:[#allocation10 + $0x248] ss:$16 sps:$4 sm:$0xff]  }
 0x366   :  { %5429 = vmatpush2.bf16.msra.mxu0 %v7480_v20  ;;  %v7563_v20 = vld [vmem:[#allocation10 + $0x22c] ss:$16 sps:$4 sm:$0xff]  }
 0x367   :  { %5430 = vmatprep.subr.bf16.mxu0 %v7485_v38  ;;  %v7561_v38 = vld [vmem:[#allocation10 + $0x228] ss:$16 sps:$4 sm:$0xff]  }
 0x36a   :  { %5431 = vmatpush2.bf16.msra.mxu0 %v7483_v2  ;;  %v7566_v2 = vld [vmem:[#allocation10 + $0x20c] ss:$16 sps:$4 sm:$0xff]  }
 0x36b   :  { %5432 = vmatprep.subr.bf16.mxu0 %v7488_v60  ;;  %v7564_v60 = vld [vmem:[#allocation10 + $0x208] ss:$16 sps:$4 sm:$0xff]  }
 0x36e   :  { %5433 = vmatpush2.bf16.msra.mxu0 %v7486_v21  ;;  %v7569_v21 = vld [vmem:[#allocation10 + $0x3ec] ss:$16 sps:$4 sm:$0xff]  }
 0x36f   :  { %5434 = vmatprep.subr.bf16.mxu0 %v7491_v51  ;;  %v7567_v51 = vld [vmem:[#allocation10 + $0x3e8] ss:$16 sps:$4 sm:$0xff]  }
 0x372   :  { %5435 = vmatpush2.bf16.msra.mxu0 %v7489_v34  ;;  %v7572_v34 = vld [vmem:[#allocation10 + $0x3cc] ss:$16 sps:$4 sm:$0xff]  }
 0x373   :  { %5436 = vmatprep.subr.bf16.mxu0 %v7494_v12  ;;  %v7570_v12 = vld [vmem:[#allocation10 + $0x3c8] ss:$16 sps:$4 sm:$0xff]  }
 0x376   :  { %5437 = vmatpush2.bf16.msra.mxu0 %v7492_v25  ;;  %v7575_v25 = vld [vmem:[#allocation10 + $0x3ac] ss:$16 sps:$4 sm:$0xff]  }
 0x377   :  { %6572 = vmatprep.subr.bf16.mxu0 %v7591_v40  ;;  %v7612_v40 = vld [vmem:[#allocation13 + $0xa8] sm:$0xff]  }
 0x379   :  { %v4396_v26 = vpop.f32.mrf.mxu0  ;;  %5439 = vmatmul.mubr.bf16.vlgmr.msra.gmra.mxu0 %v8131_v43 }
 0x37a   :  { %v4397_v42 = vadd.f32 %v4396_v26, %v8136_v11  ;;  %v4437_v28 = vpop.f32.mrf.mxu1  ;;  %6573 = vmatpush3.bf16.msra.mxu0 %v7592_v3  ;;  %v7573_v26 = vld [vmem:[#allocation10 + $0x3a8] ss:$16 sps:$4 sm:$0xff]  }
 0x37b   :  { %v4398_v63 = vpop.f32.mrf.mxu0  ;;  %6574 = vmatprep.subr.bf16.mxu0 %v7593_v48  ;;  %v7613_v3 = vld [vmem:[#allocation13 + $0xe0] sm:$0xff]  }
 0x37c   :  { %v4438_v29 = vadd.f32 %v4437_v28, %v4397_v42  ;;  %v4439_v30 = vpop.f32.mrf.mxu1  ;;  %v4399_v24 = vadd.f32 %v4398_v63, %v8139_v22  ;;  %v7578_v42 = vld [vmem:[#allocation10 + $0x38c] ss:$16 sps:$4 sm:$0xff]   ;;  %v7576_v28 = vld [vmem:[#allocation10 + $0x388] ss:$16 sps:$4 sm:$0xff]  }
 0x37d   :  { %v4400_v31 = vpop.f32.mrf.mxu0  ;;  %v7581_v63 = vld [vmem:[#allocation10 + $0x36c] ss:$16 sps:$4 sm:$0xff]   ;;  %v7614_v48 = vld [vmem:[#allocation13 + $0xa0] sm:$0xff]  }
 0x37e   :  { %v4441_v33 = vpop.f32.mrf.mxu1  ;;  %v4440_v45 = vadd.f32 %v4439_v30, %v4399_v24  ;;  %6575 = vmatpush3.bf16.msra.mxu0 %v7594_v35  ;;  %v7584_v30 = vld [vmem:[#allocation10 + $0x34c] ss:$16 sps:$4 sm:$0xff]   ;;  %v7582_v31 = vld [vmem:[#allocation10 + $0x348] ss:$16 sps:$4 sm:$0xff]  }
 0x37f   :  { %v4401_v23 = vpop.f32.mrf.mxu0  ;;  %6576 = vmatprep.subr.bf16.mxu0 %v7595_v54  ;;  %v7587_v33 = vld [vmem:[#allocation10 + $0x32c] ss:$16 sps:$4 sm:$0xff]  }
 0x380   :  { %v4442_v37 = vpop.f32.mrf.mxu1 }
 0x381   :  { %v7585_v37 = vld [vmem:[#allocation10 + $0x328] ss:$16 sps:$4 sm:$0xff]  }
 0x382   :  { %6577 = vmatpush3.bf16.msra.mxu0 %v7596_v56  ;;  %v7621_v56 = vld [vmem:[#allocation13 + $0xc0] sm:$0xff]  }
 0x383   :  { %6578 = vmatprep.subr.bf16.mxu0 %v7597_v44  ;;  %v7622_v44 = vld [vmem:[#allocation13 + $0x80] sm:$0xff]  }
 0x386   :  { %6579 = vmatpush3.bf16.msra.mxu0 %v7598_v58 }
 0x387   :  { %6580 = vmatprep.subr.bf16.mxu0 %v7599_v61 }
 0x38a   :  { %6581 = vmatpush3.bf16.msra.mxu0 %v7600_v5 }
 0x38b   :  { %6582 = vmatprep.subr.bf16.mxu0 %v7601_v6 }
 0x38e   :  { %6583 = vmatpush3.bf16.msra.mxu0 %v7602_v17 }
 0x3b9   :  { %v4478_v16 = vpop.f32.mrf.mxu0 }
 0x3ba   :  { %v4479_v4 = vadd.f32 %v4478_v16, %v4438_v29  ;;  %v4519_v47 = vpop.f32.mrf.mxu1  ;;  %v7579_v29 = vld [vmem:[#allocation10 + $0x368] ss:$16 sps:$4 sm:$0xff]   ;;  %v7590_v16 = vld [vmem:[#allocation10 + $0x30c] ss:$16 sps:$4 sm:$0xff]  }
 0x3bb   :  { %v4480_v1 = vpop.f32.mrf.mxu0 }
 0x3bc   :  { %v4520_v13 = vadd.f32 %v4519_v47, %v4479_v4  ;;  %v4481_v36 = vadd.f32 %v4480_v1, %v4440_v45  ;;  %v4521_v43 = vpop.f32.mrf.mxu1  ;;  %v7588_v4 = vld [vmem:[#allocation10 + $0x308] ss:$16 sps:$4 sm:$0xff]   ;;  %v7603_v1 = vld [vmem:[#allocation13 + $0x48] sm:$0xff]  }
 0x3bd   :  { %v4482_v27 = vpop.f32.mrf.mxu0  ;;  %6584 = vmatprep.subr.bf16.mxu0 %v7603_v1 }
 0x3be   :  { %v4522_v11 = vadd.f32 %v4521_v43, %v4481_v36  ;;  %v4523_v50 = vpop.f32.mrf.mxu1  ;;  %v4528_v19 = vmax.f32 %v4520_v13, 0.0  ;;  %v7604_v13 = vld [vmem:[#allocation13 + $0x8] sm:$0xff]   ;;  %v7605_v36 = vld [vmem:[#allocation13 + $0x40] sm:$0xff]   ;;  %v7607_v27 = vld [vmem:[#allocation13 + $0xf8] sm:$0xff]  }
 0x3bf   :  { %v4483_v7 = vpop.f32.mrf.mxu0  ;;  %6585 = vmatpush3.bf16.msra.mxu0 %v7604_v13  ;;  %v7606_v43 = vld [vmem:[#allocation13] sm:$0xff]   ;;  %v7609_v50 = vld [vmem:[#allocation13 + $0xf0] sm:$0xff]  }
 0x3c0   :  { %v4529_v46 = vmax.f32 %v4522_v11, 0.0  ;;  %v4524_v52 = vpop.f32.mrf.mxu1  ;;  %v8144_v53 = vpack.c.bf16 %v4528_v19, %v4528_v19  ;;  %6586 = vmatprep.subr.bf16.mxu0 %v7605_v36  ;;  %v7608_v11 = vld [vmem:[#allocation13 + $0xb8] sm:$0xff]   ;;  %v7610_v19 = vld [vmem:[#allocation13 + $0xb0] sm:$0xff]   ;;  %v7611_v7 = vld [vmem:[#allocation13 + $0xe8] sm:$0xff]  }
 0x3c1   :  { %v7616_v52 = vld [vmem:[#allocation13 + $0x98] sm:$0xff]  }
 0x3c2   :  { %v4533_v22 = vpack.c.bf16 %v4529_v46, %v4529_v46  ;;  %v7615_v46 = vld [vmem:[#allocation13 + $0xd8] sm:$0xff]  }
 0x3c3   :  { %6587 = vmatpush3.bf16.msra.mxu0 %v7606_v43 }
 0x3c4   :  { %5397 = vmatprep.mubr.bf16.mxu1 %v4533_v22 }
 0x3c5   :  { %5398 = vmatmul.mubr.bf16.vlgmr.msra.gmra.mxu1 %v8144_v53 }
 0x3c6   :  { %5448 = vmatpush1.bf16.msra.mxu1 %v7543_v59  ;;  %5479 = vmatprep.mubr.bf16.mxu1 %v4533_v22  ;;  %v7617_v22 = vld [vmem:[#allocation13 + $0xd0] sm:$0xff]  }
 0x3c7   :  { %5449 = vmatprep.subr.bf16.mxu1 %v7548_v18  ;;  %v7618_v59 = vld [vmem:[#allocation13 + $0x90] sm:$0xff]  }
 0x3ca   :  { %5450 = vmatpush1.bf16.msra.mxu1 %v7546_v32  ;;  %v7619_v32 = vld [vmem:[#allocation13 + $0xc8] sm:$0xff]  }
 0x3cb   :  { %5451 = vmatprep.subr.bf16.mxu1 %v7551_v55  ;;  %v7620_v55 = vld [vmem:[#allocation13 + $0x88] sm:$0xff]  }
 0x3ce   :  { %5452 = vmatpush1.bf16.msra.mxu1 %v7549_v57  ;;  %v4662_v57 = vld [vmem:[#allocation11] sm:$0xf] }
 0x3cf   :  { %5453 = vmatprep.subr.bf16.mxu1 %v7554_v41  ;;  %v4667_v41 = vrot.slane %v4662_v57, %v7942_v8  ;;  %v4671_v58 = vrot.slane %v4662_v57, %v7948_v10  ;;  %v4679_v8 = vrot.slane %v4662_v57, %v7951_v0  ;;  %v6539_v0 = vld [vmem:[#allocation14] ss:$0 sm:$0xff] }
 0x3d2   :  { %5454 = vmatpush1.bf16.msra.mxu1 %v7552_v62 }
 0x3d3   :  { %5455 = vmatprep.subr.bf16.mxu1 %v7557_v49 }
 0x3d6   :  { %5456 = vmatpush1.bf16.msra.mxu1 %v7555_v14 }
 0x3d7   :  { %5457 = vmatprep.subr.bf16.mxu1 %v7560_v15 }
 0x3da   :  { %5458 = vmatpush1.bf16.msra.mxu1 %v7558_v39 }
 0x3db   :  { %5459 = vmatprep.subr.bf16.mxu1 %v7563_v20 }
 0x3de   :  { %5460 = vmatpush1.bf16.msra.mxu1 %v7561_v38 }
 0x3df   :  { %5461 = vmatprep.subr.bf16.mxu1 %v7566_v2 }
 0x3e2   :  { %5462 = vmatpush1.bf16.msra.mxu1 %v7564_v60  ;;  %v4675_v60 = vrot.slane %v4662_v57, %v7945_v9 }
 0x3e3   :  { %5463 = vmatprep.subr.bf16.mxu1 %v7569_v21 }
 0x3e6   :  { %5464 = vmatpush2.bf16.msra.mxu1 %v7567_v51 }
 0x3e7   :  { %5465 = vmatprep.subr.bf16.mxu1 %v7572_v34 }
 0x3ea   :  { %5466 = vmatpush2.bf16.msra.mxu1 %v7570_v12 }
 0x3eb   :  { %5467 = vmatprep.subr.bf16.mxu1 %v7575_v25 }
 0x3ee   :  { %5468 = vmatpush2.bf16.msra.mxu1 %v7573_v26 }
 0x3ef   :  { %5469 = vmatprep.subr.bf16.mxu1 %v7578_v42 }
 0x3f2   :  { %5470 = vmatpush2.bf16.msra.mxu1 %v7576_v28 }
 0x3f3   :  { %5471 = vmatprep.subr.bf16.mxu1 %v7581_v63 }
 0x3f6   :  { %5472 = vmatpush2.bf16.msra.mxu1 %v7579_v29 }
 0x3f7   :  { %5473 = vmatprep.subr.bf16.mxu1 %v7584_v30 }
 0x3f9   :  { %v5358_v23 = vpop.f32.mrf.mxu0 }
 0x3fa   :  { %5474 = vmatpush2.bf16.msra.mxu1 %v7582_v31  ;;  %v5359_v61 = vadd.f32 %v5358_v23, %v4667_v41 }
 0x3fb   :  { %v5360_v24 = vpop.f32.mrf.mxu0  ;;  %5475 = vmatprep.subr.bf16.mxu1 %v7587_v33 }
 0x3fc   :  { %v5361_v49 = vadd.f32 %v5360_v24, %v4671_v58 }
 0x3fd   :  { %v5362_v45 = vpop.f32.mrf.mxu0 }
 0x3fe   :  { %5476 = vmatpush2.bf16.msra.mxu1 %v7585_v37 }
 0x3ff   :  { %v5363_v47 = vpop.f32.mrf.mxu0  ;;  %5477 = vmatprep.subr.bf16.mxu1 %v7590_v16 }
 0x402   :  { %5478 = vmatpush2.bf16.msra.mxu1 %v7588_v4 }
 0x403   :  { %6594 = vmatprep.subr.bf16.mxu1 %v7607_v27 }
 0x405   :  { %5480 = vmatmul.mubr.bf16.vlgmr.msra.gmra.mxu1 %v8144_v53 }
 0x406   :  { %6595 = vmatpush3.bf16.msra.mxu1 %v7608_v11 }
 0x407   :  { %6596 = vmatprep.subr.bf16.mxu1 %v7609_v50 }
 0x40a   :  { %6597 = vmatpush3.bf16.msra.mxu1 %v7610_v19 }
 0x40b   :  { %6598 = vmatprep.subr.bf16.mxu1 %v7611_v7 }
 0x40e   :  { %6599 = vmatpush3.bf16.msra.mxu1 %v7612_v40 }
 0x40f   :  { %6600 = vmatprep.subr.bf16.mxu1 %v7613_v3 }
 0x412   :  { %6601 = vmatpush3.bf16.msra.mxu1 %v7614_v48 }
 0x413   :  { %6602 = vmatprep.subr.bf16.mxu1 %v7615_v46 }
 0x416   :  { %6603 = vmatpush3.bf16.msra.mxu1 %v7616_v52 }
 0x417   :  { %6604 = vmatprep.subr.bf16.mxu1 %v7617_v22 }
 0x41a   :  { %6605 = vmatpush3.bf16.msra.mxu1 %v7618_v59 }
 0x41b   :  { %6606 = vmatprep.subr.bf16.mxu1 %v7619_v32 }
 0x41e   :  { %6607 = vmatpush3.bf16.msra.mxu1 %v7620_v55 }
 0x41f   :  { %6608 = vmatprep.subr.bf16.mxu1 %v7621_v56 }
 0x422   :  { %6609 = vmatpush3.bf16.msra.mxu1 %v7622_v44 }
 0x439   :  { %v5440_v53 = vpop.f32.mrf.mxu0 }
 0x43a   :  { %v5441_v21 = vadd.f32 %v5440_v53, %v4675_v60 }
 0x43b   :  { %v5442_v18 = vpop.f32.mrf.mxu0 }
 0x43c   :  { %v5443_v51 = vadd.f32 %v5442_v18, %v4679_v8 }
 0x43d   :  { %v5444_v35 = vpop.f32.mrf.mxu0 }
 0x43f   :  { %v5445_v54 = vpop.f32.mrf.mxu0 }
 0x485   :  { %v5399_v62 = vpop.f32.mrf.mxu1 }
 0x486   :  { %v5400_v5 = vadd.f32 %v5399_v62, %v5359_v61 }
 0x487   :  { %v5401_v6 = vpop.f32.mrf.mxu1 }
 0x488   :  { %v5402_v14 = vadd.f32 %v5401_v6, %v5361_v49  ;;  %v5488_v15 = vmax.f32 %v5400_v5, 0.0 }
 0x489   :  { %v5403_v17 = vpop.f32.mrf.mxu1 }
 0x48a   :  { %v5489_v39 = vmax.f32 %v5402_v14, 0.0  ;;  %v5492_v2 = vpack.c.bf16 %v5488_v15, %v5488_v15 }
 0x48b   :  { %v5404_v20 = vpop.f32.mrf.mxu1 }
 0x48c   :  { %v5493_v38 = vpack.c.bf16 %v5489_v39, %v5489_v39 }
 0x48e   :  { %5791 = vmatprep.mubr.bf16.mxu0 %v5493_v38 }
 0x48f   :  { %5792 = vmatmul.mubr.bf16.vlgmr.msra.gmra.mxu0 %v5492_v2 }
 0x4c5   :  { %v5481_v10 = vpop.f32.mrf.mxu1 }
 0x4c6   :  { %v5482_v34 = vadd.f32 %v5481_v10, %v5441_v21 }
 0x4c7   :  { %v5483_v12 = vpop.f32.mrf.mxu1 }
 0x4c8   :  { %v5484_v25 = vadd.f32 %v5483_v12, %v5443_v51  ;;  %v5490_v26 = vmax.f32 %v5482_v34, 0.0 }
 0x4c9   :  { %v5485_v42 = vpop.f32.mrf.mxu1 }
 0x4ca   :  { %v5491_v28 = vmax.f32 %v5484_v25, 0.0  ;;  %v5494_v30 = vpack.c.bf16 %v5490_v26, %v5490_v26 }
 0x4cb   :  { %v5486_v63 = vpop.f32.mrf.mxu1 }
 0x4cc   :  { %v5495_v29 = vpack.c.bf16 %v5491_v28, %v5491_v28 }
 0x4ce   :  { %5831 = vmatprep.mubr.bf16.mxu1 %v5495_v29 }
 0x4cf   :  { %5832 = vmatmul.mubr.bf16.vlgmr.msra.gmra.mxu1 %v5494_v30 }
 0x54f   :  { %v6588_v31 = vpop.f32.mrf.mxu0 }
 0x551   :  { %v6589_v33 = vpop.f32.mrf.mxu0 }
 0x552   :  { %v6590_v37 = vadd.f32 %v6589_v33, %v6588_v31 }
 0x553   :  { %v6591_v23 = vpop.f32.mrf.mxu0 }
 0x554   :  { %v5794_v45 = vadd.f32 %v6590_v37, %v6539_v0 }
 0x555   :  { %v6592_v9 = vpop.f32.mrf.mxu0 }
 0x58f   :  { %v6610_v24 = vpop.f32.mrf.mxu1 }
 0x591   :  { %v6611_v16 = vpop.f32.mrf.mxu1 }
 0x592   :  { %v6612_v4 = vadd.f32 %v6611_v16, %v6610_v24 }
 0x593   :  { %v6613_v47 = vpop.f32.mrf.mxu1 }
 0x594   :  { %v5834_v1 = vadd.f32 %v6612_v4, %v5794_v45 }
 0x595   :  { %v6614_v13 = vpop.f32.mrf.mxu1 }
 0x596   :  { %5839 = vst [vmem:[#allocation16] sm:$0xff] %v5834_v1 }
 0x597   :  { %7795 = shalt.err (!%p7792_p2)
}
 0x598   :  { %5849 = dma.vmem_to_hbm [thread:$0]  %s5847_s26, 128, %s8164_s9, [#allocation4]  }
 0x599   :  { %7814 = dma.done.wait [#allocation4], 128  }
 0x59a   :  { %7815 = vsyncadd [#allocation4], 4294967168 }
 0x59b   :  { %5853 = vsyncpa [#allocation3], 1 }
 0x59c   :  { %5854 = vsyncpa [#allocation6], 1 }
 0x59d   :  { %5855 = vsyncpa [#allocation9], 1 }
 0x59e   :  { %5856 = vsyncpa [#allocation12], 1 }
 0x59f   :  { %5857 = vsyncpa [#allocation15], 1 }
 0x5a0   :  { %5858 = vsyncpa [#allocation4], 1 }

</bundles_post_ra>
